<compile_context>
chip_gen: v7x
topology: tpu7x:2x2x1
jax: 0.10.0
libtpu: 0.0.40
codegen_flags: <defaults>
</compile_context>

<pallas_src>
import functools

import jax
import jax.numpy as jnp
from jax.experimental import pallas as pl
from jax.experimental.pallas import tpu as pltpu

BN_EPS = 0.9          # nn.BatchNorm1d(n, 0.9) -> second positional arg is eps
LEAKY_SLOPE = 0.2


def _leaky(x):
    return jnp.where(x >= 0, x, LEAKY_SLOPE * x)


def _batchnorm(x, gamma, beta):
    # training-mode BatchNorm1d: per-feature batch mean / biased variance
    mu = jnp.mean(x, axis=0, keepdims=True)
    var = jnp.mean(jnp.square(x - mu), axis=0, keepdims=True)
    return (x - mu) * jax.lax.rsqrt(var + BN_EPS) * gamma + beta


# --------------------------- trunk kernel (layers 1-3) ----------------------
def _trunk_kernel(z_ref,
                  w1_ref, b1_ref,
                  w2_ref, b2_ref, g2_ref, bt2_ref,
                  w3_ref, b3_ref, g3_ref, bt3_ref,
                  h3_ref):
    """Whole batch in one invocation -> exact BatchNorm batch statistics."""
    # Linear 1 + LeakyReLU  (bf16 operands, f32 accumulation)
    h = jnp.dot(z_ref[...], w1_ref[...],
                preferred_element_type=jnp.float32) + b1_ref[...]
    h = _leaky(h)

    # Linear 2 + BatchNorm + LeakyReLU
    h = jnp.dot(h.astype(jnp.bfloat16), w2_ref[...],
                preferred_element_type=jnp.float32) + b2_ref[...]
    h = _leaky(_batchnorm(h, g2_ref[...], bt2_ref[...]))

    # Linear 3 + BatchNorm + LeakyReLU
    h = jnp.dot(h.astype(jnp.bfloat16), w3_ref[...],
                preferred_element_type=jnp.float32) + b3_ref[...]
    h = _leaky(_batchnorm(h, g3_ref[...], bt3_ref[...]))

    h3_ref[...] = h.astype(jnp.bfloat16)


# ----------------------- head kernel (Linear 4 + Tanh) ----------------------
def _head_kernel(h3_ref, w4_ref, b4_ref, out_ref):
    """One lane-dense output-feature tile: (B,1024) @ (1024,TN) + b4, tanh."""
    acc = jnp.dot(h3_ref[...], w4_ref[...],
                  preferred_element_type=jnp.float32) + b4_ref[...]
    out_ref[...] = jnp.tanh(acc)


def _full_spec(shape):
    """Full-array block with a constant index_map (grid rank 1)."""
    nd = len(shape)
    return pl.BlockSpec(shape, lambda i, nd=nd: (0,) * nd)


def _round_up(x, m):
    return ((x + m - 1) // m) * m


def _pick_tile(out_dim, max_tn=1024):
    """Lane-aligned output-feature tile (TN) and padded total feature count."""
    n_pad128 = _round_up(out_dim, 128)
    if n_pad128 <= max_tn:
        return n_pad128, n_pad128
    return max_tn, _round_up(out_dim, max_tn)


def init_params(key, latent_dim, img_shape):
    """Deterministic init mimicking PyTorch Linear defaults. Stored in f32."""
    out_dim = int(img_shape[0] * img_shape[1] * img_shape[2])
    dims = [latent_dim, 256, 512, 1024, out_dim]
    params = {}
    keys = jax.random.split(key, 8)
    for i in range(4):
        fan_in, fan_out = dims[i], dims[i + 1]
        k = 1.0 / jnp.sqrt(fan_in)
        # stored as (in, out) == PyTorch weight (out, in) transposed
        params[f"w{i+1}"] = jax.random.uniform(
            keys[2 * i], (fan_in, fan_out), jnp.float32, -k, k)
        params[f"b{i+1}"] = jax.random.uniform(
            keys[2 * i + 1], (1, fan_out), jnp.float32, -k, k)
    # BatchNorm affine params (PyTorch default: gamma=1, beta=0)
    params["g2"] = jnp.ones((1, 512), jnp.float32)
    params["bt2"] = jnp.zeros((1, 512), jnp.float32)
    params["g3"] = jnp.ones((1, 1024), jnp.float32)
    params["bt3"] = jnp.zeros((1, 1024), jnp.float32)
    return params


def prepare_params(params, img_shape):
    """One-time prep: cast matmul weights to bf16, pad w4/b4 to the tile grid.

    Keeping this OUT of the jitted forward means the kernel's streamed w4
    weight is read from HBM exactly once per call (bf16), instead of
    f32-read + bf16-write + bf16-read every call.
    """
    out_dim = int(img_shape[0] * img_shape[1] * img_shape[2])
    _, n_padded = _pick_tile(out_dim)
    pad_cols = n_padded - out_dim
    bf = jnp.bfloat16
    return {
        "w1": params["w1"].astype(bf), "b1": params["b1"],
        "w2": params["w2"].astype(bf), "b2": params["b2"],
        "g2": params["g2"], "bt2": params["bt2"],
        "w3": params["w3"].astype(bf), "b3": params["b3"],
        "g3": params["g3"], "bt3": params["bt3"],
        "w4": jnp.pad(params["w4"], ((0, 0), (0, pad_cols))).astype(bf),
        "b4": jnp.pad(params["b4"], ((0, 0), (0, pad_cols))),
    }


@functools.partial(jax.jit, static_argnames=("img_shape",))
def advanced_generator_forward(z, prepared, img_shape):
    B = z.shape[0]
    out_dim = int(img_shape[0] * img_shape[1] * img_shape[2])
    tn, n_padded = _pick_tile(out_dim)
    assert prepared["w4"].shape[1] == n_padded, "params not prepared for this img_shape"
    num_tiles = n_padded // tn

    bf = jnp.bfloat16
    z_bf = z.astype(bf)

    # ---- trunk: layers 1-3, single invocation (exact whole-batch BN) ----
    trunk_args = (
        z_bf,
        prepared["w1"], prepared["b1"],
        prepared["w2"], prepared["b2"], prepared["g2"], prepared["bt2"],
        prepared["w3"], prepared["b3"], prepared["g3"], prepared["bt3"],
    )
    h3 = pl.pallas_call(
        _trunk_kernel,
        out_shape=jax.ShapeDtypeStruct((B, 1024), bf),
        grid=(1,),
        in_specs=[_full_spec(a.shape) for a in trunk_args],
        out_specs=_full_spec((B, 1024)),
        compiler_params=pltpu.CompilerParams(
            dimension_semantics=("arbitrary",)),
    )(*trunk_args)

    # ---- head: Linear(1024 -> out_dim) + Tanh, streamed over feature tiles ----
    head_cost = pl.CostEstimate(
        flops=2 * B * 1024 * n_padded,
        transcendentals=B * n_padded,
        bytes_accessed=(n_padded * 1024 * 2      # w4 (bf16)
                        + B * 1024 * 2           # h3 (bf16, re-read per tile is tiny)
                        + n_padded * 4           # b4
                        + B * n_padded * 4),     # output (f32)
    )
    flat = pl.pallas_call(
        _head_kernel,
        out_shape=jax.ShapeDtypeStruct((B, n_padded), jnp.float32),
        grid=(num_tiles,),
        in_specs=[
            pl.BlockSpec((B, 1024), lambda j: (0, 0)),    # h3: resident
            pl.BlockSpec((1024, tn), lambda j: (0, j)),   # w4: streamed tiles
            pl.BlockSpec((1, tn), lambda j: (0, j)),      # b4: streamed tiles
        ],
        out_specs=pl.BlockSpec((B, tn), lambda j: (0, j)),
        compiler_params=pltpu.CompilerParams(
            # No cross-tile state -> safe to shard across TensorCores (v7x).
            dimension_semantics=("parallel",),
            vmem_limit_bytes=32 << 20),
        cost_estimate=head_cost,
    )(h3, prepared["w4"], prepared["b4"])

    # Drop padded columns, then PyTorch: img = img.view(B, *img_shape) (NCHW)
    return flat[:, :out_dim].reshape(B, *img_shape)


def _reference_forward(z, params, img_shape):
    """Pure-JAX reference mirroring the kernels' bf16/f32 mixed precision."""
    bf = jnp.bfloat16

    def bn(x, g, b):
        mu = jnp.mean(x, axis=0, keepdims=True)
        var = jnp.mean(jnp.square(x - mu), axis=0, keepdims=True)
        return (x - mu) * jax.lax.rsqrt(var + BN_EPS) * g + b

    h = _leaky(jnp.dot(z.astype(bf), params["w1"].astype(bf),
                       preferred_element_type=jnp.float32) + params["b1"])
    h = jnp.dot(h.astype(bf), params["w2"].astype(bf),
                preferred_element_type=jnp.float32) + params["b2"]
    h = _leaky(bn(h, params["g2"], params["bt2"]))
    h = jnp.dot(h.astype(bf), params["w3"].astype(bf),
                preferred_element_type=jnp.float32) + params["b3"]
    h = _leaky(bn(h, params["g3"], params["bt3"]))
    h3 = h.astype(bf)
    out = jnp.tanh(jnp.dot(h3, params["w4"].astype(bf),
                           preferred_element_type=jnp.float32) + params["b4"])
    return out.reshape(z.shape[0], *img_shape)


if __name__ == "__main__":
    # Small shapes consistent with the module structure.
    batch = 8                 # >=8 rows -> full sublane occupancy, BN needs B>1
    latent_dim = 32
    img_shape = (3, 32, 32)   # prod = 3072 -> 3 lane-dense output tiles of 1024

    key = jax.random.PRNGKey(0)
    pkey, zkey = jax.random.split(key)
    params = init_params(pkey, latent_dim, img_shape)
    prepared = prepare_params(params, img_shape)   # one-time bf16 cast + pad
    z = jax.random.normal(zkey, (batch, latent_dim), jnp.float32)

    img = advanced_generator_forward(z, prepared, img_shape)
    img = jax.block_until_ready(img)
    assert img.shape == (batch, *img_shape), img.shape

    ref = jax.block_until_ready(_reference_forward(z, params, img_shape))
    max_err = float(jnp.max(jnp.abs(img - ref)))
    assert max_err < 5e-3, max_err

    print("KERNEL_OK")
</pallas_src>

<mosaic_0001>
module attributes {stable_mosaic.version = 11 : i64} {
  func.func @_trunk_kernel(%arg0: i32, %arg1: memref<8x32xbf16, #tpu.memory_space<vmem>>, %arg2: memref<32x256xbf16, #tpu.memory_space<vmem>>, %arg3: memref<1x256xf32, #tpu.memory_space<vmem>>, %arg4: memref<256x512xbf16, #tpu.memory_space<vmem>>, %arg5: memref<1x512xf32, #tpu.memory_space<vmem>>, %arg6: memref<1x512xf32, #tpu.memory_space<vmem>>, %arg7: memref<1x512xf32, #tpu.memory_space<vmem>>, %arg8: memref<512x1024xbf16, #tpu.memory_space<vmem>>, %arg9: memref<1x1024xf32, #tpu.memory_space<vmem>>, %arg10: memref<1x1024xf32, #tpu.memory_space<vmem>>, %arg11: memref<1x1024xf32, #tpu.memory_space<vmem>>, %arg12: memref<8x1024xbf16, #tpu.memory_space<vmem>>) attributes {dimension_semantics = [#tpu.dimension_semantics<arbitrary>], iteration_bounds = array<i64: 1>, scalar_prefetch = 0 : i64, scratch_operands = 0 : i64, tpu.core_type = #tpu.core_type<tc>, window_params = [{pipeline_mode = #tpu.pipeline_mode<synchronous>, transform_indices = @transform_0, window_bounds = array<i64: 8, 32>}, {pipeline_mode = #tpu.pipeline_mode<synchronous>, transform_indices = @transform_1, window_bounds = array<i64: 32, 256>}, {pipeline_mode = #tpu.pipeline_mode<synchronous>, transform_indices = @transform_2, window_bounds = array<i64: 1, 256>}, {pipeline_mode = #tpu.pipeline_mode<synchronous>, transform_indices = @transform_3, window_bounds = array<i64: 256, 512>}, {pipeline_mode = #tpu.pipeline_mode<synchronous>, transform_indices = @transform_4, window_bounds = array<i64: 1, 512>}, {pipeline_mode = #tpu.pipeline_mode<synchronous>, transform_indices = @transform_5, window_bounds = array<i64: 1, 512>}, {pipeline_mode = #tpu.pipeline_mode<synchronous>, transform_indices = @transform_6, window_bounds = array<i64: 1, 512>}, {pipeline_mode = #tpu.pipeline_mode<synchronous>, transform_indices = @transform_7, window_bounds = array<i64: 512, 1024>}, {pipeline_mode = #tpu.pipeline_mode<synchronous>, transform_indices = @transform_8, window_bounds = array<i64: 1, 1024>}, {pipeline_mode = #tpu.pipeline_mode<synchronous>, transform_indices = @transform_9, window_bounds = array<i64: 1, 1024>}, {pipeline_mode = #tpu.pipeline_mode<synchronous>, transform_indices = @transform_10, window_bounds = array<i64: 1, 1024>}, {pipeline_mode = #tpu.pipeline_mode<synchronous>, transform_indices = @transform_11, window_bounds = array<i64: 8, 1024>}]} {
    %c0 = arith.constant 0 : index
    %c0_0 = arith.constant 0 : index
    %0 = vector.load %arg1[%c0, %c0_0] : memref<8x32xbf16, #tpu.memory_space<vmem>>, vector<8x32xbf16>
    %c0_1 = arith.constant 0 : index
    %c0_2 = arith.constant 0 : index
    %1 = vector.load %arg2[%c0_1, %c0_2] : memref<32x256xbf16, #tpu.memory_space<vmem>>, vector<32x256xbf16>
    %cst = arith.constant dense<0.000000e+00> : vector<8x256xf32>
    %2 = tpu.matmul %0, %1, %cst {dimension_numbers = #tpu.dot_dimension_numbers<[1], [0], [0], [1], [0, 0, 1, 1], [], []>} : vector<8x32xbf16>, vector<32x256xbf16>, vector<8x256xf32> -> vector<8x256xf32>
    %c0_3 = arith.constant 0 : index
    %c0_4 = arith.constant 0 : index
    %3 = vector.load %arg3[%c0_3, %c0_4] : memref<1x256xf32, #tpu.memory_space<vmem>>, vector<1x256xf32>
    %4 = vector.broadcast %3 : vector<1x256xf32> to vector<8x256xf32>
    %5 = arith.addf %2, %4 : vector<8x256xf32>
    %cst_5 = arith.constant 0.000000e+00 : f32
    %6 = vector.broadcast %cst_5 : f32 to vector<8x256xf32>
    %7 = arith.cmpf oge, %5, %6 : vector<8x256xf32>
    %cst_6 = arith.constant 2.000000e-01 : f32
    %8 = vector.broadcast %cst_6 : f32 to vector<8x256xf32>
    %9 = arith.mulf %8, %5 : vector<8x256xf32>
    %10 = arith.select %7, %5, %9 : vector<8x256xi1>, vector<8x256xf32>
    %11 = arith.truncf %10 : vector<8x256xf32> to vector<8x256xbf16>
    %c0_7 = arith.constant 0 : index
    %c0_8 = arith.constant 0 : index
    %12 = vector.load %arg4[%c0_7, %c0_8] : memref<256x512xbf16, #tpu.memory_space<vmem>>, vector<256x512xbf16>
    %cst_9 = arith.constant dense<0.000000e+00> : vector<8x512xf32>
    %13 = tpu.matmul %11, %12, %cst_9 {dimension_numbers = #tpu.dot_dimension_numbers<[1], [0], [0], [1], [0, 0, 1, 1], [], []>} : vector<8x256xbf16>, vector<256x512xbf16>, vector<8x512xf32> -> vector<8x512xf32>
    %c0_10 = arith.constant 0 : index
    %c0_11 = arith.constant 0 : index
    %14 = vector.load %arg5[%c0_10, %c0_11] : memref<1x512xf32, #tpu.memory_space<vmem>>, vector<1x512xf32>
    %15 = vector.broadcast %14 : vector<1x512xf32> to vector<8x512xf32>
    %16 = arith.addf %13, %15 : vector<8x512xf32>
    %c0_12 = arith.constant 0 : index
    %c0_13 = arith.constant 0 : index
    %17 = vector.load %arg6[%c0_12, %c0_13] : memref<1x512xf32, #tpu.memory_space<vmem>>, vector<1x512xf32>
    %c0_14 = arith.constant 0 : index
    %c0_15 = arith.constant 0 : index
    %18 = vector.load %arg7[%c0_14, %c0_15] : memref<1x512xf32, #tpu.memory_space<vmem>>, vector<1x512xf32>
    %cst_16 = arith.constant dense<0.000000e+00> : vector<512xf32>
    %19 = vector.multi_reduction <add>, %16, %cst_16 [0] : vector<8x512xf32> to vector<512xf32>
    %20 = vector.shape_cast %19 : vector<512xf32> to vector<1x512xf32>
    %cst_17 = arith.constant 8.000000e+00 : f32
    %21 = vector.broadcast %cst_17 : f32 to vector<1x512xf32>
    %22 = arith.divf %20, %21 : vector<1x512xf32>
    %23 = vector.broadcast %22 : vector<1x512xf32> to vector<8x512xf32>
    %24 = arith.subf %16, %23 : vector<8x512xf32>
    %25 = arith.mulf %24, %24 : vector<8x512xf32>
    %cst_18 = arith.constant dense<0.000000e+00> : vector<512xf32>
    %26 = vector.multi_reduction <add>, %25, %cst_18 [0] : vector<8x512xf32> to vector<512xf32>
    %27 = vector.shape_cast %26 : vector<512xf32> to vector<1x512xf32>
    %cst_19 = arith.constant 8.000000e+00 : f32
    %28 = vector.broadcast %cst_19 : f32 to vector<1x512xf32>
    %29 = arith.divf %27, %28 : vector<1x512xf32>
    %30 = vector.broadcast %22 : vector<1x512xf32> to vector<8x512xf32>
    %31 = arith.subf %16, %30 : vector<8x512xf32>
    %cst_20 = arith.constant 0.899999976 : f32
    %32 = vector.broadcast %cst_20 : f32 to vector<1x512xf32>
    %33 = arith.addf %29, %32 : vector<1x512xf32>
    %34 = math.rsqrt %33 : vector<1x512xf32>
    %35 = vector.broadcast %34 : vector<1x512xf32> to vector<8x512xf32>
    %36 = arith.mulf %31, %35 : vector<8x512xf32>
    %37 = vector.broadcast %17 : vector<1x512xf32> to vector<8x512xf32>
    %38 = arith.mulf %36, %37 : vector<8x512xf32>
    %39 = vector.broadcast %18 : vector<1x512xf32> to vector<8x512xf32>
    %40 = arith.addf %38, %39 : vector<8x512xf32>
    %cst_21 = arith.constant 0.000000e+00 : f32
    %41 = vector.broadcast %cst_21 : f32 to vector<8x512xf32>
    %42 = arith.cmpf oge, %40, %41 : vector<8x512xf32>
    %cst_22 = arith.constant 2.000000e-01 : f32
    %43 = vector.broadcast %cst_22 : f32 to vector<8x512xf32>
    %44 = arith.mulf %43, %40 : vector<8x512xf32>
    %45 = arith.select %42, %40, %44 : vector<8x512xi1>, vector<8x512xf32>
    %46 = arith.truncf %45 : vector<8x512xf32> to vector<8x512xbf16>
    %c0_23 = arith.constant 0 : index
    %c0_24 = arith.constant 0 : index
    %47 = vector.load %arg8[%c0_23, %c0_24] : memref<512x1024xbf16, #tpu.memory_space<vmem>>, vector<512x1024xbf16>
    %cst_25 = arith.constant dense<0.000000e+00> : vector<8x1024xf32>
    %48 = tpu.matmul %46, %47, %cst_25 {dimension_numbers = #tpu.dot_dimension_numbers<[1], [0], [0], [1], [0, 0, 1, 1], [], []>} : vector<8x512xbf16>, vector<512x1024xbf16>, vector<8x1024xf32> -> vector<8x1024xf32>
    %c0_26 = arith.constant 0 : index
    %c0_27 = arith.constant 0 : index
    %49 = vector.load %arg9[%c0_26, %c0_27] : memref<1x1024xf32, #tpu.memory_space<vmem>>, vector<1x1024xf32>
    %50 = vector.broadcast %49 : vector<1x1024xf32> to vector<8x1024xf32>
    %51 = arith.addf %48, %50 : vector<8x1024xf32>
    %c0_28 = arith.constant 0 : index
    %c0_29 = arith.constant 0 : index
    %52 = vector.load %arg10[%c0_28, %c0_29] : memref<1x1024xf32, #tpu.memory_space<vmem>>, vector<1x1024xf32>
    %c0_30 = arith.constant 0 : index
    %c0_31 = arith.constant 0 : index
    %53 = vector.load %arg11[%c0_30, %c0_31] : memref<1x1024xf32, #tpu.memory_space<vmem>>, vector<1x1024xf32>
    %cst_32 = arith.constant dense<0.000000e+00> : vector<1024xf32>
    %54 = vector.multi_reduction <add>, %51, %cst_32 [0] : vector<8x1024xf32> to vector<1024xf32>
    %55 = vector.shape_cast %54 : vector<1024xf32> to vector<1x1024xf32>
    %cst_33 = arith.constant 8.000000e+00 : f32
    %56 = vector.broadcast %cst_33 : f32 to vector<1x1024xf32>
    %57 = arith.divf %55, %56 : vector<1x1024xf32>
    %58 = vector.broadcast %57 : vector<1x1024xf32> to vector<8x1024xf32>
    %59 = arith.subf %51, %58 : vector<8x1024xf32>
    %60 = arith.mulf %59, %59 : vector<8x1024xf32>
    %cst_34 = arith.constant dense<0.000000e+00> : vector<1024xf32>
    %61 = vector.multi_reduction <add>, %60, %cst_34 [0] : vector<8x1024xf32> to vector<1024xf32>
    %62 = vector.shape_cast %61 : vector<1024xf32> to vector<1x1024xf32>
    %cst_35 = arith.constant 8.000000e+00 : f32
    %63 = vector.broadcast %cst_35 : f32 to vector<1x1024xf32>
    %64 = arith.divf %62, %63 : vector<1x1024xf32>
    %65 = vector.broadcast %57 : vector<1x1024xf32> to vector<8x1024xf32>
    %66 = arith.subf %51, %65 : vector<8x1024xf32>
    %cst_36 = arith.constant 0.899999976 : f32
    %67 = vector.broadcast %cst_36 : f32 to vector<1x1024xf32>
    %68 = arith.addf %64, %67 : vector<1x1024xf32>
    %69 = math.rsqrt %68 : vector<1x1024xf32>
    %70 = vector.broadcast %69 : vector<1x1024xf32> to vector<8x1024xf32>
    %71 = arith.mulf %66, %70 : vector<8x1024xf32>
    %72 = vector.broadcast %52 : vector<1x1024xf32> to vector<8x1024xf32>
    %73 = arith.mulf %71, %72 : vector<8x1024xf32>
    %74 = vector.broadcast %53 : vector<1x1024xf32> to vector<8x1024xf32>
    %75 = arith.addf %73, %74 : vector<8x1024xf32>
    %cst_37 = arith.constant 0.000000e+00 : f32
    %76 = vector.broadcast %cst_37 : f32 to vector<8x1024xf32>
    %77 = arith.cmpf oge, %75, %76 : vector<8x1024xf32>
    %cst_38 = arith.constant 2.000000e-01 : f32
    %78 = vector.broadcast %cst_38 : f32 to vector<8x1024xf32>
    %79 = arith.mulf %78, %75 : vector<8x1024xf32>
    %80 = arith.select %77, %75, %79 : vector<8x1024xi1>, vector<8x1024xf32>
    %81 = arith.truncf %80 : vector<8x1024xf32> to vector<8x1024xbf16>
    %c0_39 = arith.constant 0 : index
    %c0_40 = arith.constant 0 : index
    %82 = vector.load %arg12[%c0_39, %c0_40] : memref<8x1024xbf16, #tpu.memory_space<vmem>>, vector<8x1024xbf16>
    tpu.vector_store %arg12[%c0_39, %c0_40], %81 {strides = array<i32>} : memref<8x1024xbf16, #tpu.memory_space<vmem>>, vector<8x1024xbf16>,
    return
  }
  func.func @transform_0(%arg0: i32) -> (i32, i32) {
    %c0_i32 = arith.constant 0 : i32
    %c0_i32_0 = arith.constant 0 : i32
    %c0_i32_1 = arith.constant 0 : i32
    return %c0_i32, %c0_i32_0 : i32, i32
  }
  func.func @transform_1(%arg0: i32) -> (i32, i32) {
    %c0_i32 = arith.constant 0 : i32
    %c0_i32_0 = arith.constant 0 : i32
    %c0_i32_1 = arith.constant 0 : i32
    return %c0_i32, %c0_i32_0 : i32, i32
  }
  func.func @transform_2(%arg0: i32) -> (i32, i32) {
    %c0_i32 = arith.constant 0 : i32
    %c0_i32_0 = arith.constant 0 : i32
    %c0_i32_1 = arith.constant 0 : i32
    return %c0_i32, %c0_i32_0 : i32, i32
  }
  func.func @transform_3(%arg0: i32) -> (i32, i32) {
    %c0_i32 = arith.constant 0 : i32
    %c0_i32_0 = arith.constant 0 : i32
    %c0_i32_1 = arith.constant 0 : i32
    return %c0_i32, %c0_i32_0 : i32, i32
  }
  func.func @transform_4(%arg0: i32) -> (i32, i32) {
    %c0_i32 = arith.constant 0 : i32
    %c0_i32_0 = arith.constant 0 : i32
    %c0_i32_1 = arith.constant 0 : i32
    return %c0_i32, %c0_i32_0 : i32, i32
  }
  func.func @transform_5(%arg0: i32) -> (i32, i32) {
    %c0_i32 = arith.constant 0 : i32
    %c0_i32_0 = arith.constant 0 : i32
    %c0_i32_1 = arith.constant 0 : i32
    return %c0_i32, %c0_i32_0 : i32, i32
  }
  func.func @transform_6(%arg0: i32) -> (i32, i32) {
    %c0_i32 = arith.constant 0 : i32
    %c0_i32_0 = arith.constant 0 : i32
    %c0_i32_1 = arith.constant 0 : i32
    return %c0_i32, %c0_i32_0 : i32, i32
  }
  func.func @transform_7(%arg0: i32) -> (i32, i32) {
    %c0_i32 = arith.constant 0 : i32
    %c0_i32_0 = arith.constant 0 : i32
    %c0_i32_1 = arith.constant 0 : i32
    return %c0_i32, %c0_i32_0 : i32, i32
  }
  func.func @transform_8(%arg0: i32) -> (i32, i32) {
    %c0_i32 = arith.constant 0 : i32
    %c0_i32_0 = arith.constant 0 : i32
    %c0_i32_1 = arith.constant 0 : i32
    return %c0_i32, %c0_i32_0 : i32, i32
  }
  func.func @transform_9(%arg0: i32) -> (i32, i32) {
    %c0_i32 = arith.constant 0 : i32
    %c0_i32_0 = arith.constant 0 : i32
    %c0_i32_1 = arith.constant 0 : i32
    return %c0_i32, %c0_i32_0 : i32, i32
  }
  func.func @transform_10(%arg0: i32) -> (i32, i32) {
    %c0_i32 = arith.constant 0 : i32
    %c0_i32_0 = arith.constant 0 : i32
    %c0_i32_1 = arith.constant 0 : i32
    return %c0_i32, %c0_i32_0 : i32, i32
  }
  func.func @transform_11(%arg0: i32) -> (i32, i32) {
    %c0_i32 = arith.constant 0 : i32
    %c0_i32_0 = arith.constant 0 : i32
    %c0_i32_1 = arith.constant 0 : i32
    return %c0_i32, %c0_i32_0 : i32, i32
  }
}

module attributes {stable_mosaic.version = 11 : i64} {
  func.func @_head_kernel(%arg0: i32, %arg1: memref<8x1024xbf16, #tpu.memory_space<vmem>>, %arg2: memref<1024x1024xbf16, #tpu.memory_space<vmem>>, %arg3: memref<1x1024xf32, #tpu.memory_space<vmem>>, %arg4: memref<8x1024xf32, #tpu.memory_space<vmem>>) attributes {dimension_semantics = [#tpu.dimension_semantics<parallel>], iteration_bounds = array<i64: 3>, scalar_prefetch = 0 : i64, scratch_operands = 0 : i64, tpu.core_type = #tpu.core_type<tc>, window_params = [{pipeline_mode = #tpu.pipeline_mode<synchronous>, transform_indices = @transform_0, window_bounds = array<i64: 8, 1024>}, {transform_indices = @transform_1, window_bounds = array<i64: 1024, 1024>}, {transform_indices = @transform_2, window_bounds = array<i64: 1, 1024>}, {transform_indices = @transform_3, window_bounds = array<i64: 8, 1024>}]} {
    %c0 = arith.constant 0 : index
    %c0_0 = arith.constant 0 : index
    %0 = vector.load %arg1[%c0, %c0_0] : memref<8x1024xbf16, #tpu.memory_space<vmem>>, vector<8x1024xbf16>
    %c0_1 = arith.constant 0 : index
    %c0_2 = arith.constant 0 : index
    %1 = vector.load %arg2[%c0_1, %c0_2] : memref<1024x1024xbf16, #tpu.memory_space<vmem>>, vector<1024x1024xbf16>
    %cst = arith.constant dense<0.000000e+00> : vector<8x1024xf32>
    %2 = tpu.matmul %0, %1, %cst {dimension_numbers = #tpu.dot_dimension_numbers<[1], [0], [0], [1], [0, 0, 1, 1], [], []>} : vector<8x1024xbf16>, vector<1024x1024xbf16>, vector<8x1024xf32> -> vector<8x1024xf32>
    %c0_3 = arith.constant 0 : index
    %c0_4 = arith.constant 0 : index
    %3 = vector.load %arg3[%c0_3, %c0_4] : memref<1x1024xf32, #tpu.memory_space<vmem>>, vector<1x1024xf32>
    %4 = vector.broadcast %3 : vector<1x1024xf32> to vector<8x1024xf32>
    %5 = arith.addf %2, %4 : vector<8x1024xf32>
    %6 = math.tanh %5 : vector<8x1024xf32>
    %c0_5 = arith.constant 0 : index
    %c0_6 = arith.constant 0 : index
    %7 = vector.load %arg4[%c0_5, %c0_6] : memref<8x1024xf32, #tpu.memory_space<vmem>>, vector<8x1024xf32>
    tpu.vector_store %arg4[%c0_5, %c0_6], %6 {strides = array<i32>} : memref<8x1024xf32, #tpu.memory_space<vmem>>, vector<8x1024xf32>,
    return
  }
  func.func @transform_0(%arg0: i32) -> (i32, i32) {
    %c0_i32 = arith.constant 0 : i32
    %c0_i32_0 = arith.constant 0 : i32
    %c0_i32_1 = arith.constant 0 : i32
    return %c0_i32, %c0_i32_0 : i32, i32
  }
  func.func @transform_1(%arg0: i32) -> (i32, i32) {
    %c0_i32 = arith.constant 0 : i32
    %c0_i32_0 = arith.constant 0 : i32
    return %c0_i32, %arg0 : i32, i32
  }
  func.func @transform_2(%arg0: i32) -> (i32, i32) {
    %c0_i32 = arith.constant 0 : i32
    %c0_i32_0 = arith.constant 0 : i32
    return %c0_i32, %arg0 : i32, i32
  }
  func.func @transform_3(%arg0: i32) -> (i32, i32) {
    %c0_i32 = arith.constant 0 : i32
    %c0_i32_0 = arith.constant 0 : i32
    return %c0_i32, %arg0 : i32, i32
  }
}

</mosaic_0001>

<bundles_post_ra>
// kernel: advanced_generator_forward.2
= control target key start
LH: loop header
LB: loop body
LE: loop exit
PB: predicated region body
PF: predicated region fallthrough
CT: control target
= control target key end

     0   :  { %16 = vsyncpa [#allocation3], 0  ;;  %s4208_s0 = inlined_call_operand.vmem [shape: bf16[8,32], index: 0, kind: input, shape index: {}]   ;;  %s4209_s1 = inlined_call_operand.hbm [shape: bf16[32,256], index: 1, kind: input, shape index: {}]   ;;  %s4210_s2 = inlined_call_operand.hbm [shape: f32[1,256], index: 2, kind: input, shape index: {}]   ;;  %s4211_s3 = inlined_call_operand.hbm [shape: bf16[256,512], index: 3, kind: input, shape index: {}]   ;;  %s4212_s4 = inlined_call_operand.hbm [shape: f32[1,512], index: 4, kind: input, shape index: {}]   ;;  %s4213_s5 = inlined_call_operand.hbm [shape: f32[1,512], index: 5, kind: input, shape index: {}]   ;;  %s4214_s6 = inlined_call_operand.hbm [shape: f32[1,512], index: 6, kind: input, shape index: {}]   ;;  %s4215_s7 = inlined_call_operand.hbm [shape: bf16[512,1024], index: 7, kind: input, shape index: {}]   ;;  %s4216_s8 = inlined_call_operand.hbm [shape: f32[1,1024], index: 8, kind: input, shape index: {}]   ;;  %s4217_s9 = inlined_call_operand.hbm [shape: f32[1,1024], index: 9, kind: input, shape index: {}]   ;;  %s4218_s10 = inlined_call_operand.hbm [shape: f32[1,1024], index: 10, kind: input, shape index: {}]   ;;  %s4219_s11 = inlined_call_operand.vmem [shape: bf16[8,1024], index: 11, kind: output, shape index: {}]  }
   0x1   :  { %17 = vsyncpa [#allocation5], 0 }
   0x2   :  { %18 = vsyncpa [#allocation8], 0 }
   0x3   :  { %19 = vsyncpa [#allocation11], 0 }
   0x4   :  { %20 = vsyncpa [#allocation14], 0 }
   0x5   :  { %21 = vsyncpa [#allocation17], 0  ;;  %s3844_s17 = smov [#allocation4]   ;;  %s3845_s19 = smov [#allocation7]  }
   0x6   :  { %s42_s18 = sshll.u32 %s3844_s17, 4  ;;  %s64_s20 = sshll.u32 %s3845_s19, 4  ;;  %s43_s18 = int_to_ptr.vmem [resolvable:$true] %s42_s18  ;;  %s65_s20 = int_to_ptr.vmem [resolvable:$true] %s64_s20 }
   0x7   :  { %s3612_s23 = scalar_lea.hbm %s4210_s2, 32 }
   0x8   :  { %p3613_p0 = scmp.ne.s32.totalorder %s4210_s2, %s3612_s23  ;;  %p3616_p1 = scmp.lt.u32.totalorder %s3612_s23, %s4210_s2 }
   0xa   :  { %p3618_p2 = pnand %p3616_p1, %p3613_p0 }
   0xc   :  { %3621 = shalt.err (!%p3618_p2)
}
   0xd   :  { %s3622_s28 = scalar_lea.vmem %s43_s18, 32  ;;  %p3627_p4 = scmp.lt.s32.totalorder %s43_s18, %s43_s18 }
   0xe   :  { %p3623_p3 = scmp.ne.s32.totalorder %s43_s18, %s3622_s28  ;;  %p3628_p5 = scmp.lt.s32.totalorder %s3622_s28, %s3622_s28 }
  0x10   :  { %p3629_p6 = por %p3628_p5, %p3627_p4 }
  0x12   :  { %p3630_p7 = pnand %p3629_p6, %p3623_p3 }
  0x14   :  { %3633 = shalt.err (!%p3630_p7)
}
  0x15   :  { %45 = dma.hbm_to_vmem [thread:$0]  %s4210_s2, 32, %s43_s18, [#allocation5]  }
  0x16   :  { %s3634_s14 = scalar_lea.hbm %s4212_s4, 64 }
  0x17   :  { %p3635_p8 = scmp.ne.s32.totalorder %s4212_s4, %s3634_s14  ;;  %p3638_p9 = scmp.lt.u32.totalorder %s3634_s14, %s4212_s4 }
  0x19   :  { %p3640_p10 = pnand %p3638_p9, %p3635_p8 }
  0x1b   :  { %3643 = shalt.err (!%p3640_p10)
}
  0x1c   :  { %s3644_s21 = scalar_lea.vmem %s65_s20, 64  ;;  %p3649_p12 = scmp.lt.s32.totalorder %s65_s20, %s65_s20 }
  0x1d   :  { %p3645_p11 = scmp.ne.s32.totalorder %s65_s20, %s3644_s21  ;;  %p3650_p13 = scmp.lt.s32.totalorder %s3644_s21, %s3644_s21 }
  0x1f   :  { %p3651_p0 = por %p3650_p13, %p3649_p12 }
  0x21   :  { %p3652_p1 = pnand %p3651_p0, %p3645_p11 }
  0x23   :  { %3655 = shalt.err (!%p3652_p1)
}
  0x24   :  { %67 = dma.hbm_to_vmem [thread:$0]  %s4212_s4, 64, %s65_s20, [#allocation8]  }
  0x25   :  { %s3846_s22 = smov [#allocation10]   ;;  %s3847_s24 = smov [#allocation13]  }
  0x26   :  { %s84_s23 = sshll.u32 %s3846_s22, 4  ;;  %s106_s25 = sshll.u32 %s3847_s24, 4  ;;  %s85_s23 = int_to_ptr.vmem [resolvable:$true] %s84_s23  ;;  %s107_s25 = int_to_ptr.vmem [resolvable:$true] %s106_s25 }
  0x27   :  { %s3656_s28 = scalar_lea.hbm %s4214_s6, 64 }
  0x28   :  { %p3657_p2 = scmp.ne.s32.totalorder %s4214_s6, %s3656_s28  ;;  %p3660_p3 = scmp.lt.u32.totalorder %s3656_s28, %s4214_s6 }
  0x2a   :  { %p3662_p4 = pnand %p3660_p3, %p3657_p2 }
  0x2c   :  { %3665 = shalt.err (!%p3662_p4)
}
  0x2d   :  { %s3666_s4 = scalar_lea.vmem %s85_s23, 64  ;;  %p3671_p6 = scmp.lt.s32.totalorder %s85_s23, %s85_s23 }
  0x2e   :  { %p3667_p5 = scmp.ne.s32.totalorder %s85_s23, %s3666_s4  ;;  %p3672_p7 = scmp.lt.s32.totalorder %s3666_s4, %s3666_s4 }
  0x30   :  { %p3673_p8 = por %p3672_p7, %p3671_p6 }
  0x32   :  { %p3674_p9 = pnand %p3673_p8, %p3667_p5 }
  0x34   :  { %3677 = shalt.err (!%p3674_p9)
}
  0x35   :  { %87 = dma.hbm_to_vmem [thread:$0]  %s4214_s6, 64, %s85_s23, [#allocation11]  }
  0x36   :  { %s3678_s17 = scalar_lea.hbm %s4216_s8, 128 }
  0x37   :  { %p3679_p10 = scmp.ne.s32.totalorder %s4216_s8, %s3678_s17  ;;  %p3682_p11 = scmp.lt.u32.totalorder %s3678_s17, %s4216_s8 }
  0x39   :  { %p3684_p12 = pnand %p3682_p11, %p3679_p10 }
  0x3b   :  { %3687 = shalt.err (!%p3684_p12)
}
  0x3c   :  { %s3688_s22 = scalar_lea.vmem %s107_s25, 128  ;;  %p3693_p0 = scmp.lt.s32.totalorder %s107_s25, %s107_s25 }
  0x3d   :  { %p3689_p13 = scmp.ne.s32.totalorder %s107_s25, %s3688_s22  ;;  %p3694_p1 = scmp.lt.s32.totalorder %s3688_s22, %s3688_s22 }
  0x3f   :  { %p3695_p2 = por %p3694_p1, %p3693_p0 }
  0x41   :  { %p3696_p3 = pnand %p3695_p2, %p3689_p13 }
  0x43   :  { %3699 = shalt.err (!%p3696_p3)
}
  0x44   :  { %109 = dma.hbm_to_vmem [thread:$0]  %s4216_s8, 128, %s107_s25, [#allocation14]  }
  0x45   :  { %s3848_s24 = smov [#allocation2]   ;;  %s3700_s29 = scalar_lea.hbm %s4209_s1, 512 }
  0x46   :  { %s29_s26 = sshll.u32 %s3848_s24, 4  ;;  %p3701_p4 = scmp.ne.s32.totalorder %s4209_s1, %s3700_s29  ;;  %s30_s26 = int_to_ptr.vmem [resolvable:$true] %s29_s26 }
  0x47   :  { %p3704_p5 = scmp.lt.u32.totalorder %s3700_s29, %s4209_s1 }
  0x49   :  { %p3706_p6 = pnand %p3704_p5, %p3701_p4 }
  0x4b   :  { %3709 = shalt.err (!%p3706_p6)
}
  0x4c   :  { %s3710_s20 = scalar_lea.vmem %s30_s26, 512  ;;  %p3715_p8 = scmp.lt.s32.totalorder %s30_s26, %s30_s26 }
  0x4d   :  { %p3711_p7 = scmp.ne.s32.totalorder %s30_s26, %s3710_s20  ;;  %p3716_p9 = scmp.lt.s32.totalorder %s3710_s20, %s3710_s20 }
  0x4f   :  { %p3717_p10 = por %p3716_p9, %p3715_p8 }
  0x51   :  { %p3718_p11 = pnand %p3717_p10, %p3711_p7 }
  0x53   :  { %3721 = shalt.err (!%p3718_p11)
}
  0x54   :  { %s3849_s8 = smov 128   ;;  %s3850_s25 = smov 8  }
  0x55   :  { %35 = dma.hbm_to_vmem [thread:$0]  %s4209_s1, 512, %s30_s26, [#allocation3], %s3849_s8, %s3849_s8, %s3850_s25  }
  0x56   :  { %s3851_s16 = smov [#allocation6]   ;;  %s3722_s2 = scalar_lea.hbm %s4211_s3, 8192 }
  0x57   :  { %s51_s17 = sshll.u32 %s3851_s16, 4  ;;  %p3723_p12 = scmp.ne.s32.totalorder %s4211_s3, %s3722_s2  ;;  %s52_s17 = int_to_ptr.vmem [resolvable:$true] %s51_s17 }
  0x58   :  { %p3726_p13 = scmp.lt.u32.totalorder %s3722_s2, %s4211_s3 }
  0x5a   :  { %p3728_p0 = pnand %p3726_p13, %p3723_p12 }
  0x5c   :  { %3731 = shalt.err (!%p3728_p0)
}
  0x5d   :  { %s3732_s24 = scalar_lea.vmem %s52_s17, 8192  ;;  %p3737_p2 = scmp.lt.s32.totalorder %s52_s17, %s52_s17 }
  0x5e   :  { %p3733_p1 = scmp.ne.s32.totalorder %s52_s17, %s3732_s24  ;;  %p3738_p3 = scmp.lt.s32.totalorder %s3732_s24, %s3732_s24 }
  0x60   :  { %p3739_p4 = por %p3738_p3, %p3737_p2 }
  0x62   :  { %p3740_p5 = pnand %p3739_p4, %p3733_p1 }
  0x64   :  { %3743 = shalt.err (!%p3740_p5)
}
  0x65   :  { %s3852_s1 = smov 256   ;;  %s3853_s26 = smov 16  }
  0x66   :  { %57 = dma.hbm_to_vmem [thread:$0]  %s4211_s3, 8192, %s52_s17, [#allocation5], %s3852_s1, %s3852_s1, %s3853_s26  }
  0x67   :  { %s3854_s29 = smov [#allocation9]   ;;  %s3855_s12 = smov [#allocation12]  }
  0x68   :  { %s74_s30 = sshll.u32 %s3854_s29, 4  ;;  %s93_s13 = sshll.u32 %s3855_s12, 4  ;;  %s75_s30 = int_to_ptr.vmem [resolvable:$true] %s74_s30  ;;  %s3993_s13 = int_to_ptr.vmem [resolvable:$true] %s93_s13 }
  0x69   :  { %s3744_s8 = scalar_lea.hbm %s4213_s5, 64 }
  0x6a   :  { %p3745_p6 = scmp.ne.s32.totalorder %s4213_s5, %s3744_s8  ;;  %p3748_p7 = scmp.lt.u32.totalorder %s3744_s8, %s4213_s5 }
  0x6c   :  { %p3750_p8 = pnand %p3748_p7, %p3745_p6 }
  0x6e   :  { %3753 = shalt.err (!%p3750_p8)
}
  0x6f   :  { %s3754_s3 = scalar_lea.vmem %s75_s30, 64  ;;  %p3759_p10 = scmp.lt.s32.totalorder %s75_s30, %s75_s30 }
  0x70   :  { %p3755_p9 = scmp.ne.s32.totalorder %s75_s30, %s3754_s3  ;;  %p3760_p11 = scmp.lt.s32.totalorder %s3754_s3, %s3754_s3 }
  0x72   :  { %p3761_p12 = por %p3760_p11, %p3759_p10 }
  0x74   :  { %p3762_p13 = pnand %p3761_p12, %p3755_p9 }
  0x76   :  { %3765 = shalt.err (!%p3762_p13)
}
  0x77   :  { %77 = dma.hbm_to_vmem [thread:$0]  %s4213_s5, 64, %s75_s30, [#allocation8]  }
  0x78   :  { %s3766_s18 = scalar_lea.hbm %s4215_s7, 32768 }
  0x79   :  { %p3767_p0 = scmp.ne.s32.totalorder %s4215_s7, %s3766_s18  ;;  %p3770_p1 = scmp.lt.u32.totalorder %s3766_s18, %s4215_s7 }
  0x7b   :  { %p3772_p2 = pnand %p3770_p1, %p3767_p0 }
  0x7d   :  { %3775 = shalt.err (!%p3772_p2)
}
  0x7e   :  { %s3776_s1 = scalar_lea.vmem %s3993_s13, 32768  ;;  %p3781_p4 = scmp.lt.s32.totalorder %s3993_s13, %s3993_s13 }
  0x7f   :  { %p3777_p3 = scmp.ne.s32.totalorder %s3993_s13, %s3776_s1  ;;  %p3782_p5 = scmp.lt.s32.totalorder %s3776_s1, %s3776_s1 }
  0x81   :  { %p3783_p6 = por %p3782_p5, %p3781_p4 }
  0x83   :  { %p3784_p7 = pnand %p3783_p6, %p3777_p3 }
  0x85   :  { %3787 = shalt.err (!%p3784_p7)
}
  0x86   :  { %s3856_s5 = smov 512   ;;  %s3857_s26 = smov 32  }
  0x87   :  { %99 = dma.hbm_to_vmem [thread:$0]  %s4215_s7, 32768, %s3993_s13, [#allocation11], %s3856_s5, %s3856_s5, %s3857_s26  }
  0x88   :  { %s3858_s29 = smov [#allocation15]   ;;  %s3859_s12 = smov [#allocation16]  }
  0x89   :  { %s116_s30 = sshll.u32 %s3858_s29, 4  ;;  %s126_s4 = sshll.u32 %s3859_s12, 4  ;;  %s117_s30 = int_to_ptr.vmem [resolvable:$true] %s116_s30  ;;  %s127_s4 = int_to_ptr.vmem [resolvable:$true] %s126_s4 }
  0x8a   :  { %s3788_s25 = scalar_lea.hbm %s4217_s9, 128 }
  0x8b   :  { %p3789_p8 = scmp.ne.s32.totalorder %s4217_s9, %s3788_s25  ;;  %p3792_p9 = scmp.lt.u32.totalorder %s3788_s25, %s4217_s9 }
  0x8d   :  { %p3794_p10 = pnand %p3792_p9, %p3789_p8 }
  0x8f   :  { %3797 = shalt.err (!%p3794_p10)
}
  0x90   :  { %s3798_s7 = scalar_lea.vmem %s117_s30, 128  ;;  %p3803_p12 = scmp.lt.s32.totalorder %s117_s30, %s117_s30 }
  0x91   :  { %p3799_p11 = scmp.ne.s32.totalorder %s117_s30, %s3798_s7  ;;  %p3804_p13 = scmp.lt.s32.totalorder %s3798_s7, %s3798_s7 }
  0x93   :  { %p3805_p0 = por %p3804_p13, %p3803_p12 }
  0x95   :  { %p3806_p1 = pnand %p3805_p0, %p3799_p11 }
  0x97   :  { %3809 = shalt.err (!%p3806_p1)
}
  0x98   :  { %119 = dma.hbm_to_vmem [thread:$0]  %s4217_s9, 128, %s117_s30, [#allocation14]  }
  0x99   :  { %s3810_s2 = scalar_lea.hbm %s4218_s10, 128 }
  0x9a   :  { %p3811_p2 = scmp.ne.s32.totalorder %s4218_s10, %s3810_s2  ;;  %p3814_p3 = scmp.lt.u32.totalorder %s3810_s2, %s4218_s10 }
  0x9c   :  { %p3816_p4 = pnand %p3814_p3, %p3811_p2 }
  0x9e   :  { %3819 = shalt.err (!%p3816_p4)
}
  0x9f   :  { %s3820_s24 = scalar_lea.vmem %s127_s4, 128  ;;  %p3825_p6 = scmp.lt.s32.totalorder %s127_s4, %s127_s4 }
  0xa0   :  { %p3821_p5 = scmp.ne.s32.totalorder %s127_s4, %s3820_s24  ;;  %p3826_p7 = scmp.lt.s32.totalorder %s3820_s24, %s3820_s24 }
  0xa2   :  { %p3827_p8 = por %p3826_p7, %p3825_p6 }
  0xa4   :  { %p3828_p9 = pnand %p3827_p8, %p3821_p5 }
  0xa6   :  { %3831 = shalt.err (!%p3828_p9)
}
  0xa7   :  { %129 = dma.hbm_to_vmem [thread:$0]  %s4218_s10, 128, %s127_s4, [#allocation17]  }
  0xa8   :  { %3832 = dma.done.wait [#allocation3], 512  }
  0xa9   :  { %3833 = vsyncadd [#allocation3], 4294966784 }
  0xaa   :  { %3834 = dma.done.wait [#allocation5], 8224  }
  0xab   :  { %3835 = vsyncadd [#allocation5], 4294959072 }
  0xac   :  { %3836 = dma.done.wait [#allocation8], 128  }
  0xad   :  { %3837 = vsyncadd [#allocation8], 4294967168 }
  0xae   :  { %3838 = dma.done.wait [#allocation11], 32832  }
  0xaf   :  { %3839 = vsyncadd [#allocation11], 4294934464 }
  0xb0   :  { %3840 = dma.done.wait [#allocation14], 256  }
  0xb1   :  { %3841 = vsyncadd [#allocation14], 4294967040 }
  0xb2   :  { %3842 = dma.done.wait [#allocation17], 128  }
  0xb3   :  { %3843 = vsyncadd [#allocation17], 4294967168  ;;  %v3860_v0 = vmov 0   ;;  %v3486_v1 = vld [vmem:[#allocation2 + $0x4] ss:$8 sps:$4 sm:$0xff]   ;;  %vm198_vm0 = vcmask 261120  }
  0xb4   :  { %234 = vmatprep.mubr.bf16.mxu0 %v3860_v0  ;;  %v3488_v2 = vld [vmem:[#allocation2] ss:$8 sps:$4 sm:$0xff]   ;;  %202 = vmatprep.subr.bf16.mxu0 %v3486_v1  ;;  %v3489_v3 = vld [vmem:[#allocation2 + $0x14] ss:$8 sps:$4 sm:$0xff]   ;;  %v3491_v4 = vld [vmem:[#allocation2 + $0x10] ss:$8 sps:$4 sm:$0xff]  }
  0xb5   :  { %203 = vmatpush1.bf16.msra.mxu0 %v3488_v2  ;;  %v3492_v5 = vld [vmem:[#allocation6 + $0x4] ss:$16 sps:$4 sm:$0xff]   ;;  %v161_v6 = vld [vmem:[%s4208_s0] sm:$0xf]  ;;  %v3494_v10 = vld [vmem:[#allocation6 + $0x8] ss:$16 sps:$4 sm:$0xff]  }
  0xb6   :  { %204 = vmatprep.subr.bf16.mxu0 %v3489_v3  ;;  %657 = vmatprep.subr.bf16.mxu1 %v3492_v5  ;;  %v3496_v7 = vld [vmem:[#allocation6 + $0xc] ss:$16 sps:$4 sm:$0xff]   ;;  %v3497_v8 = vld [vmem:[#allocation6] ss:$16 sps:$4 sm:$0xff]   ;;  %v3498_v9 = vld [vmem:[#allocation6 + $0x24] ss:$16 sps:$4 sm:$0xff]  }
  0xb7   :  { %658 = vmatpush1.bf16.msra.mxu1 %v3497_v8  ;;  %v3502_v11 = vld [vmem:[#allocation6 + $0x2c] ss:$16 sps:$4 sm:$0xff]   ;;  %v3503_v12 = vld [vmem:[#allocation6 + $0x20] ss:$16 sps:$4 sm:$0xff]   ;;  %v3504_v13 = vld [vmem:[#allocation6 + $0x44] ss:$16 sps:$4 sm:$0xff]  }
  0xb8   :  { %659 = vmatprep.subr.bf16.mxu1 %v3498_v9  ;;  %v3500_v14 = vld [vmem:[#allocation6 + $0x28] ss:$16 sps:$4 sm:$0xff]   ;;  %v3508_v15 = vld [vmem:[#allocation6 + $0x4c] ss:$16 sps:$4 sm:$0xff]   ;;  %v3509_v16 = vld [vmem:[#allocation6 + $0x40] ss:$16 sps:$4 sm:$0xff]  }
  0xb9   :  { %205 = vmatpush1.bf16.msra.mxu0 %v3491_v4  ;;  %v3510_v17 = vld [vmem:[#allocation6 + $0x64] ss:$16 sps:$4 sm:$0xff]   ;;  %v3506_v18 = vld [vmem:[#allocation6 + $0x48] ss:$16 sps:$4 sm:$0xff]   ;;  %v3514_v19 = vld [vmem:[#allocation6 + $0x6c] ss:$16 sps:$4 sm:$0xff]  }
  0xba   :  { %698 = vmatprep.subr.bf16.mxu0 %v3496_v7  ;;  %v3515_v20 = vld [vmem:[#allocation6 + $0x60] ss:$16 sps:$4 sm:$0xff]   ;;  %v3516_v21 = vld [vmem:[#allocation6 + $0x84] ss:$16 sps:$4 sm:$0xff]   ;;  %v3512_v22 = vld [vmem:[#allocation6 + $0x68] ss:$16 sps:$4 sm:$0xff]  }
  0xbb   :  { %660 = vmatpush1.bf16.msra.mxu1 %v3503_v12  ;;  %v3520_v23 = vld [vmem:[#allocation6 + $0x8c] ss:$16 sps:$4 sm:$0xff]   ;;  %v3521_v24 = vld [vmem:[#allocation6 + $0x80] ss:$16 sps:$4 sm:$0xff]   ;;  %v3522_v25 = vld [vmem:[#allocation6 + $0xa4] ss:$16 sps:$4 sm:$0xff]  }
  0xbc   :  { %3116 = vmatmul.mubr.msk.bf16.vlgmr.msra.gmra.mrb[0].mxu0 %vm198_vm0, %v161_v6  ;;  %661 = vmatprep.subr.bf16.mxu1 %v3504_v13  ;;  %v3518_v26 = vld [vmem:[#allocation6 + $0x88] ss:$16 sps:$4 sm:$0xff]   ;;  %v3526_v27 = vld [vmem:[#allocation6 + $0xac] ss:$16 sps:$4 sm:$0xff]   ;;  %v3527_v28 = vld [vmem:[#allocation6 + $0xa0] ss:$16 sps:$4 sm:$0xff]  }
  0xbd   :  { %699 = vmatpush1.bf16.msra.mxu0 %v3494_v10  ;;  %v3528_v29 = vld [vmem:[#allocation6 + $0xc4] ss:$16 sps:$4 sm:$0xff]   ;;  %v3524_v30 = vld [vmem:[#allocation6 + $0xa8] ss:$16 sps:$4 sm:$0xff]   ;;  %v3532_v31 = vld [vmem:[#allocation6 + $0xcc] ss:$16 sps:$4 sm:$0xff]  }
  0xbe   :  { %700 = vmatprep.subr.bf16.mxu0 %v3502_v11  ;;  %v3533_v32 = vld [vmem:[#allocation6 + $0xc0] ss:$16 sps:$4 sm:$0xff]   ;;  %v3534_v33 = vld [vmem:[#allocation6 + $0xe4] ss:$16 sps:$4 sm:$0xff]   ;;  %v3530_v34 = vld [vmem:[#allocation6 + $0xc8] ss:$16 sps:$4 sm:$0xff]  }
  0xbf   :  { %662 = vmatpush1.bf16.msra.mxu1 %v3509_v16  ;;  %v3538_v35 = vld [vmem:[#allocation6 + $0xec] ss:$16 sps:$4 sm:$0xff]   ;;  %v3539_v36 = vld [vmem:[#allocation6 + $0xe0] ss:$16 sps:$4 sm:$0xff]   ;;  %v3540_v37 = vld [vmem:[#allocation6 + $0x104] ss:$16 sps:$4 sm:$0xff]  }
  0xc0   :  { %663 = vmatprep.subr.bf16.mxu1 %v3510_v17  ;;  %v3536_v38 = vld [vmem:[#allocation6 + $0xe8] ss:$16 sps:$4 sm:$0xff]   ;;  %v3544_v39 = vld [vmem:[#allocation6 + $0x10c] ss:$16 sps:$4 sm:$0xff]   ;;  %v3545_v40 = vld [vmem:[#allocation6 + $0x100] ss:$16 sps:$4 sm:$0xff]  }
  0xc1   :  { %701 = vmatpush1.bf16.msra.mxu0 %v3500_v14  ;;  %v3546_v41 = vld [vmem:[#allocation6 + $0x124] ss:$16 sps:$4 sm:$0xff]   ;;  %v3542_v42 = vld [vmem:[#allocation6 + $0x108] ss:$16 sps:$4 sm:$0xff]   ;;  %v3551_v43 = vld [vmem:[#allocation6 + $0x120] ss:$16 sps:$4 sm:$0xff]   ;;  %v168_v14 = vlaneseq }
  0xc2   :  { %702 = vmatprep.subr.bf16.mxu0 %v3508_v15  ;;  %v3550_v44 = vld [vmem:[#allocation6 + $0x12c] ss:$16 sps:$4 sm:$0xff]   ;;  %v3552_v45 = vld [vmem:[#allocation6 + $0x144] ss:$16 sps:$4 sm:$0xff]   ;;  %v3548_v46 = vld [vmem:[#allocation6 + $0x128] ss:$16 sps:$4 sm:$0xff]  }
  0xc3   :  { %664 = vmatpush1.bf16.msra.mxu1 %v3515_v20  ;;  %v3557_v47 = vld [vmem:[#allocation6 + $0x140] ss:$16 sps:$4 sm:$0xff]   ;;  %v3556_v48 = vld [vmem:[#allocation6 + $0x14c] ss:$16 sps:$4 sm:$0xff]   ;;  %v3558_v49 = vld [vmem:[#allocation6 + $0x164] ss:$16 sps:$4 sm:$0xff]  }
  0xc4   :  { %665 = vmatprep.subr.bf16.mxu1 %v3516_v21  ;;  %v3554_v50 = vld [vmem:[#allocation6 + $0x148] ss:$16 sps:$4 sm:$0xff]   ;;  %v3563_v51 = vld [vmem:[#allocation6 + $0x160] ss:$16 sps:$4 sm:$0xff]   ;;  %v3562_v52 = vld [vmem:[#allocation6 + $0x16c] ss:$16 sps:$4 sm:$0xff]  }
  0xc5   :  { %703 = vmatpush1.bf16.msra.mxu0 %v3506_v18  ;;  %v3564_v53 = vld [vmem:[#allocation6 + $0x184] ss:$16 sps:$4 sm:$0xff]   ;;  %v3560_v54 = vld [vmem:[#allocation6 + $0x168] ss:$16 sps:$4 sm:$0xff]   ;;  %v3569_v55 = vld [vmem:[#allocation6 + $0x180] ss:$16 sps:$4 sm:$0xff]  }
  0xc6   :  { %704 = vmatprep.subr.bf16.mxu0 %v3514_v19  ;;  %v3568_v56 = vld [vmem:[#allocation6 + $0x18c] ss:$16 sps:$4 sm:$0xff]   ;;  %v3570_v57 = vld [vmem:[#allocation6 + $0x1a4] ss:$16 sps:$4 sm:$0xff]   ;;  %v3566_v58 = vld [vmem:[#allocation6 + $0x188] ss:$16 sps:$4 sm:$0xff]  }
  0xc7   :  { %666 = vmatpush1.bf16.msra.mxu1 %v3521_v24  ;;  %v3575_v59 = vld [vmem:[#allocation6 + $0x1a0] ss:$16 sps:$4 sm:$0xff]   ;;  %v3574_v60 = vld [vmem:[#allocation6 + $0x1ac] ss:$16 sps:$4 sm:$0xff]   ;;  %v3572_v61 = vld [vmem:[#allocation6 + $0x1a8] ss:$16 sps:$4 sm:$0xff]  }
  0xc8   :  { %667 = vmatprep.subr.bf16.mxu1 %v3522_v25  ;;  %v3576_v62 = vld [vmem:[#allocation6 + $0x1c4] ss:$16 sps:$4 sm:$0xff]   ;;  %v3580_v63 = vld [vmem:[#allocation6 + $0x1cc] ss:$16 sps:$4 sm:$0xff]   ;;  %v3578_v0 = vld [vmem:[#allocation6 + $0x1c8] ss:$16 sps:$4 sm:$0xff]  }
  0xc9   :  { %705 = vmatpush1.bf16.msra.mxu0 %v3512_v22  ;;  %v3581_v1 = vld [vmem:[#allocation6 + $0x1c0] ss:$16 sps:$4 sm:$0xff]   ;;  %v3582_v2 = vld [vmem:[#allocation6 + $0x1e4] ss:$16 sps:$4 sm:$0xff]   ;;  %v3584_v3 = vld [vmem:[#allocation6 + $0x1e8] ss:$16 sps:$4 sm:$0xff]  }
  0xca   :  { %706 = vmatprep.subr.bf16.mxu0 %v3520_v23  ;;  %v3586_v4 = vld [vmem:[#allocation6 + $0x1ec] ss:$16 sps:$4 sm:$0xff]   ;;  %v3587_v5 = vld [vmem:[#allocation6 + $0x1e0] ss:$16 sps:$4 sm:$0xff]   ;;  %v885_v8 = vld [vmem:[#allocation12 + $0x8] sm:$0xff]  ;;  %v4051_v15 = vshrl.u32 %v168_v14, 7 }
  0xcb   :  { %668 = vmatpush1.bf16.msra.mxu1 %v3527_v28  ;;  %v884_v6 = vld [vmem:[#allocation12] sm:$0xff]  ;;  %v889_v11 = vld [vmem:[#allocation12 + $0x28] sm:$0xff]  ;;  %v166_v17 = vld [vmem:[#allocation4] sm:$0x3] }
  0xcc   :  { %669 = vmatprep.subr.bf16.mxu1 %v3528_v29  ;;  %v888_v7 = vld [vmem:[#allocation12 + $0x20] sm:$0xff]  ;;  %v3183_v12 = vcombine.low %v885_v8, %v889_v11  ;;  %v3184_v13 = vcombine.high %v885_v8, %v889_v11  ;;  %v4054_v16 = vsub.s32 0, %v4051_v15  ;;  %v4057_v18 = vsub.s32 1, %v4051_v15  ;;  %v933_v11 = vld [vmem:[#allocation12 + $0x188] sm:$0xff] }
  0xcd   :  { %707 = vmatpush1.bf16.msra.mxu0 %v3518_v26  ;;  %v3181_v9 = vcombine.low %v884_v6, %v888_v7  ;;  %v3182_v10 = vcombine.high %v884_v6, %v888_v7 }
  0xce   :  { %708 = vmatprep.subr.bf16.mxu0 %v3526_v27  ;;  %v171_v19 = vrot.slane %v166_v17, %v4054_v16  ;;  %v175_v20 = vrot.slane %v166_v17, %v4057_v18 }
  0xcf   :  { %670 = vmatpush1.bf16.msra.mxu1 %v3533_v32 }
  0xd0   :  { %671 = vmatprep.subr.bf16.mxu1 %v3534_v33  ;;  %v892_v33 = vld [vmem:[#allocation12 + $0x40] sm:$0xff] }
  0xd1   :  { %709 = vmatpush1.bf16.msra.mxu0 %v3524_v30 }
  0xd2   :  { %710 = vmatprep.subr.bf16.mxu0 %v3532_v31 }
  0xd3   :  { %672 = vmatpush1.bf16.msra.mxu1 %v3539_v36 }
  0xd4   :  { %673 = vmatprep.subr.bf16.mxu1 %v3540_v37  ;;  %v897_v37 = vld [vmem:[#allocation12 + $0x68] sm:$0xff] }
  0xd5   :  { %711 = vmatpush1.bf16.msra.mxu0 %v3530_v34  ;;  %v896_v34 = vld [vmem:[#allocation12 + $0x60] sm:$0xff] }
  0xd6   :  { %712 = vmatprep.subr.bf16.mxu0 %v3538_v35  ;;  %v893_v35 = vld [vmem:[#allocation12 + $0x48] sm:$0xff]  ;;  %v3190_v36 = vcombine.high %v892_v33, %v896_v34 }
  0xd7   :  { %674 = vmatpush1.bf16.msra.mxu1 %v3545_v40  ;;  %v3192_v40 = vcombine.high %v893_v35, %v897_v37 }
  0xd8   :  { %675 = vmatprep.subr.bf16.mxu1 %v3546_v41  ;;  %v900_v41 = vld [vmem:[#allocation12 + $0x80] sm:$0xff] }
  0xd9   :  { %713 = vmatpush1.bf16.msra.mxu0 %v3536_v38  ;;  %v3189_v38 = vcombine.low %v892_v33, %v896_v34 }
  0xda   :  { %714 = vmatprep.subr.bf16.mxu0 %v3544_v39  ;;  %v3191_v39 = vcombine.low %v893_v35, %v897_v37  ;;  %v960_v37 = vld [vmem:[#allocation12 + $0x260] sm:$0xff] }
  0xdb   :  { %676 = vmatpush1.bf16.msra.mxu1 %v3551_v43  ;;  %v901_v43 = vld [vmem:[#allocation12 + $0x88] sm:$0xff] }
  0xdc   :  { %677 = vmatprep.subr.bf16.mxu1 %v3552_v45  ;;  %v905_v45 = vld [vmem:[#allocation12 + $0xa8] sm:$0xff] }
  0xdd   :  { %715 = vmatpush1.bf16.msra.mxu0 %v3542_v42  ;;  %v904_v42 = vld [vmem:[#allocation12 + $0xa0] sm:$0xff] }
  0xde   :  { %716 = vmatprep.subr.bf16.mxu0 %v3550_v44  ;;  %v3198_v44 = vcombine.high %v900_v41, %v904_v42 }
  0xdf   :  { %678 = vmatpush1.bf16.msra.mxu1 %v3557_v47  ;;  %v3199_v47 = vcombine.low %v901_v43, %v905_v45 }
  0xe0   :  { %679 = vmatprep.subr.bf16.mxu1 %v3558_v49  ;;  %v908_v49 = vld [vmem:[#allocation12 + $0xc0] sm:$0xff] }
  0xe1   :  { %717 = vmatpush1.bf16.msra.mxu0 %v3548_v46  ;;  %v3197_v46 = vcombine.low %v900_v41, %v904_v42 }
  0xe2   :  { %718 = vmatprep.subr.bf16.mxu0 %v3556_v48  ;;  %v3200_v48 = vcombine.high %v901_v43, %v905_v45  ;;  %v968_v45 = vld [vmem:[#allocation12 + $0x2a0] sm:$0xff] }
  0xe3   :  { %680 = vmatpush1.bf16.msra.mxu1 %v3563_v51  ;;  %v909_v51 = vld [vmem:[#allocation12 + $0xc8] sm:$0xff] }
  0xe4   :  { %681 = vmatprep.subr.bf16.mxu1 %v3564_v53  ;;  %v913_v53 = vld [vmem:[#allocation12 + $0xe8] sm:$0xff] }
  0xe5   :  { %719 = vmatpush1.bf16.msra.mxu0 %v3554_v50  ;;  %v912_v50 = vld [vmem:[#allocation12 + $0xe0] sm:$0xff] }
  0xe6   :  { %720 = vmatprep.subr.bf16.mxu0 %v3562_v52  ;;  %v3206_v52 = vcombine.high %v908_v49, %v912_v50 }
  0xe7   :  { %682 = vmatpush1.bf16.msra.mxu1 %v3569_v55  ;;  %v3207_v55 = vcombine.low %v909_v51, %v913_v53 }
  0xe8   :  { %683 = vmatprep.subr.bf16.mxu1 %v3570_v57  ;;  %v916_v57 = vld [vmem:[#allocation12 + $0x100] sm:$0xff] }
  0xe9   :  { %721 = vmatpush1.bf16.msra.mxu0 %v3560_v54  ;;  %v3205_v54 = vcombine.low %v908_v49, %v912_v50 }
  0xea   :  { %722 = vmatprep.subr.bf16.mxu0 %v3568_v56  ;;  %v3208_v56 = vcombine.high %v909_v51, %v913_v53  ;;  %v976_v53 = vld [vmem:[#allocation12 + $0x2e0] sm:$0xff] }
  0xeb   :  { %684 = vmatpush1.bf16.msra.mxu1 %v3575_v59  ;;  %v917_v59 = vld [vmem:[#allocation12 + $0x108] sm:$0xff] }
  0xec   :  { %685 = vmatprep.subr.bf16.mxu1 %v3576_v62 }
  0xed   :  { %723 = vmatpush1.bf16.msra.mxu0 %v3566_v58  ;;  %v920_v58 = vld [vmem:[#allocation12 + $0x120] sm:$0xff] }
  0xee   :  { %724 = vmatprep.subr.bf16.mxu0 %v3574_v60  ;;  %v3214_v60 = vcombine.high %v916_v57, %v920_v58  ;;  %v3213_v62 = vcombine.low %v916_v57, %v920_v58 }
  0xef   :  { %686 = vmatpush1.bf16.msra.mxu1 %v3581_v1  ;;  %v924_v1 = vld [vmem:[#allocation12 + $0x140] sm:$0xff] }
  0xf0   :  { %687 = vmatprep.subr.bf16.mxu1 %v3582_v2  ;;  %v928_v2 = vld [vmem:[#allocation12 + $0x160] sm:$0xff] }
  0xf1   :  { %725 = vmatpush1.bf16.msra.mxu0 %v3572_v61  ;;  %v921_v61 = vld [vmem:[#allocation12 + $0x128] sm:$0xff]  ;;  %v3221_v6 = vcombine.low %v924_v1, %v928_v2 }
  0xf2   :  { %726 = vmatprep.subr.bf16.mxu0 %v3580_v63  ;;  %v3215_v63 = vcombine.low %v917_v59, %v921_v61 }
  0xf3   :  { %688 = vmatpush1.bf16.msra.mxu1 %v3587_v5  ;;  %v929_v5 = vld [vmem:[#allocation12 + $0x168] sm:$0xff] }
  0xf4   :  { %2462 = vmatprep.subr.bf16.mxu1 %v3182_v10  ;;  %v936_v10 = vld [vmem:[#allocation12 + $0x1a0] sm:$0xff] }
  0xf5   :  { %727 = vmatpush1.bf16.msra.mxu0 %v3578_v0  ;;  %v3216_v0 = vcombine.high %v917_v59, %v921_v61  ;;  %v984_v61 = vld [vmem:[#allocation12 + $0x320] sm:$0xff] }
  0xf6   :  { %728 = vmatprep.subr.bf16.mxu0 %v3586_v4  ;;  %v3222_v4 = vcombine.high %v924_v1, %v928_v2 }
  0xf9   :  { %729 = vmatpush1.bf16.msra.mxu0 %v3584_v3  ;;  %v925_v3 = vld [vmem:[#allocation12 + $0x148] sm:$0xff] }
  0xfa   :  { %2544 = vmatprep.subr.bf16.mxu0 %v3184_v13  ;;  %v3223_v7 = vcombine.low %v925_v3, %v929_v5  ;;  %v3224_v8 = vcombine.high %v925_v3, %v929_v5  ;;  %v937_v13 = vld [vmem:[#allocation12 + $0x1a8] sm:$0xff]  ;;  %v992_v5 = vld [vmem:[#allocation12 + $0x360] sm:$0xff] }
  0xfb   :  { %v3231_v17 = vcombine.low %v933_v11, %v937_v13 }
 0x18f   :  { %v236_v21 = vpop.f32.mrb[0].mxu0 }
 0x190   :  { %v237_v22 = vadd.f32 %v236_v21, %v171_v19  ;;  %v238_v23 = vpop.f32.mrb[1].mxu0  ;;  %v3232_v19 = vcombine.high %v933_v11, %v937_v13  ;;  %v944_v21 = vld [vmem:[#allocation12 + $0x1e0] sm:$0xff] }
 0x191   :  { %v239_v24 = vadd.f32 %v238_v23, %v175_v20  ;;  %v240_v25 = vpop.f32.mrb[2].mxu0  ;;  %v940_v20 = vld [vmem:[#allocation12 + $0x1c0] sm:$0xff] }
 0x192   :  { %vm243_vm1 = vcmp.ge.f32.partialorder %v237_v22, 0.0  ;;  %v245_v26 = vmul.f32 0.2, %v237_v22  ;;  %v241_v27 = vpop.f32.mrb[3].mxu0  ;;  %v3238_v23 = vcombine.high %v940_v20, %v944_v21  ;;  %v3237_v25 = vcombine.low %v940_v20, %v944_v21  ;;  %v1000_v13 = vld [vmem:[#allocation12 + $0x3a0] sm:$0xff] }
 0x193   :  { %v246_v28 = vmul.f32 0.2, %v239_v24  ;;  %vm244_vm2 = vcmp.ge.f32.partialorder %v239_v24, 0.0 }
 0x194   :  { %v247_v29 = vsel %vm243_vm1, %v237_v22, %v245_v26  ;;  %v941_v22 = vld [vmem:[#allocation12 + $0x1c8] sm:$0xff] }
 0x195   :  { %v248_v30 = vsel %vm244_vm2, %v239_v24, %v246_v28  ;;  %v249_v32 = vpack.c.bf16 %v247_v29, %v247_v29  ;;  %v945_v24 = vld [vmem:[#allocation12 + $0x1e8] sm:$0xff]  ;;  %v948_v28 = vld [vmem:[#allocation12 + $0x200] sm:$0xff] }
 0x196   :  { %v250_v31 = vpack.c.bf16 %v248_v30, %v248_v30  ;;  %v3239_v26 = vcombine.low %v941_v22, %v945_v24  ;;  %v3240_v27 = vcombine.high %v941_v22, %v945_v24  ;;  %v952_v29 = vld [vmem:[#allocation12 + $0x220] sm:$0xff]  ;;  %v949_v30 = vld [vmem:[#allocation12 + $0x208] sm:$0xff] }
 0x197   :  { %v3245_v33 = vcombine.low %v948_v28, %v952_v29  ;;  %v1008_v24 = vld [vmem:[#allocation12 + $0x3e0] sm:$0xff] }
 0x198   :  { %689 = vmatprep.mubr.bf16.mxu1 %v250_v31  ;;  %730 = vmatprep.mubr.bf16.mxu0 %v250_v31  ;;  %v3246_v31 = vcombine.high %v948_v28, %v952_v29  ;;  %v1009_v28 = vld [vmem:[#allocation12 + $0x3e8] sm:$0xff] }
 0x199   :  { %690 = vmatmul.mubr.bf16.vlgmr.msra.gmra.mrb[0].mxu1 %v249_v32  ;;  %731 = vmatmul.mubr.bf16.vlgmr.msra.gmra.mrb[4].mxu0 %v249_v32  ;;  %v953_v32 = vld [vmem:[#allocation12 + $0x228] sm:$0xff] }
 0x19a   :  { %2463 = vmatpush1.bf16.msra.mxu1 %v3181_v9  ;;  %2545 = vmatpush1.bf16.msra.mxu0 %v3183_v12  ;;  %v932_v9 = vld [vmem:[#allocation12 + $0x180] sm:$0xff]  ;;  %v3247_v34 = vcombine.low %v949_v30, %v953_v32  ;;  %v3248_v35 = vcombine.high %v949_v30, %v953_v32 }
 0x19b   :  { %2464 = vmatprep.subr.bf16.mxu1 %v3190_v36  ;;  %2546 = vmatprep.subr.bf16.mxu0 %v3192_v40  ;;  %v3230_v12 = vcombine.high %v932_v9, %v936_v10  ;;  %v3229_v14 = vcombine.low %v932_v9, %v936_v10  ;;  %v956_v36 = vld [vmem:[#allocation12 + $0x240] sm:$0xff]  ;;  %v961_v40 = vld [vmem:[#allocation12 + $0x268] sm:$0xff] }
 0x19c   :  { %v3253_v41 = vcombine.low %v956_v36, %v960_v37  ;;  %v4063_v32 = vld [vmem:[#allocation12 + $0x420] sm:$0xff] }
 0x19e   :  { %2465 = vmatpush1.bf16.msra.mxu1 %v3189_v38  ;;  %2547 = vmatpush1.bf16.msra.mxu0 %v3191_v39  ;;  %v957_v38 = vld [vmem:[#allocation12 + $0x248] sm:$0xff]  ;;  %v3254_v39 = vcombine.high %v956_v36, %v960_v37 }
 0x19f   :  { %2466 = vmatprep.subr.bf16.mxu1 %v3198_v44  ;;  %2548 = vmatprep.subr.bf16.mxu0 %v3200_v48  ;;  %v3255_v42 = vcombine.low %v957_v38, %v961_v40  ;;  %v3256_v43 = vcombine.high %v957_v38, %v961_v40  ;;  %v964_v44 = vld [vmem:[#allocation12 + $0x280] sm:$0xff]  ;;  %v969_v48 = vld [vmem:[#allocation12 + $0x2a8] sm:$0xff]  ;;  %v315_v40 = vld [vmem:[#allocation7] sm:$0xf] }
 0x1a0   :  { %v3261_v49 = vcombine.low %v964_v44, %v968_v45 }
 0x1a2   :  { %2467 = vmatpush1.bf16.msra.mxu1 %v3197_v46  ;;  %2549 = vmatpush1.bf16.msra.mxu0 %v3199_v47  ;;  %v965_v46 = vld [vmem:[#allocation12 + $0x288] sm:$0xff]  ;;  %v3262_v47 = vcombine.high %v964_v44, %v968_v45  ;;  %v324_v44 = vrot.slane %v315_v40, %v4057_v18 }
 0x1a3   :  { %2468 = vmatprep.subr.bf16.mxu1 %v3206_v52  ;;  %2550 = vmatprep.subr.bf16.mxu0 %v3208_v56  ;;  %v3263_v50 = vcombine.low %v965_v46, %v969_v48  ;;  %v3264_v51 = vcombine.high %v965_v46, %v969_v48  ;;  %v972_v52 = vld [vmem:[#allocation12 + $0x2c0] sm:$0xff]  ;;  %v977_v56 = vld [vmem:[#allocation12 + $0x2e8] sm:$0xff] }
 0x1a4   :  { %v3269_v57 = vcombine.low %v972_v52, %v976_v53 }
 0x1a6   :  { %2469 = vmatpush1.bf16.msra.mxu1 %v3205_v54  ;;  %2551 = vmatpush1.bf16.msra.mxu0 %v3207_v55  ;;  %v973_v54 = vld [vmem:[#allocation12 + $0x2c8] sm:$0xff]  ;;  %v3270_v55 = vcombine.high %v972_v52, %v976_v53 }
 0x1a7   :  { %2470 = vmatprep.subr.bf16.mxu1 %v3214_v60  ;;  %2552 = vmatprep.subr.bf16.mxu0 %v3216_v0  ;;  %v3271_v58 = vcombine.low %v973_v54, %v977_v56  ;;  %v3272_v59 = vcombine.high %v973_v54, %v977_v56  ;;  %v980_v60 = vld [vmem:[#allocation12 + $0x300] sm:$0xff]  ;;  %v985_v0 = vld [vmem:[#allocation12 + $0x328] sm:$0xff] }
 0x1a8   :  { %v3277_v1 = vcombine.low %v980_v60, %v984_v61 }
 0x1aa   :  { %2471 = vmatpush1.bf16.msra.mxu1 %v3213_v62  ;;  %2553 = vmatpush1.bf16.msra.mxu0 %v3215_v63  ;;  %v981_v62 = vld [vmem:[#allocation12 + $0x308] sm:$0xff]  ;;  %v3278_v63 = vcombine.high %v980_v60, %v984_v61 }
 0x1ab   :  { %2472 = vmatprep.subr.bf16.mxu1 %v3222_v4  ;;  %2554 = vmatprep.subr.bf16.mxu0 %v3224_v8  ;;  %v3279_v2 = vcombine.low %v981_v62, %v985_v0  ;;  %v3280_v3 = vcombine.high %v981_v62, %v985_v0  ;;  %v988_v4 = vld [vmem:[#allocation12 + $0x340] sm:$0xff]  ;;  %v993_v8 = vld [vmem:[#allocation12 + $0x368] sm:$0xff] }
 0x1ac   :  { %v3285_v9 = vcombine.low %v988_v4, %v992_v5 }
 0x1ae   :  { %2473 = vmatpush1.bf16.msra.mxu1 %v3221_v6  ;;  %2555 = vmatpush1.bf16.msra.mxu0 %v3223_v7  ;;  %v989_v6 = vld [vmem:[#allocation12 + $0x348] sm:$0xff]  ;;  %v3286_v7 = vcombine.high %v988_v4, %v992_v5 }
 0x1af   :  { %2474 = vmatprep.subr.bf16.mxu1 %v3230_v12  ;;  %2556 = vmatprep.subr.bf16.mxu0 %v3232_v19  ;;  %v3287_v10 = vcombine.low %v989_v6, %v993_v8  ;;  %v3288_v11 = vcombine.high %v989_v6, %v993_v8  ;;  %v996_v12 = vld [vmem:[#allocation12 + $0x380] sm:$0xff]  ;;  %v1001_v19 = vld [vmem:[#allocation12 + $0x3a8] sm:$0xff] }
 0x1b0   :  { %v3293_v20 = vcombine.low %v996_v12, %v1000_v13 }
 0x1b2   :  { %2475 = vmatpush1.bf16.msra.mxu1 %v3229_v14  ;;  %2557 = vmatpush1.bf16.msra.mxu0 %v3231_v17  ;;  %v997_v14 = vld [vmem:[#allocation12 + $0x388] sm:$0xff]  ;;  %v3294_v17 = vcombine.high %v996_v12, %v1000_v13 }
 0x1b3   :  { %2476 = vmatprep.subr.bf16.mxu1 %v3238_v23  ;;  %2558 = vmatprep.subr.bf16.mxu0 %v3240_v27  ;;  %v3295_v21 = vcombine.low %v997_v14, %v1001_v19  ;;  %v3296_v22 = vcombine.high %v997_v14, %v1001_v19  ;;  %v1004_v23 = vld [vmem:[#allocation12 + $0x3c0] sm:$0xff] }
 0x1b4   :  { %v3302_v27 = vcombine.high %v1004_v23, %v1008_v24 }
 0x1b6   :  { %2477 = vmatpush1.bf16.msra.mxu1 %v3237_v25  ;;  %2559 = vmatpush1.bf16.msra.mxu0 %v3239_v26  ;;  %v1005_v25 = vld [vmem:[#allocation12 + $0x3c8] sm:$0xff]  ;;  %v3301_v26 = vcombine.low %v1004_v23, %v1008_v24 }
 0x1b7   :  { %2478 = vmatprep.subr.bf16.mxu1 %v3246_v31  ;;  %2560 = vmatprep.subr.bf16.mxu0 %v3248_v35  ;;  %v3303_v29 = vcombine.low %v1005_v25, %v1009_v28  ;;  %v3304_v30 = vcombine.high %v1005_v25, %v1009_v28  ;;  %v4061_v31 = vld [vmem:[#allocation12 + $0x400] sm:$0xff]  ;;  %v4069_v35 = vld [vmem:[#allocation12 + $0x428] sm:$0xff] }
 0x1b8   :  { %v3309_v36 = vcombine.low %v4061_v31, %v4063_v32 }
 0x1ba   :  { %2479 = vmatpush1.bf16.msra.mxu1 %v3245_v33  ;;  %2561 = vmatpush1.bf16.msra.mxu0 %v3247_v34  ;;  %v4065_v33 = vld [vmem:[#allocation12 + $0x408] sm:$0xff]  ;;  %v3310_v34 = vcombine.high %v4061_v31, %v4063_v32 }
 0x1bb   :  { %2480 = vmatprep.subr.bf16.mxu1 %v3254_v39  ;;  %2562 = vmatprep.subr.bf16.mxu0 %v3256_v43  ;;  %v3311_v37 = vcombine.low %v4065_v33, %v4069_v35  ;;  %v3312_v38 = vcombine.high %v4065_v33, %v4069_v35  ;;  %v4078_v39 = vsub.s32 2, %v4051_v15 }
 0x1bd   :  { %v328_v43 = vrot.slane %v315_v40, %v4078_v39 }
 0x1be   :  { %2481 = vmatpush1.bf16.msra.mxu1 %v3253_v41  ;;  %2563 = vmatpush1.bf16.msra.mxu0 %v3255_v42  ;;  %v4081_v41 = vsub.s32 3, %v4051_v15  ;;  %v320_v42 = vrot.slane %v315_v40, %v4054_v16 }
 0x1bf   :  { %2482 = vmatprep.subr.bf16.mxu1 %v3262_v47  ;;  %2564 = vmatprep.subr.bf16.mxu0 %v3264_v51 }
 0x1c0   :  { %v332_v45 = vrot.slane %v315_v40, %v4081_v41 }
 0x1c2   :  { %2483 = vmatpush1.bf16.msra.mxu1 %v3261_v49  ;;  %2565 = vmatpush1.bf16.msra.mxu0 %v3263_v50 }
 0x1c3   :  { %2484 = vmatprep.subr.bf16.mxu1 %v3270_v55  ;;  %2566 = vmatprep.subr.bf16.mxu0 %v3272_v59 }
 0x1c6   :  { %2485 = vmatpush1.bf16.msra.mxu1 %v3269_v57  ;;  %2567 = vmatpush1.bf16.msra.mxu0 %v3271_v58 }
 0x1c7   :  { %2486 = vmatprep.subr.bf16.mxu1 %v3278_v63  ;;  %2568 = vmatprep.subr.bf16.mxu0 %v3280_v3 }
 0x1ca   :  { %2487 = vmatpush1.bf16.msra.mxu1 %v3277_v1  ;;  %2569 = vmatpush1.bf16.msra.mxu0 %v3279_v2 }
 0x1cb   :  { %2488 = vmatprep.subr.bf16.mxu1 %v3286_v7  ;;  %2570 = vmatprep.subr.bf16.mxu0 %v3288_v11 }
 0x1ce   :  { %2489 = vmatpush1.bf16.msra.mxu1 %v3285_v9  ;;  %2571 = vmatpush1.bf16.msra.mxu0 %v3287_v10 }
 0x1cf   :  { %2490 = vmatprep.subr.bf16.mxu1 %v3294_v17  ;;  %2572 = vmatprep.subr.bf16.mxu0 %v3296_v22 }
 0x1d2   :  { %2491 = vmatpush1.bf16.msra.mxu1 %v3293_v20  ;;  %2573 = vmatpush1.bf16.msra.mxu0 %v3295_v21 }
 0x1d3   :  { %2492 = vmatprep.subr.bf16.mxu1 %v3302_v27  ;;  %2574 = vmatprep.subr.bf16.mxu0 %v3304_v30 }
 0x1d6   :  { %2493 = vmatpush1.bf16.msra.mxu1 %v3301_v26  ;;  %2575 = vmatpush1.bf16.msra.mxu0 %v3303_v29 }
 0x1d7   :  { %2503 = vmatprep.subr.bf16.mxu1 %v3310_v34  ;;  %2585 = vmatprep.subr.bf16.mxu0 %v3312_v38 }
 0x26c   :  { %v691_v46 = vpop.f32.mrb[0].mxu1  ;;  %v732_v47 = vpop.f32.mrb[4].mxu0 }
 0x26d   :  { %v692_v48 = vadd.f32 %v691_v46, %v320_v42  ;;  %v733_v49 = vadd.f32 %v732_v47, %v328_v43  ;;  %v693_v50 = vpop.f32.mrb[1].mxu1  ;;  %v734_v51 = vpop.f32.mrb[5].mxu0 }
 0x26e   :  { %v694_v52 = vadd.f32 %v693_v50, %v324_v44  ;;  %v735_v53 = vadd.f32 %v734_v51, %v332_v45  ;;  %v695_v54 = vpop.f32.mrb[2].mxu1  ;;  %v736_v55 = vpop.f32.mrb[6].mxu0 }
 0x26f   :  { %v741_v56 = vrot.slane %v692_v48, 4  ;;  %v753_v57 = vrot.slane %v733_v49, 4  ;;  %v696_v58 = vpop.f32.mrb[3].mxu1  ;;  %v737_v59 = vpop.f32.mrb[7].mxu0 }
 0x270   :  { %v747_v60 = vrot.slane %v694_v52, 4  ;;  %v759_v61 = vrot.slane %v735_v53, 4 }
 0x271   :  { %v742_v62 = vadd.f32 %v741_v56, %v692_v48  ;;  %v754_v63 = vadd.f32 %v753_v57, %v733_v49 }
 0x272   :  { %v748_v0 = vadd.f32 %v747_v60, %v694_v52  ;;  %v760_v1 = vadd.f32 %v759_v61, %v735_v53 }
 0x273   :  { %v743_v2 = vrot.slane %v742_v62, 2  ;;  %v755_v3 = vrot.slane %v754_v63, 2 }
 0x274   :  { %v749_v4 = vrot.slane %v748_v0, 2  ;;  %v761_v5 = vrot.slane %v760_v1, 2 }
 0x275   :  { %v744_v6 = vadd.f32 %v743_v2, %v742_v62  ;;  %v756_v7 = vadd.f32 %v755_v3, %v754_v63 }
 0x276   :  { %v750_v8 = vadd.f32 %v749_v4, %v748_v0  ;;  %v762_v9 = vadd.f32 %v761_v5, %v760_v1 }
 0x277   :  { %v745_v10 = vrot.slane %v744_v6, 1  ;;  %v757_v11 = vrot.slane %v756_v7, 1 }
 0x278   :  { %v751_v12 = vrot.slane %v750_v8, 1  ;;  %v763_v13 = vrot.slane %v762_v9, 1 }
 0x279   :  { %v746_v14 = vadd.f32 %v745_v10, %v744_v6  ;;  %v758_v17 = vadd.f32 %v757_v11, %v756_v7  ;;  %v740_v10 = vld [vmem:[#allocation10] sm:$0xf] }
 0x27a   :  { %v752_v19 = vadd.f32 %v751_v12, %v750_v8  ;;  %v764_v20 = vadd.f32 %v763_v13, %v762_v9  ;;  %v739_v9 = vld [vmem:[#allocation9] sm:$0xf] }
 0x27b   :  { %v766_v21 = vmul.f32 0.125, %v746_v14  ;;  %v768_v22 = vmul.f32 0.125, %v758_v17  ;;  %v822_v11 = vrot.slane %v739_v9, %v4054_v16  ;;  %v830_v13 = vrot.slane %v739_v9, %v4078_v39 }
 0x27c   :  { %v767_v23 = vmul.f32 0.125, %v752_v19  ;;  %v769_v24 = vmul.f32 0.125, %v764_v20  ;;  %v847_v19 = vrot.slane %v740_v10, %v4054_v16  ;;  %v826_v20 = vrot.slane %v739_v9, %v4057_v18 }
 0x27d   :  { %v770_v25 = vsub.f32 %v692_v48, %v766_v21  ;;  %v772_v26 = vsub.f32 %v733_v49, %v768_v22 }
 0x27e   :  { %v771_v27 = vsub.f32 %v694_v52, %v767_v23  ;;  %v773_v28 = vsub.f32 %v735_v53, %v769_v24  ;;  %v855_v23 = vrot.slane %v740_v10, %v4078_v39  ;;  %v834_v24 = vrot.slane %v739_v9, %v4081_v41  ;;  %v1045_v9 = vld [vmem:[#allocation12 + $0x508] sm:$0xff] }
 0x27f   :  { %v774_v29 = vmul.f32 %v770_v25, %v770_v25  ;;  %v776_v30 = vmul.f32 %v772_v26, %v772_v26 }
 0x280   :  { %v775_v34 = vmul.f32 %v771_v27, %v771_v27  ;;  %v777_v38 = vmul.f32 %v773_v28, %v773_v28 }
 0x281   :  { %v778_v40 = vrot.slane %v774_v29, 4  ;;  %v790_v42 = vrot.slane %v776_v30, 4 }
 0x282   :  { %v784_v43 = vrot.slane %v775_v34, 4  ;;  %v796_v44 = vrot.slane %v777_v38, 4 }
 0x283   :  { %v779_v45 = vadd.f32 %v778_v40, %v774_v29  ;;  %v791_v46 = vadd.f32 %v790_v42, %v776_v30 }
 0x284   :  { %v785_v47 = vadd.f32 %v784_v43, %v775_v34  ;;  %v797_v50 = vadd.f32 %v796_v44, %v777_v38  ;;  %v851_v38 = vrot.slane %v740_v10, %v4057_v18  ;;  %v859_v43 = vrot.slane %v740_v10, %v4081_v41  ;;  %v1049_v10 = vld [vmem:[#allocation12 + $0x528] sm:$0xff] }
 0x285   :  { %v780_v51 = vrot.slane %v779_v45, 2  ;;  %v792_v54 = vrot.slane %v791_v46, 2 }
 0x286   :  { %v786_v55 = vrot.slane %v785_v47, 2  ;;  %v798_v56 = vrot.slane %v797_v50, 2 }
 0x287   :  { %v781_v48 = vadd.f32 %v780_v51, %v779_v45  ;;  %v793_v49 = vadd.f32 %v792_v54, %v791_v46 }
 0x288   :  { %v787_v52 = vadd.f32 %v786_v55, %v785_v47  ;;  %v799_v53 = vadd.f32 %v798_v56, %v797_v50  ;;  %v1020_v55 = vld [vmem:[#allocation12 + $0x440] sm:$0xff] }
 0x289   :  { %v782_v57 = vrot.slane %v781_v48, 1  ;;  %v794_v58 = vrot.slane %v793_v49, 1 }
 0x28a   :  { %v788_v59 = vrot.slane %v787_v52, 1  ;;  %v800_v60 = vrot.slane %v799_v53, 1 }
 0x28b   :  { %v783_v61 = vadd.f32 %v782_v57, %v781_v48  ;;  %v795_v62 = vadd.f32 %v794_v58, %v793_v49  ;;  %v1024_v48 = vld [vmem:[#allocation12 + $0x460] sm:$0xff]  ;;  %v1025_v49 = vld [vmem:[#allocation12 + $0x468] sm:$0xff] }
 0x28c   :  { %v789_v63 = vadd.f32 %v788_v59, %v787_v52  ;;  %v801_v0 = vadd.f32 %v800_v60, %v799_v53  ;;  %v1028_v58 = vld [vmem:[#allocation12 + $0x480] sm:$0xff]  ;;  %v3318_v59 = vcombine.high %v1020_v55, %v1024_v48 }
 0x28d   :  { %v802_v1 = vmul.f32 0.125, %v783_v61  ;;  %v804_v2 = vmul.f32 0.125, %v795_v62  ;;  %v1032_v61 = vld [vmem:[#allocation12 + $0x4a0] sm:$0xff]  ;;  %v1029_v62 = vld [vmem:[#allocation12 + $0x488] sm:$0xff] }
 0x28e   :  { %v803_v3 = vmul.f32 0.125, %v789_v63  ;;  %v805_v4 = vmul.f32 0.125, %v801_v0  ;;  %v1033_v63 = vld [vmem:[#allocation12 + $0x4a8] sm:$0xff]  ;;  %v3325_v31 = vcombine.low %v1028_v58, %v1032_v61 }
 0x28f   :  { %v806_v5 = vadd.f32 0.9, %v802_v1  ;;  %v808_v6 = vadd.f32 0.9, %v804_v2  ;;  %v3317_v1 = vcombine.low %v1020_v55, %v1024_v48  ;;  %v3327_v32 = vcombine.low %v1029_v62, %v1033_v63  ;;  %v1080_v48 = vld [vmem:[#allocation12 + $0x620] sm:$0xff] }
 0x290   :  { %v807_v7 = vadd.f32 0.9, %v803_v3  ;;  %v809_v8 = vadd.f32 0.9, %v805_v4  ;;  %v3326_v3 = vcombine.high %v1028_v58, %v1032_v61  ;;  %v3328_v4 = vcombine.high %v1029_v62, %v1033_v63  ;;  %v1084_v61 = vld [vmem:[#allocation12 + $0x640] sm:$0xff]  ;;  %v1085_v63 = vld [vmem:[#allocation12 + $0x648] sm:$0xff] }
 0x291   :  { %3588 = vrsqrt.f32 %v806_v5  ;;  %v1036_v5 = vld [vmem:[#allocation12 + $0x4c0] sm:$0xff] }
 0x292   :  { %3590 = vrsqrt.f32 %v808_v6  ;;  %v1040_v6 = vld [vmem:[#allocation12 + $0x4e0] sm:$0xff] }
 0x293   :  { %3592 = vrsqrt.f32 %v807_v7  ;;  %v1037_v7 = vld [vmem:[#allocation12 + $0x4c8] sm:$0xff]  ;;  %v3334_v33 = vcombine.high %v1036_v5, %v1040_v6  ;;  %v1088_v62 = vld [vmem:[#allocation12 + $0x660] sm:$0xff] }
 0x294   :  { %3594 = vrsqrt.f32 %v809_v8  ;;  %v1041_v8 = vld [vmem:[#allocation12 + $0x4e8] sm:$0xff] }
 0x295   :  { %v3336_v35 = vcombine.high %v1037_v7, %v1041_v8 }
 0x29b   :  { %v3589_v12 = vpop.eup %3588 }
 0x29c   :  { %v3591_v14 = vpop.eup %3590  ;;  %v814_v17 = vmul.f32 %v3589_v12, %v770_v25  ;;  %v3335_v12 = vcombine.low %v1037_v7, %v1041_v8  ;;  %v1096_v7 = vld [vmem:[#allocation12 + $0x6a0] sm:$0xff]  ;;  %v1093_v8 = vld [vmem:[#allocation12 + $0x688] sm:$0xff] }
 0x29d   :  { %v3593_v21 = vpop.eup %3592  ;;  %v816_v22 = vmul.f32 %v3591_v14, %v772_v26  ;;  %v3344_v14 = vcombine.high %v1045_v9, %v1049_v10 }
 0x29e   :  { %v3595_v29 = vpop.eup %3594  ;;  %v839_v30 = vmul.f32 %v822_v11, %v814_v17  ;;  %v815_v34 = vmul.f32 %v3593_v21, %v771_v27  ;;  %v3333_v11 = vcombine.low %v1036_v5, %v1040_v6  ;;  %v1052_v17 = vld [vmem:[#allocation12 + $0x540] sm:$0xff]  ;;  %v1057_v21 = vld [vmem:[#allocation12 + $0x568] sm:$0xff] }
 0x29f   :  { %v841_v40 = vmul.f32 %v830_v13, %v816_v22  ;;  %v817_v42 = vmul.f32 %v3595_v29, %v773_v28  ;;  %v1021_v28 = vld [vmem:[#allocation12 + $0x448] sm:$0xff]  ;;  %v1092_v6 = vld [vmem:[#allocation12 + $0x680] sm:$0xff] }
 0x2a0   :  { %v864_v25 = vadd.f32 %v847_v19, %v839_v30  ;;  %v840_v44 = vmul.f32 %v826_v20, %v815_v34  ;;  %v3320_v60 = vcombine.high %v1021_v28, %v1025_v49  ;;  %v3319_v2 = vcombine.low %v1021_v28, %v1025_v49  ;;  %v1056_v19 = vld [vmem:[#allocation12 + $0x560] sm:$0xff]  ;;  %v1053_v20 = vld [vmem:[#allocation12 + $0x548] sm:$0xff] }
 0x2a1   :  { %v4095_v45 = vadd.f32 %v855_v23, %v841_v40  ;;  %v842_v46 = vmul.f32 %v834_v24, %v817_v42  ;;  %v3343_v23 = vcombine.low %v1045_v9, %v1049_v10  ;;  %v3350_v24 = vcombine.high %v1052_v17, %v1056_v19  ;;  %v1060_v30 = vld [vmem:[#allocation12 + $0x580] sm:$0xff]  ;;  %v1065_v40 = vld [vmem:[#allocation12 + $0x5a8] sm:$0xff] }
 0x2a2   :  { %v865_v47 = vadd.f32 %v851_v38, %v840_v44  ;;  %vm868_vm3 = vcmp.ge.f32.partialorder %v864_v25, 0.0  ;;  %v872_v26 = vmul.f32 0.2, %v864_v25  ;;  %v3352_v29 = vcombine.high %v1053_v20, %v1057_v21  ;;  %v1064_v34 = vld [vmem:[#allocation12 + $0x5a0] sm:$0xff]  ;;  %v1061_v38 = vld [vmem:[#allocation12 + $0x588] sm:$0xff] }
 0x2a3   :  { %v867_v50 = vadd.f32 %v859_v43, %v842_v46  ;;  %v3349_v42 = vcombine.low %v1052_v17, %v1056_v19  ;;  %v3351_v43 = vcombine.low %v1053_v20, %v1057_v21  ;;  %v3360_v44 = vcombine.high %v1061_v38, %v1065_v40  ;;  %v1068_v46 = vld [vmem:[#allocation12 + $0x5c0] sm:$0xff]  ;;  %v1077_v28 = vld [vmem:[#allocation12 + $0x608] sm:$0xff] }
 0x2a4   :  { %vm869_vm4 = vcmp.ge.f32.partialorder %v865_v47, 0.0  ;;  %v873_v51 = vmul.f32 0.2, %v865_v47  ;;  %v876_v54 = vsel %vm868_vm3, %v864_v25, %v872_v26  ;;  %v3358_v25 = vcombine.high %v1060_v30, %v1064_v34  ;;  %v1069_v26 = vld [vmem:[#allocation12 + $0x5c8] sm:$0xff]  ;;  %v1104_v9 = vld [vmem:[#allocation12 + $0x6e0] sm:$0xff] }
 0x2a5   :  { %vm871_vm5 = vcmp.ge.f32.partialorder %v867_v50, 0.0  ;;  %v875_v27 = vmul.f32 0.2, %v867_v50  ;;  %v4099_v57 = vpack.c.bf16 %v876_v54, %v876_v54  ;;  %v3359_v54 = vcombine.low %v1061_v38, %v1065_v40  ;;  %v1081_v49 = vld [vmem:[#allocation12 + $0x628] sm:$0xff]  ;;  %v1108_v19 = vld [vmem:[#allocation12 + $0x700] sm:$0xff] }
 0x2a6   :  { %v877_v56 = vsel %vm869_vm4, %v865_v47, %v873_v51  ;;  %v1072_v47 = vld [vmem:[#allocation12 + $0x5e0] sm:$0xff]  ;;  %v3357_v51 = vcombine.low %v1060_v30, %v1064_v34  ;;  %v1101_v10 = vld [vmem:[#allocation12 + $0x6c8] sm:$0xff]  ;;  %vm870_vm6 = vcmp.ge.f32.partialorder %v4095_v45, 0.0 }
 0x2a7   :  { %v4097_v52 = vpack.c.bf16 %v877_v56, %v877_v56  ;;  %v879_v53 = vsel %vm871_vm5, %v867_v50, %v875_v27  ;;  %v1073_v50 = vld [vmem:[#allocation12 + $0x5e8] sm:$0xff]  ;;  %v3366_v27 = vcombine.high %v1068_v46, %v1072_v47  ;;  %v1076_v56 = vld [vmem:[#allocation12 + $0x600] sm:$0xff] }
 0x2a8   :  { %v4105_v0 = vpack.c.bf16 %v879_v53, %v879_v53  ;;  %v3368_v55 = vcombine.high %v1069_v26, %v1073_v50  ;;  %v3365_v53 = vcombine.low %v1068_v46, %v1072_v47  ;;  %v3367_v58 = vcombine.low %v1069_v26, %v1073_v50  ;;  %v1112_v20 = vld [vmem:[#allocation12 + $0x720] sm:$0xff]  ;;  %v1109_v21 = vld [vmem:[#allocation12 + $0x708] sm:$0xff] }
 0x2a9   :  { %2494 = vmatprep.mubr.bf16.mxu1 %v4097_v52  ;;  %2576 = vmatprep.mubr.bf16.mxu0 %v4097_v52  ;;  %v1116_v34 = vld [vmem:[#allocation12 + $0x740] sm:$0xff]  ;;  %v1117_v40 = vld [vmem:[#allocation12 + $0x748] sm:$0xff] }
 0x2aa   :  { %2495 = vmatmul.mubr.bf16.vlgmr.msra.gmra.mrb[4].mxu1 %v4099_v57  ;;  %2577 = vmatmul.mubr.bf16.vlgmr.msra.gmra.mrb[8].mxu0 %v4099_v57  ;;  %v1120_v38 = vld [vmem:[#allocation12 + $0x760] sm:$0xff]  ;;  %v1125_v50 = vld [vmem:[#allocation12 + $0x788] sm:$0xff] }
 0x2ab   :  { %2504 = vmatpush1.bf16.msra.mxu1 %v3309_v36  ;;  %2586 = vmatpush1.bf16.msra.mxu0 %v3311_v37  ;;  %v1044_v36 = vld [vmem:[#allocation12 + $0x500] sm:$0xff] }
 0x2ac   :  { %2535 = vmatprep.mubr.bf16.mxu1 %v4105_v0  ;;  %2617 = vmatprep.mubr.bf16.mxu0 %v4105_v0  ;;  %v1048_v37 = vld [vmem:[#allocation12 + $0x520] sm:$0xff] }
 0x2ad   :  { %2505 = vmatprep.subr.bf16.mxu1 %v3318_v59  ;;  %2587 = vmatprep.subr.bf16.mxu0 %v3320_v60  ;;  %v3342_v13 = vcombine.high %v1044_v36, %v1048_v37  ;;  %v3341_v22 = vcombine.low %v1044_v36, %v1048_v37  ;;  %v3374_v59 = vcombine.high %v1076_v56, %v1080_v48  ;;  %v1100_v37 = vld [vmem:[#allocation12 + $0x6c0] sm:$0xff] }
 0x2ae   :  { %v3376_v60 = vcombine.high %v1077_v28, %v1081_v49  ;;  %v1124_v47 = vld [vmem:[#allocation12 + $0x780] sm:$0xff] }
 0x2af   :  { %2506 = vmatpush1.bf16.msra.mxu1 %v3317_v1  ;;  %2588 = vmatpush1.bf16.msra.mxu0 %v3319_v2  ;;  %v1089_v1 = vld [vmem:[#allocation12 + $0x668] sm:$0xff]  ;;  %v3373_v2 = vcombine.low %v1076_v56, %v1080_v48  ;;  %v1128_v26 = vld [vmem:[#allocation12 + $0x7a0] sm:$0xff] }
 0x2b0   :  { %2507 = vmatprep.subr.bf16.mxu1 %v3326_v3  ;;  %2589 = vmatprep.subr.bf16.mxu0 %v3328_v4  ;;  %v3375_v3 = vcombine.low %v1077_v28, %v1081_v49  ;;  %v3382_v4 = vcombine.high %v1084_v61, %v1088_v62  ;;  %v3384_v5 = vcombine.high %v1085_v63, %v1089_v1  ;;  %v1132_v48 = vld [vmem:[#allocation12 + $0x7c0] sm:$0xff]  ;;  %v1133_v49 = vld [vmem:[#allocation12 + $0x7c8] sm:$0xff] }
 0x2b1   :  { %v1136_v28 = vld [vmem:[#allocation12 + $0x7e0] sm:$0xff] }
 0x2b3   :  { %2508 = vmatpush1.bf16.msra.mxu1 %v3325_v31  ;;  %2590 = vmatpush1.bf16.msra.mxu0 %v3327_v32  ;;  %v1097_v31 = vld [vmem:[#allocation12 + $0x6a8] sm:$0xff]  ;;  %v3381_v32 = vcombine.low %v1084_v61, %v1088_v62  ;;  %v886_v62 = vld [vmem:[#allocation12 + $0x10] sm:$0xff] }
 0x2b4   :  { %2509 = vmatprep.subr.bf16.mxu1 %v3334_v33  ;;  %2591 = vmatprep.subr.bf16.mxu0 %v3336_v35  ;;  %v3383_v33 = vcombine.low %v1085_v63, %v1089_v1  ;;  %v3390_v35 = vcombine.high %v1092_v6, %v1096_v7  ;;  %v3392_v36 = vcombine.high %v1093_v8, %v1097_v31  ;;  %v874_v63 = vmul.f32 0.2, %v4095_v45  ;;  %v890_v1 = vld [vmem:[#allocation12 + $0x30] sm:$0xff] }
 0x2b7   :  { %2510 = vmatpush1.bf16.msra.mxu1 %v3333_v11  ;;  %2592 = vmatpush1.bf16.msra.mxu0 %v3335_v12  ;;  %v1105_v11 = vld [vmem:[#allocation12 + $0x6e8] sm:$0xff]  ;;  %v3389_v12 = vcombine.low %v1092_v6, %v1096_v7  ;;  %v3186_v6 = vcombine.high %v886_v62, %v890_v1 }
 0x2b8   :  { %2511 = vmatprep.subr.bf16.mxu1 %v3342_v13  ;;  %2593 = vmatprep.subr.bf16.mxu0 %v3344_v14  ;;  %v3391_v13 = vcombine.low %v1093_v8, %v1097_v31  ;;  %v3398_v14 = vcombine.high %v1100_v37, %v1104_v9  ;;  %v3400_v17 = vcombine.high %v1101_v10, %v1105_v11  ;;  %v894_v31 = vld [vmem:[#allocation12 + $0x50] sm:$0xff] }
 0x2b9   :  { %v878_v8 = vsel %vm870_vm6, %v4095_v45, %v874_v63  ;;  %v903_v45 = vld [vmem:[#allocation12 + $0x98] sm:$0xff] }
 0x2bb   :  { %2512 = vmatpush1.bf16.msra.mxu1 %v3341_v22  ;;  %2594 = vmatpush1.bf16.msra.mxu0 %v3343_v23  ;;  %v1113_v22 = vld [vmem:[#allocation12 + $0x728] sm:$0xff]  ;;  %v3397_v23 = vcombine.low %v1100_v37, %v1104_v9  ;;  %v4118_v37 = vpack.c.bf16 %v878_v8, %v878_v8 }
 0x2bc   :  { %2513 = vmatprep.subr.bf16.mxu1 %v3350_v24  ;;  %2595 = vmatprep.subr.bf16.mxu0 %v3352_v29  ;;  %v3399_v24 = vcombine.low %v1101_v10, %v1105_v11  ;;  %v3406_v29 = vcombine.high %v1108_v19, %v1112_v20  ;;  %v3408_v30 = vcombine.high %v1109_v21, %v1113_v22 }
 0x2bf   :  { %2514 = vmatpush1.bf16.msra.mxu1 %v3349_v42  ;;  %2596 = vmatpush1.bf16.msra.mxu0 %v3351_v43  ;;  %v1121_v42 = vld [vmem:[#allocation12 + $0x768] sm:$0xff]  ;;  %v3405_v43 = vcombine.low %v1108_v19, %v1112_v20 }
 0x2c0   :  { %2515 = vmatprep.subr.bf16.mxu1 %v3358_v25  ;;  %2597 = vmatprep.subr.bf16.mxu0 %v3360_v44  ;;  %v3407_v25 = vcombine.low %v1109_v21, %v1113_v22  ;;  %v3414_v44 = vcombine.high %v1116_v34, %v1120_v38  ;;  %v3416_v46 = vcombine.high %v1117_v40, %v1121_v42  ;;  %v910_v22 = vld [vmem:[#allocation12 + $0xd0] sm:$0xff] }
 0x2c3   :  { %2516 = vmatpush1.bf16.msra.mxu1 %v3357_v51  ;;  %2598 = vmatpush1.bf16.msra.mxu0 %v3359_v54  ;;  %v1129_v51 = vld [vmem:[#allocation12 + $0x7a8] sm:$0xff]  ;;  %v3413_v54 = vcombine.low %v1116_v34, %v1120_v38 }
 0x2c4   :  { %2517 = vmatprep.subr.bf16.mxu1 %v3366_v27  ;;  %2599 = vmatprep.subr.bf16.mxu0 %v3368_v55  ;;  %v3415_v27 = vcombine.low %v1117_v40, %v1121_v42  ;;  %v3422_v55 = vcombine.high %v1124_v47, %v1128_v26  ;;  %v3424_v56 = vcombine.high %v1125_v50, %v1129_v51  ;;  %v918_v42 = vld [vmem:[#allocation12 + $0x110] sm:$0xff] }
 0x2c7   :  { %2518 = vmatpush1.bf16.msra.mxu1 %v3365_v53  ;;  %2600 = vmatpush1.bf16.msra.mxu0 %v3367_v58  ;;  %v1137_v53 = vld [vmem:[#allocation12 + $0x7e8] sm:$0xff]  ;;  %v3421_v58 = vcombine.low %v1124_v47, %v1128_v26 }
 0x2c8   :  { %2519 = vmatprep.subr.bf16.mxu1 %v3374_v59  ;;  %2601 = vmatprep.subr.bf16.mxu0 %v3376_v60  ;;  %v3423_v59 = vcombine.low %v1125_v50, %v1129_v51  ;;  %v3430_v60 = vcombine.high %v1132_v48, %v1136_v28  ;;  %v3432_v61 = vcombine.high %v1133_v49, %v1137_v53  ;;  %v926_v50 = vld [vmem:[#allocation12 + $0x150] sm:$0xff] }
 0x2c9   :  { %v930_v51 = vld [vmem:[#allocation12 + $0x170] sm:$0xff] }
 0x2cb   :  { %2520 = vmatpush1.bf16.msra.mxu1 %v3373_v2  ;;  %2602 = vmatpush1.bf16.msra.mxu0 %v3375_v3  ;;  %v887_v2 = vld [vmem:[#allocation12 + $0x18] sm:$0xff] }
 0x2cc   :  { %2521 = vmatprep.subr.bf16.mxu1 %v3382_v4  ;;  %2603 = vmatprep.subr.bf16.mxu0 %v3384_v5  ;;  %v891_v3 = vld [vmem:[#allocation12 + $0x38] sm:$0xff]  ;;  %v3429_v4 = vcombine.low %v1132_v48, %v1136_v28  ;;  %v3431_v5 = vcombine.low %v1133_v49, %v1137_v53  ;;  %v3226_v48 = vcombine.high %v926_v50, %v930_v51  ;;  %v934_v49 = vld [vmem:[#allocation12 + $0x190] sm:$0xff] }
 0x2cd   :  { %v3188_v7 = vcombine.high %v887_v2, %v891_v3  ;;  %v3187_v9 = vcombine.low %v887_v2, %v891_v3  ;;  %v938_v53 = vld [vmem:[#allocation12 + $0x1b0] sm:$0xff]  ;;  %v943_v3 = vld [vmem:[#allocation12 + $0x1d8] sm:$0xff] }
 0x2ce   :  { %v946_v2 = vld [vmem:[#allocation12 + $0x1f0] sm:$0xff] }
 0x2cf   :  { %2522 = vmatpush1.bf16.msra.mxu1 %v3381_v32  ;;  %2604 = vmatpush1.bf16.msra.mxu0 %v3383_v33  ;;  %v898_v32 = vld [vmem:[#allocation12 + $0x70] sm:$0xff]  ;;  %v895_v33 = vld [vmem:[#allocation12 + $0x58] sm:$0xff] }
 0x2d0   :  { %2523 = vmatprep.subr.bf16.mxu1 %v3390_v35  ;;  %2605 = vmatprep.subr.bf16.mxu0 %v3392_v36  ;;  %v899_v35 = vld [vmem:[#allocation12 + $0x78] sm:$0xff]  ;;  %v3185_v36 = vcombine.low %v886_v62, %v890_v1  ;;  %v3194_v10 = vcombine.high %v894_v31, %v898_v32  ;;  %v3234_v62 = vcombine.high %v934_v49, %v938_v53  ;;  %v942_v1 = vld [vmem:[#allocation12 + $0x1d0] sm:$0xff] }
 0x2d1   :  { %v3196_v11 = vcombine.high %v895_v33, %v899_v35  ;;  %v3195_v19 = vcombine.low %v895_v33, %v899_v35  ;;  %v951_v33 = vld [vmem:[#allocation12 + $0x218] sm:$0xff] }
 0x2d2   :  { %v955_v35 = vld [vmem:[#allocation12 + $0x238] sm:$0xff] }
 0x2d3   :  { %2524 = vmatpush1.bf16.msra.mxu1 %v3389_v12  ;;  %2606 = vmatpush1.bf16.msra.mxu0 %v3391_v13  ;;  %v902_v12 = vld [vmem:[#allocation12 + $0x90] sm:$0xff] }
 0x2d4   :  { %2525 = vmatprep.subr.bf16.mxu1 %v3398_v14  ;;  %2607 = vmatprep.subr.bf16.mxu0 %v3400_v17  ;;  %v906_v13 = vld [vmem:[#allocation12 + $0xb0] sm:$0xff]  ;;  %v907_v14 = vld [vmem:[#allocation12 + $0xb8] sm:$0xff]  ;;  %v3193_v17 = vcombine.low %v894_v31, %v898_v32 }
 0x2d5   :  { %v3202_v20 = vcombine.high %v902_v12, %v906_v13  ;;  %v3204_v21 = vcombine.high %v903_v45, %v907_v14  ;;  %v3203_v34 = vcombine.low %v903_v45, %v907_v14  ;;  %v950_v31 = vld [vmem:[#allocation12 + $0x210] sm:$0xff]  ;;  %v959_v45 = vld [vmem:[#allocation12 + $0x258] sm:$0xff] }
 0x2d6   :  { %v954_v32 = vld [vmem:[#allocation12 + $0x230] sm:$0xff]  ;;  %v963_v14 = vld [vmem:[#allocation12 + $0x278] sm:$0xff] }
 0x2d7   :  { %2526 = vmatpush1.bf16.msra.mxu1 %v3397_v23  ;;  %2608 = vmatpush1.bf16.msra.mxu0 %v3399_v24  ;;  %v914_v23 = vld [vmem:[#allocation12 + $0xf0] sm:$0xff]  ;;  %v911_v24 = vld [vmem:[#allocation12 + $0xd8] sm:$0xff] }
 0x2d8   :  { %2527 = vmatprep.subr.bf16.mxu1 %v3406_v29  ;;  %2609 = vmatprep.subr.bf16.mxu0 %v3408_v30  ;;  %v915_v29 = vld [vmem:[#allocation12 + $0xf8] sm:$0xff]  ;;  %v3201_v30 = vcombine.low %v902_v12, %v906_v13  ;;  %v3210_v38 = vcombine.high %v910_v22, %v914_v23  ;;  %v958_v12 = vld [vmem:[#allocation12 + $0x250] sm:$0xff] }
 0x2d9   :  { %v3212_v40 = vcombine.high %v911_v24, %v915_v29  ;;  %v962_v13 = vld [vmem:[#allocation12 + $0x270] sm:$0xff] }
 0x2db   :  { %2528 = vmatpush1.bf16.msra.mxu1 %v3405_v43  ;;  %2610 = vmatpush1.bf16.msra.mxu0 %v3407_v25  ;;  %v922_v43 = vld [vmem:[#allocation12 + $0x130] sm:$0xff]  ;;  %v923_v25 = vld [vmem:[#allocation12 + $0x138] sm:$0xff] }
 0x2dc   :  { %2529 = vmatprep.subr.bf16.mxu1 %v3414_v44  ;;  %2611 = vmatprep.subr.bf16.mxu0 %v3416_v46  ;;  %v3209_v44 = vcombine.low %v910_v22, %v914_v23  ;;  %v3211_v46 = vcombine.low %v911_v24, %v915_v29  ;;  %v3218_v47 = vcombine.high %v918_v42, %v922_v43  ;;  %v966_v22 = vld [vmem:[#allocation12 + $0x290] sm:$0xff]  ;;  %v967_v24 = vld [vmem:[#allocation12 + $0x298] sm:$0xff] }
 0x2dd   :  { %v970_v23 = vld [vmem:[#allocation12 + $0x2b0] sm:$0xff]  ;;  %v971_v29 = vld [vmem:[#allocation12 + $0x2b8] sm:$0xff] }
 0x2df   :  { %2530 = vmatpush1.bf16.msra.mxu1 %v3413_v54  ;;  %2612 = vmatpush1.bf16.msra.mxu0 %v3415_v27  ;;  %v927_v54 = vld [vmem:[#allocation12 + $0x158] sm:$0xff] }
 0x2e0   :  { %2531 = vmatprep.subr.bf16.mxu1 %v3422_v55  ;;  %2613 = vmatprep.subr.bf16.mxu0 %v3424_v56  ;;  %v931_v27 = vld [vmem:[#allocation12 + $0x178] sm:$0xff]  ;;  %v3217_v55 = vcombine.low %v918_v42, %v922_v43  ;;  %v974_v42 = vld [vmem:[#allocation12 + $0x2d0] sm:$0xff] }
 0x2e1   :  { %v3228_v28 = vcombine.high %v927_v54, %v931_v27  ;;  %v978_v43 = vld [vmem:[#allocation12 + $0x2f0] sm:$0xff] }
 0x2e3   :  { %2532 = vmatpush1.bf16.msra.mxu1 %v3421_v58  ;;  %2614 = vmatpush1.bf16.msra.mxu0 %v3423_v59  ;;  %v935_v58 = vld [vmem:[#allocation12 + $0x198] sm:$0xff] }
 0x2e4   :  { %2533 = vmatprep.subr.bf16.mxu1 %v3430_v60  ;;  %2615 = vmatprep.subr.bf16.mxu0 %v3432_v61  ;;  %v939_v59 = vld [vmem:[#allocation12 + $0x1b8] sm:$0xff]  ;;  %v3225_v60 = vcombine.low %v926_v50, %v930_v51  ;;  %v3227_v61 = vcombine.low %v927_v54, %v931_v27  ;;  %v982_v50 = vld [vmem:[#allocation12 + $0x310] sm:$0xff] }
 0x2e5   :  { %v3236_v63 = vcombine.high %v935_v58, %v939_v59  ;;  %v986_v51 = vld [vmem:[#allocation12 + $0x330] sm:$0xff]  ;;  %v983_v54 = vld [vmem:[#allocation12 + $0x318] sm:$0xff] }
 0x2e6   :  { %v987_v27 = vld [vmem:[#allocation12 + $0x338] sm:$0xff] }
 0x2e7   :  { %2534 = vmatpush1.bf16.msra.mxu1 %v3429_v4  ;;  %2616 = vmatpush1.bf16.msra.mxu0 %v3431_v5  ;;  %v947_v4 = vld [vmem:[#allocation12 + $0x1f8] sm:$0xff]  ;;  %v3233_v5 = vcombine.low %v934_v49, %v938_v53  ;;  %v990_v49 = vld [vmem:[#allocation12 + $0x350] sm:$0xff] }
 0x2e8   :  { %2626 = vmatprep.subr.bf16.mxu1 %v3186_v6  ;;  %2708 = vmatprep.subr.bf16.mxu0 %v3188_v7  ;;  %v3235_v6 = vcombine.low %v935_v58, %v939_v59  ;;  %v3242_v7 = vcombine.high %v942_v1, %v946_v2  ;;  %v3244_v8 = vcombine.high %v943_v3, %v947_v4  ;;  %v994_v53 = vld [vmem:[#allocation12 + $0x370] sm:$0xff]  ;;  %v991_v58 = vld [vmem:[#allocation12 + $0x358] sm:$0xff] }
 0x2e9   :  { %v995_v59 = vld [vmem:[#allocation12 + $0x378] sm:$0xff] }
 0x2ea   :  { %2536 = vmatmul.mubr.bf16.vlgmr.msra.gmra.mrb[4].mxu1 %v4118_v37  ;;  %2618 = vmatmul.mubr.bf16.vlgmr.msra.gmra.mrb[8].mxu0 %v4118_v37 }
 0x2eb   :  { %2627 = vmatpush1.bf16.msra.mxu1 %v3185_v36  ;;  %2658 = vmatprep.mubr.bf16.mxu1 %v4097_v52  ;;  %v3241_v36 = vcombine.low %v942_v1, %v946_v2  ;;  %v998_v1 = vld [vmem:[#allocation12 + $0x390] sm:$0xff] }
 0x2ec   :  { %2709 = vmatpush1.bf16.msra.mxu0 %v3187_v9  ;;  %2740 = vmatprep.mubr.bf16.mxu0 %v4097_v52  ;;  %v919_v52 = vld [vmem:[#allocation12 + $0x118] sm:$0xff]  ;;  %v3243_v9 = vcombine.low %v943_v3, %v947_v4  ;;  %v1002_v2 = vld [vmem:[#allocation12 + $0x3b0] sm:$0xff] }
 0x2ed   :  { %2628 = vmatprep.subr.bf16.mxu1 %v3194_v10  ;;  %2710 = vmatprep.subr.bf16.mxu0 %v3196_v11  ;;  %v3220_v26 = vcombine.high %v919_v52, %v923_v25  ;;  %v3219_v56 = vcombine.low %v919_v52, %v923_v25  ;;  %v3250_v10 = vcombine.high %v950_v31, %v954_v32  ;;  %v975_v52 = vld [vmem:[#allocation12 + $0x2d8] sm:$0xff] }
 0x2ee   :  { %v3252_v11 = vcombine.high %v951_v33, %v955_v35  ;;  %v979_v25 = vld [vmem:[#allocation12 + $0x2f8] sm:$0xff] }
 0x2ef   :  { %2629 = vmatpush1.bf16.msra.mxu1 %v3193_v17  ;;  %v3249_v17 = vcombine.low %v950_v31, %v954_v32  ;;  %v999_v3 = vld [vmem:[#allocation12 + $0x398] sm:$0xff]  ;;  %v1006_v31 = vld [vmem:[#allocation12 + $0x3d0] sm:$0xff] }
 0x2f0   :  { %2711 = vmatpush1.bf16.msra.mxu0 %v3195_v19  ;;  %2630 = vmatprep.subr.bf16.mxu1 %v3202_v20  ;;  %v3251_v19 = vcombine.low %v951_v33, %v955_v35  ;;  %v3258_v20 = vcombine.high %v958_v12, %v962_v13  ;;  %v1003_v4 = vld [vmem:[#allocation12 + $0x3b8] sm:$0xff]  ;;  %v1010_v32 = vld [vmem:[#allocation12 + $0x3f0] sm:$0xff] }
 0x2f1   :  { %2712 = vmatprep.subr.bf16.mxu0 %v3204_v21  ;;  %v3260_v21 = vcombine.high %v959_v45, %v963_v14  ;;  %v1007_v33 = vld [vmem:[#allocation12 + $0x3d8] sm:$0xff] }
 0x2f2   :  { %v1011_v35 = vld [vmem:[#allocation12 + $0x3f8] sm:$0xff] }
 0x2f3   :  { %2631 = vmatpush1.bf16.msra.mxu1 %v3201_v30  ;;  %v3257_v30 = vcombine.low %v958_v12, %v962_v13  ;;  %v1014_v12 = vld [vmem:[#allocation12 + $0x410] sm:$0xff] }
 0x2f4   :  { %2713 = vmatpush1.bf16.msra.mxu0 %v3203_v34  ;;  %2632 = vmatprep.subr.bf16.mxu1 %v3210_v38  ;;  %v3259_v34 = vcombine.low %v959_v45, %v963_v14  ;;  %v3266_v38 = vcombine.high %v966_v22, %v970_v23  ;;  %v1018_v13 = vld [vmem:[#allocation12 + $0x430] sm:$0xff]  ;;  %v1015_v45 = vld [vmem:[#allocation12 + $0x418] sm:$0xff] }
 0x2f5   :  { %2714 = vmatprep.subr.bf16.mxu0 %v3212_v40  ;;  %v3268_v40 = vcombine.high %v967_v24, %v971_v29  ;;  %v1019_v14 = vld [vmem:[#allocation12 + $0x438] sm:$0xff] }
 0x2f7   :  { %2633 = vmatpush1.bf16.msra.mxu1 %v3209_v44  ;;  %v3265_v44 = vcombine.low %v966_v22, %v970_v23  ;;  %v1022_v22 = vld [vmem:[#allocation12 + $0x450] sm:$0xff] }
 0x2f8   :  { %2715 = vmatpush1.bf16.msra.mxu0 %v3211_v46  ;;  %2634 = vmatprep.subr.bf16.mxu1 %v3218_v47  ;;  %v3267_v46 = vcombine.low %v967_v24, %v971_v29  ;;  %v3274_v47 = vcombine.high %v974_v42, %v978_v43  ;;  %v1026_v23 = vld [vmem:[#allocation12 + $0x470] sm:$0xff]  ;;  %v3313_v24 = vcombine.low %v1014_v12, %v1018_v13  ;;  %v1023_v29 = vld [vmem:[#allocation12 + $0x458] sm:$0xff] }
 0x2f9   :  { %2716 = vmatprep.subr.bf16.mxu0 %v3220_v26  ;;  %v3276_v26 = vcombine.high %v975_v52, %v979_v25 }
 0x2fb   :  { %2635 = vmatpush1.bf16.msra.mxu1 %v3217_v55  ;;  %v3273_v55 = vcombine.low %v974_v42, %v978_v43  ;;  %v1034_v42 = vld [vmem:[#allocation12 + $0x4b0] sm:$0xff] }
 0x2fc   :  { %2717 = vmatpush1.bf16.msra.mxu0 %v3219_v56  ;;  %2636 = vmatprep.subr.bf16.mxu1 %v3226_v48  ;;  %v3275_v56 = vcombine.low %v975_v52, %v979_v25  ;;  %v3282_v48 = vcombine.high %v982_v50, %v986_v51  ;;  %v1031_v52 = vld [vmem:[#allocation12 + $0x498] sm:$0xff] }
 0x2fd   :  { %2718 = vmatprep.subr.bf16.mxu0 %v3228_v28  ;;  %v3284_v28 = vcombine.high %v983_v54, %v987_v27  ;;  %v1035_v25 = vld [vmem:[#allocation12 + $0x4b8] sm:$0xff] }
 0x2ff   :  { %2637 = vmatpush1.bf16.msra.mxu1 %v3225_v60  ;;  %v3281_v60 = vcombine.low %v982_v50, %v986_v51  ;;  %v1038_v50 = vld [vmem:[#allocation12 + $0x4d0] sm:$0xff] }
 0x300   :  { %2719 = vmatpush1.bf16.msra.mxu0 %v3227_v61  ;;  %2638 = vmatprep.subr.bf16.mxu1 %v3234_v62  ;;  %v3283_v61 = vcombine.low %v983_v54, %v987_v27  ;;  %v3290_v62 = vcombine.high %v990_v49, %v994_v53  ;;  %v1042_v51 = vld [vmem:[#allocation12 + $0x4f0] sm:$0xff]  ;;  %v1039_v54 = vld [vmem:[#allocation12 + $0x4d8] sm:$0xff] }
 0x301   :  { %2720 = vmatprep.subr.bf16.mxu0 %v3236_v63  ;;  %v3292_v63 = vcombine.high %v991_v58, %v995_v59  ;;  %v1043_v27 = vld [vmem:[#allocation12 + $0x4f8] sm:$0xff] }
 0x303   :  { %2639 = vmatpush1.bf16.msra.mxu1 %v3233_v5  ;;  %v3289_v5 = vcombine.low %v990_v49, %v994_v53  ;;  %v1050_v49 = vld [vmem:[#allocation12 + $0x530] sm:$0xff]  ;;  %v1047_v53 = vld [vmem:[#allocation12 + $0x518] sm:$0xff] }
 0x304   :  { %2721 = vmatpush1.bf16.msra.mxu0 %v3235_v6  ;;  %2640 = vmatprep.subr.bf16.mxu1 %v3242_v7  ;;  %v3291_v6 = vcombine.low %v991_v58, %v995_v59  ;;  %v3298_v7 = vcombine.high %v998_v1, %v1002_v2  ;;  %v1051_v58 = vld [vmem:[#allocation12 + $0x538] sm:$0xff]  ;;  %v3339_v59 = vcombine.low %v1039_v54, %v1043_v27 }
 0x305   :  { %2722 = vmatprep.subr.bf16.mxu0 %v3244_v8  ;;  %v3300_v8 = vcombine.high %v999_v3, %v1003_v4 }
 0x307   :  { %2641 = vmatpush1.bf16.msra.mxu1 %v3241_v36  ;;  %v3297_v36 = vcombine.low %v998_v1, %v1002_v2  ;;  %v1055_v1 = vld [vmem:[#allocation12 + $0x558] sm:$0xff] }
 0x308   :  { %2723 = vmatpush1.bf16.msra.mxu0 %v3243_v9  ;;  %2642 = vmatprep.subr.bf16.mxu1 %v3250_v10  ;;  %v3299_v9 = vcombine.low %v999_v3, %v1003_v4  ;;  %v3306_v10 = vcombine.high %v1006_v31, %v1010_v32  ;;  %v1059_v2 = vld [vmem:[#allocation12 + $0x578] sm:$0xff]  ;;  %v3347_v4 = vcombine.low %v1047_v53, %v1051_v58 }
 0x309   :  { %2724 = vmatprep.subr.bf16.mxu0 %v3252_v11  ;;  %v3308_v11 = vcombine.high %v1007_v33, %v1011_v35 }
 0x30b   :  { %2643 = vmatpush1.bf16.msra.mxu1 %v3249_v17  ;;  %v3305_v17 = vcombine.low %v1006_v31, %v1010_v32  ;;  %v1063_v31 = vld [vmem:[#allocation12 + $0x598] sm:$0xff] }
 0x30c   :  { %2725 = vmatpush1.bf16.msra.mxu0 %v3251_v19  ;;  %2644 = vmatprep.subr.bf16.mxu1 %v3258_v20  ;;  %v3307_v19 = vcombine.low %v1007_v33, %v1011_v35  ;;  %v3314_v20 = vcombine.high %v1014_v12, %v1018_v13  ;;  %v1067_v32 = vld [vmem:[#allocation12 + $0x5b8] sm:$0xff]  ;;  %v3355_v35 = vcombine.low %v1055_v1, %v1059_v2 }
 0x30d   :  { %2726 = vmatprep.subr.bf16.mxu0 %v3260_v21  ;;  %v3316_v21 = vcombine.high %v1015_v45, %v1019_v14  ;;  %v1071_v12 = vld [vmem:[#allocation12 + $0x5d8] sm:$0xff] }
 0x30e   :  { %v1075_v13 = vld [vmem:[#allocation12 + $0x5f8] sm:$0xff] }
 0x30f   :  { %2645 = vmatpush1.bf16.msra.mxu1 %v3257_v30  ;;  %v1027_v30 = vld [vmem:[#allocation12 + $0x478] sm:$0xff] }
 0x310   :  { %2727 = vmatpush1.bf16.msra.mxu0 %v3259_v34  ;;  %2646 = vmatprep.subr.bf16.mxu1 %v3266_v38  ;;  %v3315_v34 = vcombine.low %v1015_v45, %v1019_v14  ;;  %v3322_v38 = vcombine.high %v1022_v22, %v1026_v23  ;;  %v3324_v43 = vcombine.high %v1023_v29, %v1027_v30 }
 0x311   :  { %2728 = vmatprep.subr.bf16.mxu0 %v3268_v40  ;;  %v1030_v40 = vld [vmem:[#allocation12 + $0x490] sm:$0xff]  ;;  %v3363_v14 = vcombine.low %v1063_v31, %v1067_v32 }
 0x313   :  { %2647 = vmatpush1.bf16.msra.mxu1 %v3265_v44  ;;  %v3321_v44 = vcombine.low %v1022_v22, %v1026_v23  ;;  %v1079_v22 = vld [vmem:[#allocation12 + $0x618] sm:$0xff] }
 0x314   :  { %2729 = vmatpush1.bf16.msra.mxu0 %v3267_v46  ;;  %2648 = vmatprep.subr.bf16.mxu1 %v3274_v47  ;;  %v3323_v46 = vcombine.low %v1023_v29, %v1027_v30  ;;  %v3330_v47 = vcombine.high %v1030_v40, %v1034_v42  ;;  %v1083_v23 = vld [vmem:[#allocation12 + $0x638] sm:$0xff]  ;;  %v3371_v29 = vcombine.low %v1071_v12, %v1075_v13 }
 0x315   :  { %2730 = vmatprep.subr.bf16.mxu0 %v3276_v26  ;;  %v3332_v26 = vcombine.high %v1031_v52, %v1035_v25 }
 0x317   :  { %2649 = vmatpush1.bf16.msra.mxu1 %v3273_v55  ;;  %v3329_v55 = vcombine.low %v1030_v40, %v1034_v42  ;;  %v1090_v40 = vld [vmem:[#allocation12 + $0x670] sm:$0xff]  ;;  %v1087_v42 = vld [vmem:[#allocation12 + $0x658] sm:$0xff] }
 0x318   :  { %2731 = vmatpush1.bf16.msra.mxu0 %v3275_v56  ;;  %2650 = vmatprep.subr.bf16.mxu1 %v3282_v48  ;;  %v3338_v56 = vcombine.high %v1038_v50, %v1042_v51  ;;  %v3340_v48 = vcombine.high %v1039_v54, %v1043_v27 }
 0x319   :  { %2732 = vmatprep.subr.bf16.mxu0 %v3284_v28  ;;  %v1046_v28 = vld [vmem:[#allocation12 + $0x510] sm:$0xff] }
 0x31a   :  { %v3345_v3 = vcombine.low %v1046_v28, %v1050_v49 }
 0x31b   :  { %2651 = vmatpush1.bf16.msra.mxu1 %v3281_v60  ;;  %v3346_v60 = vcombine.high %v1046_v28, %v1050_v49  ;;  %v1103_v28 = vld [vmem:[#allocation12 + $0x6d8] sm:$0xff] }
 0x31c   :  { %2733 = vmatpush1.bf16.msra.mxu0 %v3283_v61  ;;  %2652 = vmatprep.subr.bf16.mxu1 %v3290_v62  ;;  %v3348_v61 = vcombine.high %v1047_v53, %v1051_v58  ;;  %v1054_v62 = vld [vmem:[#allocation12 + $0x550] sm:$0xff]  ;;  %v1107_v49 = vld [vmem:[#allocation12 + $0x6f8] sm:$0xff] }
 0x31d   :  { %2734 = vmatprep.subr.bf16.mxu0 %v3292_v63  ;;  %v1058_v63 = vld [vmem:[#allocation12 + $0x570] sm:$0xff] }
 0x31e   :  { %v3353_v33 = vcombine.low %v1054_v62, %v1058_v63 }
 0x31f   :  { %2653 = vmatpush1.bf16.msra.mxu1 %v3289_v5  ;;  %v3354_v5 = vcombine.high %v1054_v62, %v1058_v63  ;;  %v1111_v62 = vld [vmem:[#allocation12 + $0x718] sm:$0xff] }
 0x320   :  { %2735 = vmatpush1.bf16.msra.mxu0 %v3291_v6  ;;  %2654 = vmatprep.subr.bf16.mxu1 %v3298_v7  ;;  %v3356_v6 = vcombine.high %v1055_v1, %v1059_v2  ;;  %v1062_v7 = vld [vmem:[#allocation12 + $0x590] sm:$0xff]  ;;  %v1115_v63 = vld [vmem:[#allocation12 + $0x738] sm:$0xff]  ;;  %v3403_v2 = vcombine.low %v1103_v28, %v1107_v49 }
 0x321   :  { %2736 = vmatprep.subr.bf16.mxu0 %v3300_v8  ;;  %v1066_v8 = vld [vmem:[#allocation12 + $0x5b0] sm:$0xff] }
 0x322   :  { %v3361_v45 = vcombine.low %v1062_v7, %v1066_v8 }
 0x323   :  { %2655 = vmatpush1.bf16.msra.mxu1 %v3297_v36  ;;  %v3362_v36 = vcombine.high %v1062_v7, %v1066_v8  ;;  %v1119_v7 = vld [vmem:[#allocation12 + $0x758] sm:$0xff] }
 0x324   :  { %2737 = vmatpush1.bf16.msra.mxu0 %v3299_v9  ;;  %2656 = vmatprep.subr.bf16.mxu1 %v3306_v10  ;;  %v3364_v9 = vcombine.high %v1063_v31, %v1067_v32  ;;  %v1070_v10 = vld [vmem:[#allocation12 + $0x5d0] sm:$0xff]  ;;  %v1123_v8 = vld [vmem:[#allocation12 + $0x778] sm:$0xff]  ;;  %v3411_v32 = vcombine.low %v1111_v62, %v1115_v63 }
 0x325   :  { %2738 = vmatprep.subr.bf16.mxu0 %v3308_v11  ;;  %v1074_v11 = vld [vmem:[#allocation12 + $0x5f0] sm:$0xff] }
 0x327   :  { %2657 = vmatpush1.bf16.msra.mxu1 %v3305_v17  ;;  %v3370_v17 = vcombine.high %v1070_v10, %v1074_v11 }
 0x328   :  { %2739 = vmatpush1.bf16.msra.mxu0 %v3307_v19  ;;  %2667 = vmatprep.subr.bf16.mxu1 %v3314_v20  ;;  %v3372_v19 = vcombine.high %v1071_v12, %v1075_v13  ;;  %v1078_v20 = vld [vmem:[#allocation12 + $0x610] sm:$0xff]  ;;  %v3419_v13 = vcombine.low %v1119_v7, %v1123_v8 }
 0x329   :  { %2749 = vmatprep.subr.bf16.mxu0 %v3316_v21  ;;  %v1082_v21 = vld [vmem:[#allocation12 + $0x630] sm:$0xff] }
 0x32a   :  { %2659 = vmatmul.mubr.bf16.vlgmr.msra.gmra.mrb[8].mxu1 %v4099_v57  ;;  %v3378_v30 = vcombine.high %v1078_v20, %v1082_v21 }
 0x32b   :  { %2741 = vmatmul.mubr.bf16.vlgmr.msra.gmra.mrb[12].mxu0 %v4099_v57  ;;  %2668 = vmatpush1.bf16.msra.mxu1 %v3313_v24  ;;  %v3331_v57 = vcombine.low %v1031_v52, %v1035_v25  ;;  %v3369_v24 = vcombine.low %v1070_v10, %v1074_v11  ;;  %v3377_v52 = vcombine.low %v1078_v20, %v1082_v21  ;;  %v1127_v10 = vld [vmem:[#allocation12 + $0x798] sm:$0xff] }
 0x32c   :  { %2699 = vmatprep.mubr.bf16.mxu1 %v4105_v0  ;;  %2750 = vmatpush1.bf16.msra.mxu0 %v3315_v34  ;;  %v3380_v34 = vcombine.high %v1079_v22, %v1083_v23  ;;  %v3379_v25 = vcombine.low %v1079_v22, %v1083_v23  ;;  %v1131_v11 = vld [vmem:[#allocation12 + $0x7b8] sm:$0xff] }
 0x32d   :  { %2781 = vmatprep.mubr.bf16.mxu0 %v4105_v0  ;;  %2669 = vmatprep.subr.bf16.mxu1 %v3322_v38  ;;  %v3337_v0 = vcombine.low %v1038_v50, %v1042_v51  ;;  %v1086_v38 = vld [vmem:[#allocation12 + $0x650] sm:$0xff]  ;;  %v1095_v50 = vld [vmem:[#allocation12 + $0x698] sm:$0xff]  ;;  %v3427_v23 = vcombine.low %v1127_v10, %v1131_v11 }
 0x32e   :  { %2751 = vmatprep.subr.bf16.mxu0 %v3324_v43  ;;  %v1091_v43 = vld [vmem:[#allocation12 + $0x678] sm:$0xff]  ;;  %v3385_v54 = vcombine.low %v1086_v38, %v1090_v40 }
 0x32f   :  { %2670 = vmatpush1.bf16.msra.mxu1 %v3321_v44  ;;  %v3386_v44 = vcombine.high %v1086_v38, %v1090_v40  ;;  %v1099_v51 = vld [vmem:[#allocation12 + $0x6b8] sm:$0xff]  ;;  %v3387_v27 = vcombine.low %v1087_v42, %v1091_v43  ;;  %v4130_v38 = vld [vmem:[#allocation13] sm:$0xff] }
 0x330   :  { %2752 = vmatpush1.bf16.msra.mxu0 %v3323_v46  ;;  %2671 = vmatprep.subr.bf16.mxu1 %v3330_v47  ;;  %v3388_v46 = vcombine.high %v1087_v42, %v1091_v43  ;;  %v1094_v47 = vld [vmem:[#allocation12 + $0x690] sm:$0xff]  ;;  %v3395_v58 = vcombine.low %v1095_v50, %v1099_v51  ;;  %v1135_v20 = vld [vmem:[#allocation12 + $0x7d8] sm:$0xff]  ;;  %v1145_v40 = vrot.slane %v4130_v38, %v4054_v16 }
 0x331   :  { %2753 = vmatprep.subr.bf16.mxu0 %v3332_v26  ;;  %v1098_v26 = vld [vmem:[#allocation12 + $0x6b0] sm:$0xff]  ;;  %v1139_v21 = vld [vmem:[#allocation12 + $0x7f8] sm:$0xff]  ;;  %v1153_v42 = vrot.slane %v4130_v38, %v4078_v39  ;;  %v1149_v43 = vrot.slane %v4130_v38, %v4057_v18 }
 0x332   :  { %v3393_v53 = vcombine.low %v1094_v47, %v1098_v26 }
 0x333   :  { %2672 = vmatpush1.bf16.msra.mxu1 %v3329_v55  ;;  %v3394_v55 = vcombine.high %v1094_v47, %v1098_v26 }
 0x334   :  { %2754 = vmatpush1.bf16.msra.mxu0 %v3331_v57  ;;  %2673 = vmatprep.subr.bf16.mxu1 %v3338_v56  ;;  %v3396_v57 = vcombine.high %v1095_v50, %v1099_v51  ;;  %v1102_v56 = vld [vmem:[#allocation12 + $0x6d0] sm:$0xff] }
 0x335   :  { %2755 = vmatprep.subr.bf16.mxu0 %v3340_v48  ;;  %v1106_v48 = vld [vmem:[#allocation12 + $0x6f0] sm:$0xff] }
 0x336   :  { %v3401_v1 = vcombine.low %v1102_v56, %v1106_v48 }
 0x337   :  { %2674 = vmatpush1.bf16.msra.mxu1 %v3337_v0  ;;  %v3402_v0 = vcombine.high %v1102_v56, %v1106_v48 }
 0x338   :  { %2756 = vmatpush1.bf16.msra.mxu0 %v3339_v59  ;;  %2675 = vmatprep.subr.bf16.mxu1 %v3346_v60  ;;  %v3404_v59 = vcombine.high %v1103_v28, %v1107_v49  ;;  %v1110_v60 = vld [vmem:[#allocation12 + $0x710] sm:$0xff] }
 0x339   :  { %2757 = vmatprep.subr.bf16.mxu0 %v3348_v61  ;;  %v1114_v61 = vld [vmem:[#allocation12 + $0x730] sm:$0xff] }
 0x33a   :  { %v3409_v31 = vcombine.low %v1110_v60, %v1114_v61 }
 0x33b   :  { %2676 = vmatpush1.bf16.msra.mxu1 %v3345_v3  ;;  %v3410_v3 = vcombine.high %v1110_v60, %v1114_v61 }
 0x33c   :  { %2758 = vmatpush1.bf16.msra.mxu0 %v3347_v4  ;;  %2677 = vmatprep.subr.bf16.mxu1 %v3354_v5  ;;  %v3412_v4 = vcombine.high %v1111_v62, %v1115_v63  ;;  %v1118_v5 = vld [vmem:[#allocation12 + $0x750] sm:$0xff] }
 0x33d   :  { %2759 = vmatprep.subr.bf16.mxu0 %v3356_v6  ;;  %v1122_v6 = vld [vmem:[#allocation12 + $0x770] sm:$0xff] }
 0x33e   :  { %v3417_v12 = vcombine.low %v1118_v5, %v1122_v6 }
 0x33f   :  { %2678 = vmatpush1.bf16.msra.mxu1 %v3353_v33  ;;  %v3418_v33 = vcombine.high %v1118_v5, %v1122_v6 }
 0x340   :  { %2760 = vmatpush1.bf16.msra.mxu0 %v3355_v35  ;;  %2679 = vmatprep.subr.bf16.mxu1 %v3362_v36  ;;  %v3420_v35 = vcombine.high %v1119_v7, %v1123_v8  ;;  %v1126_v36 = vld [vmem:[#allocation12 + $0x790] sm:$0xff] }
 0x341   :  { %2761 = vmatprep.subr.bf16.mxu0 %v3364_v9  ;;  %v1130_v9 = vld [vmem:[#allocation12 + $0x7b0] sm:$0xff] }
 0x342   :  { %v3425_v22 = vcombine.low %v1126_v36, %v1130_v9 }
 0x343   :  { %2680 = vmatpush1.bf16.msra.mxu1 %v3361_v45  ;;  %v3426_v45 = vcombine.high %v1126_v36, %v1130_v9 }
 0x344   :  { %2762 = vmatpush1.bf16.msra.mxu0 %v3363_v14  ;;  %2681 = vmatprep.subr.bf16.mxu1 %v3370_v17  ;;  %v3428_v14 = vcombine.high %v1127_v10, %v1131_v11  ;;  %v1134_v17 = vld [vmem:[#allocation12 + $0x7d0] sm:$0xff] }
 0x345   :  { %2763 = vmatprep.subr.bf16.mxu0 %v3372_v19  ;;  %v1138_v19 = vld [vmem:[#allocation12 + $0x7f0] sm:$0xff] }
 0x347   :  { %2682 = vmatpush1.bf16.msra.mxu1 %v3369_v24  ;;  %v3434_v24 = vcombine.high %v1134_v17, %v1138_v19 }
 0x348   :  { %2764 = vmatpush1.bf16.msra.mxu0 %v3371_v29  ;;  %2683 = vmatprep.subr.bf16.mxu1 %v3378_v30  ;;  %v3436_v29 = vcombine.high %v1135_v20, %v1139_v21  ;;  %v3433_v30 = vcombine.low %v1134_v17, %v1138_v19 }
 0x349   :  { %2765 = vmatprep.subr.bf16.mxu0 %v3380_v34  ;;  %v3435_v34 = vcombine.low %v1135_v20, %v1139_v21 }
 0x34b   :  { %2684 = vmatpush1.bf16.msra.mxu1 %v3377_v52  ;;  %v1157_v52 = vrot.slane %v4130_v38, %v4081_v41 }
 0x34c   :  { %2766 = vmatpush1.bf16.msra.mxu0 %v3379_v25  ;;  %2685 = vmatprep.subr.bf16.mxu1 %v3386_v44 }
 0x34d   :  { %2767 = vmatprep.subr.bf16.mxu0 %v3388_v46 }
 0x34f   :  { %2686 = vmatpush1.bf16.msra.mxu1 %v3385_v54 }
 0x350   :  { %2768 = vmatpush1.bf16.msra.mxu0 %v3387_v27  ;;  %2687 = vmatprep.subr.bf16.mxu1 %v3394_v55 }
 0x351   :  { %2769 = vmatprep.subr.bf16.mxu0 %v3396_v57 }
 0x353   :  { %2688 = vmatpush1.bf16.msra.mxu1 %v3393_v53 }
 0x354   :  { %2770 = vmatpush1.bf16.msra.mxu0 %v3395_v58  ;;  %2689 = vmatprep.subr.bf16.mxu1 %v3402_v0 }
 0x355   :  { %2771 = vmatprep.subr.bf16.mxu0 %v3404_v59 }
 0x357   :  { %2690 = vmatpush1.bf16.msra.mxu1 %v3401_v1 }
 0x358   :  { %2772 = vmatpush1.bf16.msra.mxu0 %v3403_v2  ;;  %2691 = vmatprep.subr.bf16.mxu1 %v3410_v3 }
 0x359   :  { %2773 = vmatprep.subr.bf16.mxu0 %v3412_v4 }
 0x35b   :  { %2692 = vmatpush1.bf16.msra.mxu1 %v3409_v31 }
 0x35c   :  { %2774 = vmatpush1.bf16.msra.mxu0 %v3411_v32  ;;  %2693 = vmatprep.subr.bf16.mxu1 %v3418_v33 }
 0x35d   :  { %2775 = vmatprep.subr.bf16.mxu0 %v3420_v35 }
 0x35f   :  { %2694 = vmatpush1.bf16.msra.mxu1 %v3417_v12 }
 0x360   :  { %2776 = vmatpush1.bf16.msra.mxu0 %v3419_v13  ;;  %2695 = vmatprep.subr.bf16.mxu1 %v3426_v45 }
 0x361   :  { %2777 = vmatprep.subr.bf16.mxu0 %v3428_v14 }
 0x363   :  { %2696 = vmatpush1.bf16.msra.mxu1 %v3425_v22 }
 0x364   :  { %2778 = vmatpush1.bf16.msra.mxu0 %v3427_v23  ;;  %2697 = vmatprep.subr.bf16.mxu1 %v3434_v24 }
 0x365   :  { %2779 = vmatprep.subr.bf16.mxu0 %v3436_v29 }
 0x367   :  { %2698 = vmatpush1.bf16.msra.mxu1 %v3433_v30 }
 0x368   :  { %2780 = vmatpush1.bf16.msra.mxu0 %v3435_v34 }
 0x36a   :  { %2700 = vmatmul.mubr.bf16.vlgmr.msra.gmra.mrb[8].mxu1 %v4118_v37 }
 0x36b   :  { %2782 = vmatmul.mubr.bf16.vlgmr.msra.gmra.mrb[12].mxu0 %v4118_v37 }
 0x3bd   :  { %v2537_v25 = vpop.f32.mrb[4].mxu1  ;;  %v2619_v44 = vpop.f32.mrb[8].mxu0 }
 0x3be   :  { %v3445_v46 = vadd.f32 %v2537_v25, %v1145_v40  ;;  %v3447_v47 = vadd.f32 %v2619_v44, %v1153_v42  ;;  %v2539_v26 = vpop.f32.mrb[5].mxu1  ;;  %v2621_v37 = vpop.f32.mrb[9].mxu0 }
 0x3bf   :  { %v3446_v50 = vadd.f32 %v2539_v26, %v1149_v43  ;;  %v3448_v51 = vadd.f32 %v2621_v37, %v1157_v52  ;;  %v2541_v54 = vpop.f32.mrb[6].mxu1  ;;  %v2623_v27 = vpop.f32.mrb[10].mxu0 }
 0x3c0   :  { %v2792_v55 = vrot.slane %v3445_v46, 4  ;;  %v2804_v57 = vrot.slane %v3447_v47, 4  ;;  %v2542_v56 = vpop.f32.mrb[7].mxu1  ;;  %v2624_v48 = vpop.f32.mrb[11].mxu0 }
 0x3c1   :  { %v2798_v28 = vrot.slane %v3446_v50, 4  ;;  %v2810_v49 = vrot.slane %v3448_v51, 4 }
 0x3c2   :  { %v2793_v53 = vadd.f32 %v3445_v46, %v2792_v55  ;;  %v2805_v58 = vadd.f32 %v3447_v47, %v2804_v57 }
 0x3c3   :  { %v2799_v0 = vadd.f32 %v3446_v50, %v2798_v28  ;;  %v2811_v59 = vadd.f32 %v3448_v51, %v2810_v49 }
 0x3c4   :  { %v2794_v60 = vrot.slane %v2793_v53, 2  ;;  %v2806_v61 = vrot.slane %v2805_v58, 2 }
 0x3c5   :  { %v2800_v62 = vrot.slane %v2799_v0, 2  ;;  %v2812_v63 = vrot.slane %v2811_v59, 2 }
 0x3c6   :  { %v2795_v1 = vadd.f32 %v2794_v60, %v2793_v53  ;;  %v2807_v2 = vadd.f32 %v2806_v61, %v2805_v58 }
 0x3c7   :  { %v2801_v3 = vadd.f32 %v2800_v62, %v2799_v0  ;;  %v2813_v4 = vadd.f32 %v2812_v63, %v2811_v59  ;;  %v4140_v62 = vld [vmem:[#allocation15] sm:$0xff]  ;;  %v4142_v63 = vld [vmem:[#allocation16] sm:$0xff] }
 0x3c8   :  { %v2796_v5 = vrot.slane %v2795_v1, 1  ;;  %v2808_v6 = vrot.slane %v2807_v2, 1 }
 0x3c9   :  { %v2802_v7 = vrot.slane %v2801_v3, 1  ;;  %v2814_v8 = vrot.slane %v2813_v4, 1 }
 0x3ca   :  { %v2797_v31 = vadd.f32 %v2796_v5, %v2795_v1  ;;  %v2809_v32 = vadd.f32 %v2808_v6, %v2807_v2  ;;  %v2948_v1 = vrot.slane %v4140_v62, %v4054_v16  ;;  %v2997_v6 = vrot.slane %v4142_v63, %v4054_v16 }
 0x3cb   :  { %v2803_v33 = vadd.f32 %v2802_v7, %v2801_v3  ;;  %v2815_v35 = vadd.f32 %v2814_v8, %v2813_v4  ;;  %v2956_v3 = vrot.slane %v4140_v62, %v4078_v39  ;;  %v2952_v7 = vrot.slane %v4140_v62, %v4057_v18 }
 0x3cc   :  { %v2840_v36 = vmul.f32 0.125, %v2797_v31  ;;  %v2842_v9 = vmul.f32 0.125, %v2809_v32  ;;  %v3005_v32 = vrot.slane %v4142_v63, %v4078_v39  ;;  %v3009_v16 = vrot.slane %v4142_v63, %v4081_v41 }
 0x3cd   :  { %v2841_v10 = vmul.f32 0.125, %v2803_v33  ;;  %v2843_v11 = vmul.f32 0.125, %v2815_v35  ;;  %v2960_v33 = vrot.slane %v4140_v62, %v4081_v41 }
 0x3ce   :  { %v2848_v12 = vsub.f32 %v3445_v46, %v2840_v36  ;;  %v2850_v13 = vsub.f32 %v3447_v47, %v2842_v9 }
 0x3cf   :  { %v2849_v45 = vsub.f32 %v3446_v50, %v2841_v10  ;;  %v2851_v14 = vsub.f32 %v3448_v51, %v2843_v11  ;;  %v3001_v10 = vrot.slane %v4142_v63, %v4057_v18 }
 0x3d0   :  { %v2856_v17 = vmul.f32 %v2848_v12, %v2848_v12  ;;  %v2858_v19 = vmul.f32 %v2850_v13, %v2850_v13 }
 0x3d1   :  { %v2857_v20 = vmul.f32 %v2849_v45, %v2849_v45  ;;  %v2859_v21 = vmul.f32 %v2851_v14, %v2851_v14 }
 0x3d2   :  { %v2864_v22 = vrot.slane %v2856_v17, 4  ;;  %v2876_v23 = vrot.slane %v2858_v19, 4 }
 0x3d3   :  { %v2870_v24 = vrot.slane %v2857_v20, 4  ;;  %v2882_v29 = vrot.slane %v2859_v21, 4 }
 0x3d4   :  { %v2865_v30 = vadd.f32 %v2864_v22, %v2856_v17  ;;  %v2877_v34 = vadd.f32 %v2876_v23, %v2858_v19 }
 0x3d5   :  { %v2871_v40 = vadd.f32 %v2870_v24, %v2857_v20  ;;  %v2883_v42 = vadd.f32 %v2882_v29, %v2859_v21 }
 0x3d6   :  { %v2866_v43 = vrot.slane %v2865_v30, 2  ;;  %v2878_v52 = vrot.slane %v2877_v34, 2 }
 0x3d7   :  { %v2872_v25 = vrot.slane %v2871_v40, 2  ;;  %v2884_v44 = vrot.slane %v2883_v42, 2 }
 0x3d8   :  { %v2867_v46 = vadd.f32 %v2866_v43, %v2865_v30  ;;  %v2879_v47 = vadd.f32 %v2878_v52, %v2877_v34  ;;  %v4173_v43 = vsub.s32 5, %v4051_v15  ;;  %v4176_v52 = vsub.s32 7, %v4051_v15 }
 0x3d9   :  { %v2873_v26 = vadd.f32 %v2872_v25, %v2871_v40  ;;  %v2885_v37 = vadd.f32 %v2884_v44, %v2883_v42  ;;  %v4167_v40 = vsub.s32 4, %v4051_v15  ;;  %v4170_v42 = vsub.s32 6, %v4051_v15 }
 0x3da   :  { %v2868_v50 = vrot.slane %v2867_v46, 1  ;;  %v2880_v51 = vrot.slane %v2879_v47, 1 }
 0x3db   :  { %v2874_v54 = vrot.slane %v2873_v26, 1  ;;  %v2886_v27 = vrot.slane %v2885_v37, 1  ;;  %v1161_v25 = vrot.slane %v4130_v38, %v4167_v40  ;;  %v1169_v44 = vrot.slane %v4130_v38, %v4170_v42 }
 0x3dc   :  { %v2869_v55 = vadd.f32 %v2868_v50, %v2867_v46  ;;  %v2881_v57 = vadd.f32 %v2880_v51, %v2879_v47  ;;  %v1165_v46 = vrot.slane %v4130_v38, %v4173_v43  ;;  %v1173_v47 = vrot.slane %v4130_v38, %v4176_v52 }
 0x3dd   :  { %v2875_v56 = vadd.f32 %v2874_v54, %v2873_v26  ;;  %v2887_v48 = vadd.f32 %v2886_v27, %v2885_v37 }
 0x3de   :  { %v2912_v28 = vmul.f32 0.125, %v2869_v55  ;;  %v2914_v49 = vmul.f32 0.125, %v2881_v57 }
 0x3df   :  { %v2913_v53 = vmul.f32 0.125, %v2875_v56  ;;  %v2915_v58 = vmul.f32 0.125, %v2887_v48 }
 0x3e0   :  { %v2920_v0 = vadd.f32 0.9, %v2912_v28  ;;  %v2922_v59 = vadd.f32 0.9, %v2914_v49 }
 0x3e1   :  { %v2921_v60 = vadd.f32 0.9, %v2913_v53  ;;  %v2923_v61 = vadd.f32 0.9, %v2915_v58 }
 0x3e2   :  { %3596 = vrsqrt.f32 %v2920_v0 }
 0x3e3   :  { %3598 = vrsqrt.f32 %v2922_v59 }
 0x3e4   :  { %3600 = vrsqrt.f32 %v2921_v60 }
 0x3e5   :  { %3602 = vrsqrt.f32 %v2923_v61 }
 0x3ec   :  { %v3597_v2 = vpop.eup %3596 }
 0x3ed   :  { %v3599_v4 = vpop.eup %3598  ;;  %v2936_v5 = vmul.f32 %v3597_v2, %v2848_v12 }
 0x3ee   :  { %v3601_v8 = vpop.eup %3600  ;;  %v2938_v31 = vmul.f32 %v3599_v4, %v2850_v13 }
 0x3ef   :  { %v3603_v35 = vpop.eup %3602  ;;  %v2985_v36 = vmul.f32 %v2948_v1, %v2936_v5  ;;  %v2937_v9 = vmul.f32 %v3601_v8, %v2849_v45 }
 0x3f0   :  { %v2987_v11 = vmul.f32 %v2956_v3, %v2938_v31  ;;  %v2939_v12 = vmul.f32 %v3603_v35, %v2851_v14 }
 0x3f1   :  { %v3034_v17 = vadd.f32 %v2997_v6, %v2985_v36  ;;  %v2986_v19 = vmul.f32 %v2952_v7, %v2937_v9 }
 0x3f2   :  { %v3036_v13 = vadd.f32 %v3005_v32, %v2987_v11  ;;  %v2988_v20 = vmul.f32 %v2960_v33, %v2939_v12 }
 0x3f3   :  { %vm3042_vm7 = vcmp.ge.f32.partialorder %v3034_v17, 0.0  ;;  %v3050_v39 = vmul.f32 0.2, %v3034_v17  ;;  %v3035_v21 = vadd.f32 %v3001_v10, %v2986_v19 }
 0x3f4   :  { %vm3044_vm8 = vcmp.ge.f32.partialorder %v3036_v13, 0.0  ;;  %v3052_v22 = vmul.f32 0.2, %v3036_v13  ;;  %v3037_v23 = vadd.f32 %v3009_v16, %v2988_v20 }
 0x3f5   :  { %v3058_v24 = vsel %vm3042_vm7, %v3034_v17, %v3050_v39  ;;  %vm3043_vm9 = vcmp.ge.f32.partialorder %v3035_v21, 0.0  ;;  %v3051_v45 = vmul.f32 0.2, %v3035_v21 }
 0x3f6   :  { %v3060_v29 = vsel %vm3044_vm8, %v3036_v13, %v3052_v22  ;;  %vm3045_vm10 = vcmp.ge.f32.partialorder %v3037_v23, 0.0  ;;  %v3053_v18 = vmul.f32 0.2, %v3037_v23 }
 0x3f7   :  { %v3059_v14 = vsel %vm3043_vm9, %v3035_v21, %v3051_v45 }
 0x3f8   :  { %v3441_v30 = vpack.c.bf16 %v3059_v14, %v3058_v24  ;;  %v3061_v34 = vsel %vm3045_vm10, %v3037_v23, %v3053_v18 }
 0x3f9   :  { %v3442_v41 = vpack.c.bf16 %v3061_v34, %v3060_v29 }
 0x3fa   :  { %3098 = vst [vmem:[%s4219_s11] sm:$0xff] %v3441_v30 }
 0x3fb   :  { %3099 = vst [vmem:[%s4219_s11 + $0x8] sm:$0xff] %v3442_v41 }
 0x43d   :  { %v2701_v26 = vpop.f32.mrb[8].mxu1 }
 0x43e   :  { %v3449_v37 = vadd.f32 %v2701_v26, %v1161_v25  ;;  %v2783_v50 = vpop.f32.mrb[12].mxu0  ;;  %v2703_v51 = vpop.f32.mrb[9].mxu1 }
 0x43f   :  { %v3451_v54 = vadd.f32 %v2783_v50, %v1169_v44  ;;  %v3450_v27 = vadd.f32 %v2703_v51, %v1165_v46  ;;  %v2785_v15 = vpop.f32.mrb[13].mxu0  ;;  %v2705_v55 = vpop.f32.mrb[10].mxu1 }
 0x440   :  { %v2816_v57 = vrot.slane %v3449_v37, 4  ;;  %v3452_v56 = vadd.f32 %v2785_v15, %v1173_v47  ;;  %v2787_v48 = vpop.f32.mrb[14].mxu0  ;;  %v2706_v28 = vpop.f32.mrb[11].mxu1 }
 0x441   :  { %v2828_v49 = vrot.slane %v3451_v54, 4  ;;  %v2822_v53 = vrot.slane %v3450_v27, 4  ;;  %v2788_v58 = vpop.f32.mrb[15].mxu0 }
 0x442   :  { %v2817_v0 = vadd.f32 %v3449_v37, %v2816_v57  ;;  %v2834_v59 = vrot.slane %v3452_v56, 4 }
 0x443   :  { %v2829_v60 = vadd.f32 %v3451_v54, %v2828_v49  ;;  %v2823_v61 = vadd.f32 %v3450_v27, %v2822_v53 }
 0x444   :  { %v2818_v38 = vrot.slane %v2817_v0, 2  ;;  %v2835_v1 = vadd.f32 %v3452_v56, %v2834_v59 }
 0x445   :  { %v2830_v2 = vrot.slane %v2829_v60, 2  ;;  %v2824_v3 = vrot.slane %v2823_v61, 2 }
 0x446   :  { %v2819_v4 = vadd.f32 %v2818_v38, %v2817_v0  ;;  %v2836_v5 = vrot.slane %v2835_v1, 2 }
 0x447   :  { %v2831_v6 = vadd.f32 %v2830_v2, %v2829_v60  ;;  %v2825_v7 = vadd.f32 %v2824_v3, %v2823_v61  ;;  %v2964_v3 = vrot.slane %v4140_v62, %v4167_v40 }
 0x448   :  { %v2820_v8 = vrot.slane %v2819_v4, 1  ;;  %v2837_v31 = vadd.f32 %v2836_v5, %v2835_v1  ;;  %v2972_v5 = vrot.slane %v4140_v62, %v4170_v42 }
 0x449   :  { %v2832_v32 = vrot.slane %v2831_v6, 1  ;;  %v2826_v33 = vrot.slane %v2825_v7, 1 }
 0x44a   :  { %v2821_v35 = vadd.f32 %v2820_v8, %v2819_v4  ;;  %v2838_v36 = vrot.slane %v2837_v31, 1  ;;  %v3013_v8 = vrot.slane %v4142_v63, %v4167_v40  ;;  %v3025_v40 = vrot.slane %v4142_v63, %v4176_v52 }
 0x44b   :  { %v2833_v9 = vadd.f32 %v2832_v32, %v2831_v6  ;;  %v2827_v10 = vadd.f32 %v2826_v33, %v2825_v7 }
 0x44c   :  { %v2844_v11 = vmul.f32 0.125, %v2821_v35  ;;  %v2839_v12 = vadd.f32 %v2838_v36, %v2837_v31  ;;  %v2968_v31 = vrot.slane %v4140_v62, %v4173_v43  ;;  %v3021_v35 = vrot.slane %v4142_v63, %v4170_v42 }
 0x44d   :  { %v2846_v16 = vmul.f32 0.125, %v2833_v9  ;;  %v2845_v17 = vmul.f32 0.125, %v2827_v10  ;;  %v2976_v36 = vrot.slane %v4140_v62, %v4176_v52 }
 0x44e   :  { %v2852_v19 = vsub.f32 %v3449_v37, %v2844_v11  ;;  %v2847_v13 = vmul.f32 0.125, %v2839_v12  ;;  %v3017_v12 = vrot.slane %v4142_v63, %v4173_v43 }
 0x44f   :  { %v2854_v20 = vsub.f32 %v3451_v54, %v2846_v16  ;;  %v2853_v39 = vsub.f32 %v3450_v27, %v2845_v17 }
 0x450   :  { %v2860_v21 = vmul.f32 %v2852_v19, %v2852_v19  ;;  %v2855_v22 = vsub.f32 %v3452_v56, %v2847_v13 }
 0x451   :  { %v2862_v23 = vmul.f32 %v2854_v20, %v2854_v20  ;;  %v2861_v24 = vmul.f32 %v2853_v39, %v2853_v39 }
 0x452   :  { %v2888_v45 = vrot.slane %v2860_v21, 4  ;;  %v2863_v29 = vmul.f32 %v2855_v22, %v2855_v22 }
 0x453   :  { %v2900_v18 = vrot.slane %v2862_v23, 4  ;;  %v2894_v14 = vrot.slane %v2861_v24, 4 }
 0x454   :  { %v2889_v30 = vadd.f32 %v2888_v45, %v2860_v21  ;;  %v2906_v34 = vrot.slane %v2863_v29, 4 }
 0x455   :  { %v2901_v41 = vadd.f32 %v2900_v18, %v2862_v23  ;;  %v2895_v25 = vadd.f32 %v2894_v14, %v2861_v24 }
 0x456   :  { %v2890_v44 = vrot.slane %v2889_v30, 2  ;;  %v2907_v46 = vadd.f32 %v2906_v34, %v2863_v29 }
 0x457   :  { %v2902_v47 = vrot.slane %v2901_v41, 2  ;;  %v2896_v26 = vrot.slane %v2895_v25, 2 }
 0x458   :  { %v2891_v37 = vadd.f32 %v2890_v44, %v2889_v30  ;;  %v2908_v50 = vrot.slane %v2907_v46, 2 }
 0x459   :  { %v2903_v51 = vadd.f32 %v2902_v47, %v2901_v41  ;;  %v2897_v54 = vadd.f32 %v2896_v26, %v2895_v25 }
 0x45a   :  { %v2892_v27 = vrot.slane %v2891_v37, 1  ;;  %v2909_v15 = vadd.f32 %v2908_v50, %v2907_v46 }
 0x45b   :  { %v2904_v55 = vrot.slane %v2903_v51, 1  ;;  %v2898_v57 = vrot.slane %v2897_v54, 1 }
 0x45c   :  { %v2893_v56 = vadd.f32 %v2892_v27, %v2891_v37  ;;  %v2910_v48 = vrot.slane %v2909_v15, 1 }
 0x45d   :  { %v2905_v28 = vadd.f32 %v2904_v55, %v2903_v51  ;;  %v2899_v49 = vadd.f32 %v2898_v57, %v2897_v54 }
 0x45e   :  { %v2916_v53 = vmul.f32 0.125, %v2893_v56  ;;  %v2911_v58 = vadd.f32 %v2910_v48, %v2909_v15 }
 0x45f   :  { %v2918_v0 = vmul.f32 0.125, %v2905_v28  ;;  %v2917_v59 = vmul.f32 0.125, %v2899_v49 }
 0x460   :  { %v2924_v60 = vadd.f32 0.9, %v2916_v53  ;;  %v2919_v61 = vmul.f32 0.125, %v2911_v58 }
 0x461   :  { %v2926_v38 = vadd.f32 0.9, %v2918_v0  ;;  %v2925_v1 = vadd.f32 0.9, %v2917_v59 }
 0x462   :  { %3604 = vrsqrt.f32 %v2924_v60  ;;  %v2927_v2 = vadd.f32 0.9, %v2919_v61 }
 0x463   :  { %3606 = vrsqrt.f32 %v2926_v38 }
 0x464   :  { %3608 = vrsqrt.f32 %v2925_v1 }
 0x465   :  { %3610 = vrsqrt.f32 %v2927_v2 }
 0x46c   :  { %v3605_v4 = vpop.eup %3604 }
 0x46d   :  { %v3607_v6 = vpop.eup %3606  ;;  %v2940_v7 = vmul.f32 %v3605_v4, %v2852_v19 }
 0x46e   :  { %v3609_v32 = vpop.eup %3608  ;;  %v2942_v33 = vmul.f32 %v3607_v6, %v2854_v20 }
 0x46f   :  { %v3611_v9 = vpop.eup %3610  ;;  %v2989_v10 = vmul.f32 %v2964_v3, %v2940_v7  ;;  %v2941_v11 = vmul.f32 %v3609_v32, %v2853_v39 }
 0x470   :  { %v2991_v16 = vmul.f32 %v2972_v5, %v2942_v33  ;;  %v2943_v17 = vmul.f32 %v3611_v9, %v2855_v22 }
 0x471   :  { %v3038_v19 = vadd.f32 %v3013_v8, %v2989_v10  ;;  %v2990_v13 = vmul.f32 %v2968_v31, %v2941_v11 }
 0x472   :  { %v3040_v20 = vadd.f32 %v3021_v35, %v2991_v16  ;;  %v2992_v21 = vmul.f32 %v2976_v36, %v2943_v17 }
 0x473   :  { %vm3046_vm11 = vcmp.ge.f32.partialorder %v3038_v19, 0.0  ;;  %v3054_v42 = vmul.f32 0.2, %v3038_v19  ;;  %v3039_v23 = vadd.f32 %v3017_v12, %v2990_v13 }
 0x474   :  { %vm3048_vm12 = vcmp.ge.f32.partialorder %v3040_v20, 0.0  ;;  %v3056_v62 = vmul.f32 0.2, %v3040_v20  ;;  %v3041_v24 = vadd.f32 %v3025_v40, %v2992_v21 }
 0x475   :  { %v3062_v45 = vsel %vm3046_vm11, %v3038_v19, %v3054_v42  ;;  %vm3047_vm13 = vcmp.ge.f32.partialorder %v3039_v23, 0.0  ;;  %v3055_v39 = vmul.f32 0.2, %v3039_v23 }
 0x476   :  { %v3064_v29 = vsel %vm3048_vm12, %v3040_v20, %v3056_v62  ;;  %vm3049_vm14 = vcmp.ge.f32.partialorder %v3041_v24, 0.0  ;;  %v3057_v43 = vmul.f32 0.2, %v3041_v24 }
 0x477   :  { %v3063_v22 = vsel %vm3047_vm13, %v3039_v23, %v3055_v39 }
 0x478   :  { %v3443_v18 = vpack.c.bf16 %v3063_v22, %v3062_v45  ;;  %v3065_v14 = vsel %vm3049_vm14, %v3041_v24, %v3057_v43 }
 0x479   :  { %v3444_v63 = vpack.c.bf16 %v3065_v14, %v3064_v29 }
 0x47a   :  { %3100 = vst [vmem:[%s4219_s11 + $0x10] sm:$0xff] %v3443_v18 }
 0x47b   :  { %3101 = vst [vmem:[%s4219_s11 + $0x18] sm:$0xff] %v3444_v63 }
 0x47c   :  { %3106 = vsyncpa [#allocation3], 1 }
 0x47d   :  { %3107 = vsyncpa [#allocation5], 1 }
 0x47e   :  { %3108 = vsyncpa [#allocation8], 1 }
 0x47f   :  { %3109 = vsyncpa [#allocation11], 1 }
 0x480   :  { %3110 = vsyncpa [#allocation14], 1 }
 0x481   :  { %3111 = vsyncpa [#allocation17], 1 }

// kernel: advanced_generator_forward.3
= control target key start
LH: loop header
LB: loop body
LE: loop exit
PB: predicated region body
PF: predicated region fallthrough
CT: control target
= control target key end

     0   :  { %8 = vsyncpa [#allocation3], 0  ;;  %s5713_s0 = inlined_call_operand.vmem [shape: bf16[8,1024], index: 0, kind: input, shape index: {}]   ;;  %s5714_s1 = inlined_call_operand.hbm [shape: bf16[1024,3072], index: 1, kind: input, shape index: {}]   ;;  %s5715_s2 = inlined_call_operand.hbm [shape: f32[1,3072], index: 2, kind: input, shape index: {}]   ;;  %s5716_s3 = inlined_call_operand.vmem [shape: f32[8,3072], index: 3, kind: output, shape index: {}]  }
   0x1   :  { %10 = vsyncpa [#allocation3 + $0x1], 0 }
   0x2   :  { %11 = vsyncpa [#allocation5], 0 }
   0x3   :  { %13 = vsyncpa [#allocation5 + $0x1], 0  ;;  %s4931_s12 = smov 0   ;;  %s4933_s13 = smov 0  }
   0x4   :  { %s4935_s14 = smov 0   ;;  %s4937_s15 = smov 0  }
   0x5 LB: > { %s4140_s16 = sadd.s32 4294967295, %s4904_s15   ;;  %s4951_s17 = sadd.s32 1, %s4904_s15   ;;  %s4904_s15 = sphi %s4937_s15, %s5726_s15   ;;  %s4900_s14 = sphi %s4935_s14, %s5725_s14   ;;  %s4896_s13 = sphi %s4933_s13, %s5724_s13   ;;  %s4892_s12 = sphi %s4931_s12, %s5723_s12  }
   0x6   : > { %s44_s18 = ssub.s32 %s4904_s15, %s4951_s17  ;;  %s47_s19 = sadd.s32 1, %s4900_s14 }
   0x7   : > { %p45_p0 = scmp.eq.s32.totalorder %s44_s18, 0  ;;  %p54_p1 = scmp.ne.s32.totalorder %s4900_s14, %s4896_s13 }
   0x8   : > { %p55_p2 = scmp.eq.s32.totalorder %s4904_s15, 0  ;;  %p60_p3 = scmp.ne.s32.totalorder %s4896_s13, %s4892_s12 }
   0x9   : > { %s4961_s20 = scalar_select %p45_p0, %s4900_s14, %s47_s19  }
   0xa   : > { %p56_p4 = por %p55_p2, %p54_p1  ;;  %p61_p5 = scmp.eq.s32.totalorder %s4140_s16, 0 }
   0xb   : > { %p4746_p6 = scmp.lt.s32.totalorder %s4904_s15, 3  ;;  %s4971_s22 = sand.u32 1, %s4900_s14  }
   0xc   : > { %p4966_p7 = por %p61_p5, %p60_p3  ;;  %s4144_s23 = sshll.u32 %s4971_s22, 12 }
   0xd   : > { %s4677_s24 = sshll.u32 %s4904_s15, 9  ;;  %s143_s28 = scalar_lea.vmem [#allocation2], %s4144_s23 }
   0xe   : > { %s5718_s21 = scalar_select %p4966_p7, 1, 0 }
   0xf   : > { %s4978_s27 = scalar_lea.hbm %s5714_s1, %s4677_s24  ;;  %s150_s29 = sshll.u32 %s143_s28, 4  ;;  %s4980_s29 = int_to_ptr.vmem [resolvable:$true] %s150_s29 }
  0x10   : > { %p4982_p8 = pnand %p4746_p6, %p56_p4  ;;  %s140_s4 = scalar_lea.sflag [#allocation3], %s4971_s22 }
  0x11   : > { %s4806_s5 = scalar_lea.hbm %s4978_s27, 65536  ;;  %s4811_s8 = scalar_lea.hbm %s5714_s1, 196608 }
  0x12   : > { %p4807_p9 = scmp.ne.s32.totalorder %s4978_s27, %s4806_s5  ;;  %p4808_p10 = pneg %p4982_p8 }
  0x13   : > { %p4812_p13 = scmp.lt.u32.totalorder %s4978_s27, %s5714_s1  ;;  %p4813_p0 = scmp.lt.u32.totalorder %s4811_s8, %s4806_s5 }
  0x14   : > { %p4809_p11 = pnand %p4808_p10, %p4807_p9  ;;  %p4815_p2 = scmp.lt.u32.totalorder %s4806_s5, %s4978_s27 }
  0x15   : > { %p4814_p1 = por %p4813_p0, %p4812_p13 }
  0x16   : > { %p4810_p12 = pneg %p4809_p11 }
  0x17   : > { %p4816_p3 = por %p4815_p2, %p4814_p1 }
  0x19   : > { %p4817_p4 = pnand %p4816_p3, %p4810_p12 }
  0x1b   : > { %4820 = shalt.err (!%p4817_p4)
}
  0x1c   : > { %s4821_s11 = scalar_lea.vmem %s4980_s29, 65536  ;;  %s4906_s12 = smov [#allocation2]  }
  0x1d   : > { %p4822_p5 = scmp.ne.s32.totalorder %s4980_s29, %s4821_s11  ;;  %s4826_s18 = sshll.u32 %s4906_s12, 4  ;;  %s4827_s18 = int_to_ptr.vmem [resolvable:$false] %s4826_s18 }
  0x1e   : > { %s4828_s19 = scalar_lea.vmem %s4827_s18, 131072  ;;  %p4829_p11 = scmp.lt.s32.totalorder %s4980_s29, %s4827_s18 }
  0x1f   : > { %p4824_p6 = pnand %p4822_p5, %p4808_p10  ;;  %p4830_p13 = scmp.lt.s32.totalorder %s4828_s19, %s4821_s11 }
  0x21   : > { %p4825_p9 = pneg %p4824_p6  ;;  %p4831_p0 = por %p4830_p13, %p4829_p11 }
  0x23   : > { %p4832_p1 = pnand %p4831_p0, %p4825_p9 }
  0x25   : > { %4835 = shalt.err (!%p4832_p1)
}
  0x26   : > { %s4907_s23 = smov 1536   ;;  %s4908_s24 = smov 512  }
  0x27   : > { %s4909_s25 = smov 32   ;;  %p4150_p12 = scmp.ge.s32.totalorder %s4904_s15, 1 }
  0x28   : > { %4742 = dma.hbm_to_vmem [thread:$0]  (!%p4982_p8), %s4978_s27, 65536, %s4980_s29, %s140_s4, %s4907_s23, %s4908_s24, %s4909_s25  }
  0x29   : > { %p177_p2 = scmp.lt.s32.totalorder %s4904_s15, 4  ;;  %s4147_s26 = sshll.u32 %s4971_s22, 3 }
  0x2a   : > { %s4678_s5 = sshll.u32 %s4904_s15, 7  ;;  %s164_s6 = scalar_lea.vmem [#allocation4], %s4147_s26 }
  0x2b   : > { %p5017_p3 = pnand %p4150_p12, %p177_p2  ;;  %s172_s7 = sshll.u32 %s164_s6, 4  ;;  %s173_s7 = int_to_ptr.vmem [resolvable:$true] %s172_s7 }
  0x2c   : > { %s5025_s10 = scalar_lea.hbm %s5715_s2, %s4678_s5  ;;  %s161_s27 = scalar_lea.sflag [#allocation5], %s4971_s22 }
  0x2d   : > { %s5720_s28 = scalar_select %p5017_p3, 1, 0 }
  0x2e   : > { %s4836_s29 = scalar_lea.hbm %s5025_s10, 128  ;;  %s4841_s12 = scalar_lea.hbm %s5715_s2, 384 }
  0x2f   : > { %p4837_p4 = scmp.ne.s32.totalorder %s5025_s10, %s4836_s29  ;;  %p4842_p9 = scmp.lt.u32.totalorder %s5025_s10, %s5715_s2 }
  0x30   : > { %p4843_p11 = scmp.lt.u32.totalorder %s4841_s12, %s4836_s29  ;;  %p4845_p0 = scmp.lt.u32.totalorder %s4836_s29, %s5025_s10 }
  0x31   : > { %p4839_p5 = pnand %p4837_p4, %p4808_p10 }
  0x32   : > { %p4844_p13 = por %p4843_p11, %p4842_p9 }
  0x33   : > { %p4840_p6 = pneg %p4839_p5 }
  0x34   : > { %p4846_p1 = por %p4845_p0, %p4844_p13 }
  0x36   : > { %p4847_p12 = pnand %p4846_p1, %p4840_p6 }
  0x38   : > { %4850 = shalt.err (!%p4847_p12)
}
  0x39   : > { %s4851_s22 = scalar_lea.vmem %s173_s7, 128  ;;  %s4910_s23 = smov [#allocation4]  }
  0x3a   : > { %p4852_p2 = scmp.ne.s32.totalorder %s173_s7, %s4851_s22  ;;  %s4856_s24 = sshll.u32 %s4910_s23, 4  ;;  %s4857_s24 = int_to_ptr.vmem [resolvable:$false] %s4856_s24 }
  0x3b   : > { %s4858_s25 = scalar_lea.vmem %s4857_s24, 256  ;;  %p4859_p7 = scmp.lt.s32.totalorder %s173_s7, %s4857_s24 }
  0x3c   : > { %p4854_p4 = pnand %p4852_p2, %p4808_p10  ;;  %p4860_p3 = scmp.lt.s32.totalorder %s4858_s25, %s4851_s22 }
  0x3e   : > { %p4855_p5 = pneg %p4854_p4  ;;  %p4861_p9 = por %p4860_p3, %p4859_p7 }
  0x40   : > { %p4862_p11 = pnand %p4861_p9, %p4855_p5 }
  0x42   : > { %4865 = shalt.err (!%p4862_p11)
}
  0x43   : > { %4745 = dma.hbm_to_vmem [thread:$0]  (!%p4982_p8), %s5025_s10, 128, %s173_s7, %s161_s27  }
  0x44   : > { %p5721_p6 = scmp.ne.s32.totalorder %s5720_s28, 0 }
  0x45   : > { %s183_s26 = sand.u32 (!%p5721_p6), 1, %s4896_s13   ;;  %p5722_p10 = scmp.ne.s32.totalorder (!%p5721_p6), %s5718_s21, 0 }
  0x46   : > { %181 = sbr.rel (%p5721_p6) target bundleno = 826 (0x33a), region = 32  ;;  %s4151_s5 = sshll.u32 (!%p5721_p6), %s183_s26, 12 }
  0x47   : > { %s184_s6 = scalar_lea.sflag (!%p5721_p6), [#allocation3], %s183_s26  ;;  %s5050_s8 = scalar_lea.vmem (!%p5721_p6), [#allocation2], %s4151_s5 }
  0x4d   : > { %4883 = dma.done.wait (%p5722_p10), %s184_s6, 65536  }
  0x4e   : > { %4885 = vsyncadd (%p5722_p10), %s184_s6, 4294901760  ;;  %s4152_s9 = sshll.u32 %s183_s26, 3  ;;  %s193_s30 = scalar_lea.sflag [#allocation5], %s183_s26 }
  0x4f   : > { %s5056_s29 = scalar_lea.vmem [#allocation4], %s4152_s9 }
  0x50   : > { %4887 = dma.done.wait (%p5722_p10), %s193_s30, 128  }
  0x51   : > { %4889 = vsyncadd (%p5722_p10), %s193_s30, 4294967168  ;;  %v236_v0 = vld [vmem:[%s5050_s8] sm:$0xff]  ;;  %v237_v2 = vld [vmem:[%s5050_s8 + $0x8] sm:$0xff]  ;;  %s5629_s18 = sshll.u32 %s4140_s16, 3 }
  0x52   : > { %v240_v1 = vld [vmem:[%s5050_s8 + $0x20] sm:$0xff]  ;;  %v241_v4 = vld [vmem:[%s5050_s8 + $0x28] sm:$0xff]  ;;  %p227_p7 = scmp.lt.s32.totalorder %s5629_s18, 23 }
  0x53   : > { %v4164_v3 = vcombine.high %v236_v0, %v240_v1  ;;  %v4163_v5 = vcombine.low %v236_v0, %v240_v1  ;;  %v244_v6 = vld [vmem:[%s5050_s8 + $0x40] sm:$0xff]  ;;  %v4166_v8 = vcombine.high %v237_v2, %v241_v4  ;;  %v4165_v9 = vcombine.low %v237_v2, %v241_v4  ;;  %v245_v11 = vld [vmem:[%s5050_s8 + $0x48] sm:$0xff] }
  0x54   : > { %v248_v7 = vld [vmem:[%s5050_s8 + $0x60] sm:$0xff]  ;;  %v249_v12 = vld [vmem:[%s5050_s8 + $0x68] sm:$0xff]  ;;  %s5728_s18 = smov (!%p227_p7, %s5629_s18), 23 }
  0x55   : > { %v4172_v10 = vcombine.high %v244_v6, %v248_v7  ;;  %v252_v13 = vld [vmem:[%s5050_s8 + $0x80] sm:$0xff]  ;;  %3378 = vmatprep.subr.bf16.mxu0 %v4164_v3  ;;  %v4174_v14 = vcombine.high %v245_v11, %v249_v12  ;;  %v253_v16 = vld [vmem:[%s5050_s8 + $0x88] sm:$0xff]  ;;  %3542 = vmatprep.subr.bf16.mxu1 %v4166_v8  ;;  %v4171_v18 = vcombine.low %v244_v6, %v248_v7  ;;  %s4154_s15 = sshll.u32 %s5728_s18, 3 }
  0x56   : > { %v256_v15 = vld [vmem:[%s5050_s8 + $0xa0] sm:$0xff]  ;;  %v257_v17 = vld [vmem:[%s5050_s8 + $0xa8] sm:$0xff]  ;;  %3379 = vmatpush1.bf16.msra.mxu0 %v4163_v5  ;;  %3543 = vmatpush1.bf16.msra.mxu1 %v4165_v9  ;;  %v4173_v19 = vcombine.low %v245_v11, %v249_v12  ;;  %s5656_s22 = scalar_lea.vmem %s5716_s3, %s4154_s15 }
  0x57   : > { %3380 = vmatprep.subr.bf16.mxu0 %v4172_v10  ;;  %v4180_v20 = vcombine.high %v252_v13, %v256_v15  ;;  %3544 = vmatprep.subr.bf16.mxu1 %v4174_v14  ;;  %v4182_v21 = vcombine.high %v253_v16, %v257_v17  ;;  %v260_v22 = vld [vmem:[%s5050_s8 + $0xc0] sm:$0xff]  ;;  %v261_v24 = vld [vmem:[%s5050_s8 + $0xc8] sm:$0xff]  ;;  %v4179_v26 = vcombine.low %v252_v13, %v256_v15 }
  0x58   : > { %v264_v23 = vld [vmem:[%s5050_s8 + $0xe0] sm:$0xff]  ;;  %v265_v25 = vld [vmem:[%s5050_s8 + $0xe8] sm:$0xff]  ;;  %v4181_v27 = vcombine.low %v253_v16, %v257_v17 }
  0x59   : > { %v4188_v28 = vcombine.high %v260_v22, %v264_v23  ;;  %v4190_v29 = vcombine.high %v261_v24, %v265_v25  ;;  %v268_v30 = vld [vmem:[%s5050_s8 + $0x100] sm:$0xff]  ;;  %v269_v32 = vld [vmem:[%s5050_s8 + $0x108] sm:$0xff]  ;;  %v4187_v34 = vcombine.low %v260_v22, %v264_v23  ;;  %v4189_v35 = vcombine.low %v261_v24, %v265_v25 }
  0x5a   : > { %3381 = vmatpush1.bf16.msra.mxu0 %v4171_v18  ;;  %3545 = vmatpush1.bf16.msra.mxu1 %v4173_v19  ;;  %v272_v31 = vld [vmem:[%s5050_s8 + $0x120] sm:$0xff]  ;;  %v273_v33 = vld [vmem:[%s5050_s8 + $0x128] sm:$0xff] }
  0x5b   : > { %3382 = vmatprep.subr.bf16.mxu0 %v4180_v20  ;;  %3546 = vmatprep.subr.bf16.mxu1 %v4182_v21  ;;  %v4196_v36 = vcombine.high %v268_v30, %v272_v31  ;;  %v4198_v37 = vcombine.high %v269_v32, %v273_v33  ;;  %v276_v38 = vld [vmem:[%s5050_s8 + $0x140] sm:$0xff]  ;;  %v277_v40 = vld [vmem:[%s5050_s8 + $0x148] sm:$0xff]  ;;  %v4195_v42 = vcombine.low %v268_v30, %v272_v31 }
  0x5c   : > { %v280_v39 = vld [vmem:[%s5050_s8 + $0x160] sm:$0xff]  ;;  %v281_v41 = vld [vmem:[%s5050_s8 + $0x168] sm:$0xff]  ;;  %v4197_v43 = vcombine.low %v269_v32, %v273_v33 }
  0x5d   : > { %v4204_v44 = vcombine.high %v276_v38, %v280_v39  ;;  %v4206_v45 = vcombine.high %v277_v40, %v281_v41  ;;  %v284_v46 = vld [vmem:[%s5050_s8 + $0x180] sm:$0xff]  ;;  %v285_v48 = vld [vmem:[%s5050_s8 + $0x188] sm:$0xff]  ;;  %v4203_v50 = vcombine.low %v276_v38, %v280_v39  ;;  %v4205_v51 = vcombine.low %v277_v40, %v281_v41 }
  0x5e   : > { %3383 = vmatpush1.bf16.msra.mxu0 %v4179_v26  ;;  %3547 = vmatpush1.bf16.msra.mxu1 %v4181_v27  ;;  %v288_v47 = vld [vmem:[%s5050_s8 + $0x1a0] sm:$0xff]  ;;  %v289_v49 = vld [vmem:[%s5050_s8 + $0x1a8] sm:$0xff] }
  0x5f   : > { %3384 = vmatprep.subr.bf16.mxu0 %v4188_v28  ;;  %3548 = vmatprep.subr.bf16.mxu1 %v4190_v29  ;;  %v4212_v52 = vcombine.high %v284_v46, %v288_v47  ;;  %v5093_v53 = vld [vmem:[%s5713_s0] sm:$0xff]  ;;  %v4214_v54 = vcombine.high %v285_v48, %v289_v49  ;;  %v293_v58 = vld [vmem:[%s5050_s8 + $0x1c8] sm:$0xff]  ;;  %v4211_v60 = vcombine.low %v284_v46, %v288_v47 }
  0x60   : > { %v292_v55 = vld [vmem:[%s5050_s8 + $0x1c0] sm:$0xff]  ;;  %v5099_v57 = vcombine.high %v5093_v53, %v5093_v53  ;;  %v297_v59 = vld [vmem:[%s5050_s8 + $0x1e8] sm:$0xff]  ;;  %v4213_v61 = vcombine.low %v285_v48, %v289_v49 }
  0x61   : > { %v296_v56 = vld [vmem:[%s5050_s8 + $0x1e0] sm:$0xff]  ;;  %v4222_v63 = vcombine.high %v293_v58, %v297_v59  ;;  %v301_v2 = vld [vmem:[%s5050_s8 + $0x208] sm:$0xff]  ;;  %v4221_v5 = vcombine.low %v293_v58, %v297_v59 }
  0x62   : > { %3385 = vmatpush1.bf16.msra.mxu0 %v4187_v34  ;;  %3549 = vmatpush1.bf16.msra.mxu1 %v4189_v35  ;;  %v4220_v62 = vcombine.high %v292_v55, %v296_v56  ;;  %v300_v0 = vld [vmem:[%s5050_s8 + $0x200] sm:$0xff]  ;;  %v305_v3 = vld [vmem:[%s5050_s8 + $0x228] sm:$0xff]  ;;  %v4219_v4 = vcombine.low %v292_v55, %v296_v56 }
  0x63   : > { %3386 = vmatprep.subr.bf16.mxu0 %v4196_v36  ;;  %3550 = vmatprep.subr.bf16.mxu1 %v4198_v37  ;;  %v304_v1 = vld [vmem:[%s5050_s8 + $0x220] sm:$0xff]  ;;  %v4230_v7 = vcombine.high %v301_v2, %v305_v3  ;;  %v309_v10 = vld [vmem:[%s5050_s8 + $0x248] sm:$0xff]  ;;  %v4229_v13 = vcombine.low %v301_v2, %v305_v3 }
  0x64   : > { %3410 = vmatprep.mubr.bf16.mxu0 %v5099_v57  ;;  %3574 = vmatprep.mubr.bf16.mxu1 %v5099_v57  ;;  %v4228_v6 = vcombine.high %v300_v0, %v304_v1  ;;  %v308_v8 = vld [vmem:[%s5050_s8 + $0x240] sm:$0xff]  ;;  %v313_v11 = vld [vmem:[%s5050_s8 + $0x268] sm:$0xff]  ;;  %v4227_v12 = vcombine.low %v300_v0, %v304_v1 }
  0x65   : > { %v312_v9 = vld [vmem:[%s5050_s8 + $0x260] sm:$0xff]  ;;  %v4238_v15 = vcombine.high %v309_v10, %v313_v11  ;;  %v317_v18 = vld [vmem:[%s5050_s8 + $0x288] sm:$0xff]  ;;  %v4237_v21 = vcombine.low %v309_v10, %v313_v11 }
  0x66   : > { %3387 = vmatpush1.bf16.msra.mxu0 %v4195_v42  ;;  %3551 = vmatpush1.bf16.msra.mxu1 %v4197_v43  ;;  %v4236_v14 = vcombine.high %v308_v8, %v312_v9  ;;  %v316_v16 = vld [vmem:[%s5050_s8 + $0x280] sm:$0xff]  ;;  %v321_v19 = vld [vmem:[%s5050_s8 + $0x2a8] sm:$0xff]  ;;  %v4235_v20 = vcombine.low %v308_v8, %v312_v9 }
  0x67   : > { %3388 = vmatprep.subr.bf16.mxu0 %v4204_v44  ;;  %3552 = vmatprep.subr.bf16.mxu1 %v4206_v45  ;;  %v320_v17 = vld [vmem:[%s5050_s8 + $0x2a0] sm:$0xff]  ;;  %v4246_v23 = vcombine.high %v317_v18, %v321_v19  ;;  %v325_v26 = vld [vmem:[%s5050_s8 + $0x2c8] sm:$0xff]  ;;  %v4245_v29 = vcombine.low %v317_v18, %v321_v19 }
  0x68   : > { %v4244_v22 = vcombine.high %v316_v16, %v320_v17  ;;  %v324_v24 = vld [vmem:[%s5050_s8 + $0x2c0] sm:$0xff]  ;;  %v329_v27 = vld [vmem:[%s5050_s8 + $0x2e8] sm:$0xff]  ;;  %v4243_v28 = vcombine.low %v316_v16, %v320_v17 }
  0x69   : > { %v328_v25 = vld [vmem:[%s5050_s8 + $0x2e0] sm:$0xff]  ;;  %v4254_v31 = vcombine.high %v325_v26, %v329_v27  ;;  %v333_v34 = vld [vmem:[%s5050_s8 + $0x308] sm:$0xff]  ;;  %v4253_v37 = vcombine.low %v325_v26, %v329_v27 }
  0x6a   : > { %3389 = vmatpush1.bf16.msra.mxu0 %v4203_v50  ;;  %3553 = vmatpush1.bf16.msra.mxu1 %v4205_v51  ;;  %v4252_v30 = vcombine.high %v324_v24, %v328_v25  ;;  %v332_v32 = vld [vmem:[%s5050_s8 + $0x300] sm:$0xff]  ;;  %v337_v35 = vld [vmem:[%s5050_s8 + $0x328] sm:$0xff]  ;;  %v4251_v36 = vcombine.low %v324_v24, %v328_v25 }
  0x6b   : > { %3390 = vmatprep.subr.bf16.mxu0 %v4212_v52  ;;  %3554 = vmatprep.subr.bf16.mxu1 %v4214_v54  ;;  %v336_v33 = vld [vmem:[%s5050_s8 + $0x320] sm:$0xff]  ;;  %v4262_v39 = vcombine.high %v333_v34, %v337_v35  ;;  %v341_v42 = vld [vmem:[%s5050_s8 + $0x348] sm:$0xff]  ;;  %v4261_v45 = vcombine.low %v333_v34, %v337_v35 }
  0x6c   : > { %v4260_v38 = vcombine.high %v332_v32, %v336_v33  ;;  %v340_v40 = vld [vmem:[%s5050_s8 + $0x340] sm:$0xff]  ;;  %v345_v43 = vld [vmem:[%s5050_s8 + $0x368] sm:$0xff]  ;;  %v4259_v44 = vcombine.low %v332_v32, %v336_v33 }
  0x6d   : > { %v344_v41 = vld [vmem:[%s5050_s8 + $0x360] sm:$0xff]  ;;  %v4270_v47 = vcombine.high %v341_v42, %v345_v43  ;;  %v349_v50 = vld [vmem:[%s5050_s8 + $0x388] sm:$0xff]  ;;  %v4269_v54 = vcombine.low %v341_v42, %v345_v43 }
  0x6e   : > { %3391 = vmatpush1.bf16.msra.mxu0 %v4211_v60  ;;  %3555 = vmatpush1.bf16.msra.mxu1 %v4213_v61  ;;  %v4268_v46 = vcombine.high %v340_v40, %v344_v41  ;;  %v348_v48 = vld [vmem:[%s5050_s8 + $0x380] sm:$0xff]  ;;  %v353_v51 = vld [vmem:[%s5050_s8 + $0x3a8] sm:$0xff]  ;;  %v4267_v52 = vcombine.low %v340_v40, %v344_v41 }
  0x6f   : > { %3392 = vmatprep.subr.bf16.mxu0 %v4220_v62  ;;  %3556 = vmatprep.subr.bf16.mxu1 %v4222_v63  ;;  %v352_v49 = vld [vmem:[%s5050_s8 + $0x3a0] sm:$0xff]  ;;  %v4278_v56 = vcombine.high %v349_v50, %v353_v51  ;;  %v357_v60 = vld [vmem:[%s5050_s8 + $0x3c8] sm:$0xff]  ;;  %v4277_v63 = vcombine.low %v349_v50, %v353_v51 }
  0x70   : > { %v4276_v55 = vcombine.high %v348_v48, %v352_v49  ;;  %v356_v58 = vld [vmem:[%s5050_s8 + $0x3c0] sm:$0xff]  ;;  %v361_v61 = vld [vmem:[%s5050_s8 + $0x3e8] sm:$0xff]  ;;  %v4275_v62 = vcombine.low %v348_v48, %v352_v49 }
  0x71   : > { %v360_v59 = vld [vmem:[%s5050_s8 + $0x3e0] sm:$0xff]  ;;  %v4286_v1 = vcombine.high %v357_v60, %v361_v61 }
  0x72   : > { %3393 = vmatpush1.bf16.msra.mxu0 %v4219_v4  ;;  %3557 = vmatpush1.bf16.msra.mxu1 %v4221_v5  ;;  %v4284_v0 = vcombine.high %v356_v58, %v360_v59  ;;  %v364_v2 = vld [vmem:[%s5050_s8 + $0x400] sm:$0xff]  ;;  %v365_v4 = vld [vmem:[%s5050_s8 + $0x408] sm:$0xff] }
  0x73   : > { %3394 = vmatprep.subr.bf16.mxu0 %v4228_v6  ;;  %3558 = vmatprep.subr.bf16.mxu1 %v4230_v7  ;;  %v368_v3 = vld [vmem:[%s5050_s8 + $0x420] sm:$0xff]  ;;  %v369_v5 = vld [vmem:[%s5050_s8 + $0x428] sm:$0xff]  ;;  %v4283_v6 = vcombine.low %v356_v58, %v360_v59  ;;  %v4285_v7 = vcombine.low %v357_v60, %v361_v61 }
  0x74   : > { %v4292_v8 = vcombine.high %v364_v2, %v368_v3  ;;  %v4294_v9 = vcombine.high %v365_v4, %v369_v5  ;;  %v372_v10 = vld [vmem:[%s5050_s8 + $0x440] sm:$0xff]  ;;  %v4291_v16 = vcombine.low %v364_v2, %v368_v3  ;;  %v4293_v17 = vcombine.low %v365_v4, %v369_v5 }
  0x75   : > { %v376_v11 = vld [vmem:[%s5050_s8 + $0x460] sm:$0xff] }
  0x76   : > { %3395 = vmatpush1.bf16.msra.mxu0 %v4227_v12  ;;  %3559 = vmatpush1.bf16.msra.mxu1 %v4229_v13  ;;  %v5145_v12 = vcombine.low %v5093_v53, %v5093_v53  ;;  %v373_v13 = vld [vmem:[%s5050_s8 + $0x448] sm:$0xff]  ;;  %v4300_v18 = vcombine.high %v372_v10, %v376_v11  ;;  %v380_v53 = vld [vmem:[%s5050_s8 + $0x480] sm:$0xff]  ;;  %v4299_v24 = vcombine.low %v372_v10, %v376_v11 }
  0x77   : > { %3396 = vmatprep.subr.bf16.mxu0 %v4236_v14  ;;  %3560 = vmatprep.subr.bf16.mxu1 %v4238_v15  ;;  %v377_v14 = vld [vmem:[%s5050_s8 + $0x468] sm:$0xff] }
  0x78   : > { %v5152_v15 = vld [vmem:[%s5713_s0 + $0x8] sm:$0xff]  ;;  %v4302_v19 = vcombine.high %v373_v13, %v377_v14  ;;  %v4301_v25 = vcombine.low %v373_v13, %v377_v14 }
  0x7a   : > { %3397 = vmatpush1.bf16.msra.mxu0 %v4235_v20  ;;  %3561 = vmatpush1.bf16.msra.mxu1 %v4237_v21  ;;  %v384_v20 = vld [vmem:[%s5050_s8 + $0x4a0] sm:$0xff]  ;;  %v5158_v21 = vcombine.high %v5152_v15, %v5152_v15 }
  0x7b   : > { %3398 = vmatprep.subr.bf16.mxu0 %v4244_v22  ;;  %3562 = vmatprep.subr.bf16.mxu1 %v4246_v23  ;;  %v381_v22 = vld [vmem:[%s5050_s8 + $0x488] sm:$0xff]  ;;  %v4308_v26 = vcombine.high %v380_v53, %v384_v20  ;;  %v4307_v32 = vcombine.low %v380_v53, %v384_v20 }
  0x7c   : > { %v385_v23 = vld [vmem:[%s5050_s8 + $0x4a8] sm:$0xff] }
  0x7d   : > { %v4310_v27 = vcombine.high %v381_v22, %v385_v23  ;;  %v4309_v33 = vcombine.low %v381_v22, %v385_v23 }
  0x7e   : > { %3399 = vmatpush1.bf16.msra.mxu0 %v4243_v28  ;;  %3563 = vmatpush1.bf16.msra.mxu1 %v4245_v29  ;;  %v388_v28 = vld [vmem:[%s5050_s8 + $0x4c0] sm:$0xff] }
  0x7f   : > { %3400 = vmatprep.subr.bf16.mxu0 %v4252_v30  ;;  %3564 = vmatprep.subr.bf16.mxu1 %v4254_v31  ;;  %v392_v29 = vld [vmem:[%s5050_s8 + $0x4e0] sm:$0xff]  ;;  %v389_v30 = vld [vmem:[%s5050_s8 + $0x4c8] sm:$0xff] }
  0x80   : > { %v393_v31 = vld [vmem:[%s5050_s8 + $0x4e8] sm:$0xff]  ;;  %v4316_v34 = vcombine.high %v388_v28, %v392_v29  ;;  %v4315_v40 = vcombine.low %v388_v28, %v392_v29 }
  0x81   : > { %v4318_v35 = vcombine.high %v389_v30, %v393_v31  ;;  %v4317_v41 = vcombine.low %v389_v30, %v393_v31 }
  0x82   : > { %3401 = vmatpush1.bf16.msra.mxu0 %v4251_v36  ;;  %3565 = vmatpush1.bf16.msra.mxu1 %v4253_v37  ;;  %v396_v36 = vld [vmem:[%s5050_s8 + $0x500] sm:$0xff] }
  0x83   : > { %3402 = vmatprep.subr.bf16.mxu0 %v4260_v38  ;;  %3566 = vmatprep.subr.bf16.mxu1 %v4262_v39  ;;  %v400_v37 = vld [vmem:[%s5050_s8 + $0x520] sm:$0xff]  ;;  %v397_v38 = vld [vmem:[%s5050_s8 + $0x508] sm:$0xff] }
  0x84   : > { %v401_v39 = vld [vmem:[%s5050_s8 + $0x528] sm:$0xff]  ;;  %v4324_v42 = vcombine.high %v396_v36, %v400_v37  ;;  %v4323_v48 = vcombine.low %v396_v36, %v400_v37 }
  0x85   : > { %v4326_v43 = vcombine.high %v397_v38, %v401_v39  ;;  %v4325_v49 = vcombine.low %v397_v38, %v401_v39 }
  0x86   : > { %3403 = vmatpush1.bf16.msra.mxu0 %v4259_v44  ;;  %3567 = vmatpush1.bf16.msra.mxu1 %v4261_v45  ;;  %v404_v44 = vld [vmem:[%s5050_s8 + $0x540] sm:$0xff] }
  0x87   : > { %3404 = vmatprep.subr.bf16.mxu0 %v4268_v46  ;;  %3568 = vmatprep.subr.bf16.mxu1 %v4270_v47  ;;  %v408_v45 = vld [vmem:[%s5050_s8 + $0x560] sm:$0xff]  ;;  %v405_v46 = vld [vmem:[%s5050_s8 + $0x548] sm:$0xff] }
  0x88   : > { %v409_v47 = vld [vmem:[%s5050_s8 + $0x568] sm:$0xff]  ;;  %v4332_v50 = vcombine.high %v404_v44, %v408_v45  ;;  %v4331_v58 = vcombine.low %v404_v44, %v408_v45 }
  0x89   : > { %v4334_v51 = vcombine.high %v405_v46, %v409_v47  ;;  %v4333_v59 = vcombine.low %v405_v46, %v409_v47 }
  0x8a   : > { %3405 = vmatpush1.bf16.msra.mxu0 %v4267_v52  ;;  %3569 = vmatpush1.bf16.msra.mxu1 %v4269_v54  ;;  %v412_v52 = vld [vmem:[%s5050_s8 + $0x580] sm:$0xff] }
  0x8b   : > { %3406 = vmatprep.subr.bf16.mxu0 %v4276_v55  ;;  %3570 = vmatprep.subr.bf16.mxu1 %v4278_v56  ;;  %v416_v54 = vld [vmem:[%s5050_s8 + $0x5a0] sm:$0xff]  ;;  %v413_v55 = vld [vmem:[%s5050_s8 + $0x588] sm:$0xff] }
  0x8c   : > { %v417_v56 = vld [vmem:[%s5050_s8 + $0x5a8] sm:$0xff]  ;;  %v4340_v60 = vcombine.high %v412_v52, %v416_v54  ;;  %v4339_v2 = vcombine.low %v412_v52, %v416_v54 }
  0x8d   : > { %v4342_v61 = vcombine.high %v413_v55, %v417_v56  ;;  %v4341_v3 = vcombine.low %v413_v55, %v417_v56 }
  0x8e   : > { %3407 = vmatpush1.bf16.msra.mxu0 %v4275_v62  ;;  %3571 = vmatpush1.bf16.msra.mxu1 %v4277_v63  ;;  %v420_v62 = vld [vmem:[%s5050_s8 + $0x5c0] sm:$0xff] }
  0x8f   : > { %3408 = vmatprep.subr.bf16.mxu0 %v4284_v0  ;;  %3572 = vmatprep.subr.bf16.mxu1 %v4286_v1  ;;  %v424_v63 = vld [vmem:[%s5050_s8 + $0x5e0] sm:$0xff]  ;;  %v421_v0 = vld [vmem:[%s5050_s8 + $0x5c8] sm:$0xff] }
  0x90   : > { %v425_v1 = vld [vmem:[%s5050_s8 + $0x5e8] sm:$0xff]  ;;  %v4348_v4 = vcombine.high %v420_v62, %v424_v63  ;;  %v4347_v10 = vcombine.low %v420_v62, %v424_v63 }
  0x91   : > { %v4350_v5 = vcombine.high %v421_v0, %v425_v1  ;;  %v4349_v11 = vcombine.low %v421_v0, %v425_v1 }
  0x92   : > { %3409 = vmatpush1.bf16.msra.mxu0 %v4283_v6  ;;  %3573 = vmatpush1.bf16.msra.mxu1 %v4285_v7  ;;  %v428_v6 = vld [vmem:[%s5050_s8 + $0x600] sm:$0xff] }
  0x93   : > { %3419 = vmatprep.subr.bf16.mxu0 %v4292_v8  ;;  %3583 = vmatprep.subr.bf16.mxu1 %v4294_v9  ;;  %v432_v7 = vld [vmem:[%s5050_s8 + $0x620] sm:$0xff]  ;;  %v429_v8 = vld [vmem:[%s5050_s8 + $0x608] sm:$0xff] }
  0x94   : > { %v433_v9 = vld [vmem:[%s5050_s8 + $0x628] sm:$0xff]  ;;  %v4356_v13 = vcombine.high %v428_v6, %v432_v7  ;;  %v4355_v53 = vcombine.low %v428_v6, %v432_v7 }
  0x95   : > { %3411 = vmatmul.mubr.bf16.vlgmr.msra.gmra.mrb[0].mxu0 %v5145_v12  ;;  %3575 = vmatmul.mubr.bf16.vlgmr.msra.gmra.mrb[0].mxu1 %v5145_v12  ;;  %v4358_v14 = vcombine.high %v429_v8, %v433_v9  ;;  %v4357_v20 = vcombine.low %v429_v8, %v433_v9 }
  0x96   : > { %3420 = vmatpush1.bf16.msra.mxu0 %v4291_v16  ;;  %3584 = vmatpush1.bf16.msra.mxu1 %v4293_v17  ;;  %v436_v16 = vld [vmem:[%s5050_s8 + $0x640] sm:$0xff] }
  0x97   : > { %3421 = vmatprep.subr.bf16.mxu0 %v4300_v18  ;;  %3585 = vmatprep.subr.bf16.mxu1 %v4302_v19  ;;  %v440_v17 = vld [vmem:[%s5050_s8 + $0x660] sm:$0xff]  ;;  %v437_v18 = vld [vmem:[%s5050_s8 + $0x648] sm:$0xff] }
  0x98   : > { %3451 = vmatprep.mubr.bf16.mxu0 %v5158_v21  ;;  %3615 = vmatprep.mubr.bf16.mxu1 %v5158_v21  ;;  %v441_v19 = vld [vmem:[%s5050_s8 + $0x668] sm:$0xff]  ;;  %v4364_v22 = vcombine.high %v436_v16, %v440_v17  ;;  %v4363_v28 = vcombine.low %v436_v16, %v440_v17 }
  0x99   : > { %v4366_v23 = vcombine.high %v437_v18, %v441_v19  ;;  %v4365_v29 = vcombine.low %v437_v18, %v441_v19 }
  0x9a   : > { %3422 = vmatpush1.bf16.msra.mxu0 %v4299_v24  ;;  %3586 = vmatpush1.bf16.msra.mxu1 %v4301_v25  ;;  %v444_v24 = vld [vmem:[%s5050_s8 + $0x680] sm:$0xff] }
  0x9b   : > { %3423 = vmatprep.subr.bf16.mxu0 %v4308_v26  ;;  %3587 = vmatprep.subr.bf16.mxu1 %v4310_v27  ;;  %v448_v25 = vld [vmem:[%s5050_s8 + $0x6a0] sm:$0xff]  ;;  %v445_v26 = vld [vmem:[%s5050_s8 + $0x688] sm:$0xff] }
  0x9c   : > { %v449_v27 = vld [vmem:[%s5050_s8 + $0x6a8] sm:$0xff]  ;;  %v4372_v30 = vcombine.high %v444_v24, %v448_v25  ;;  %v4371_v36 = vcombine.low %v444_v24, %v448_v25  ;;  %v5233_v25 = vld [vmem:[%s5713_s0 + $0x10] sm:$0xff] }
  0x9d   : > { %v4374_v31 = vcombine.high %v445_v26, %v449_v27  ;;  %v4373_v37 = vcombine.low %v445_v26, %v449_v27  ;;  %v505_v24 = vld [vmem:[%s5050_s8 + $0x868] sm:$0xff] }
  0x9e   : > { %3424 = vmatpush1.bf16.msra.mxu0 %v4307_v32  ;;  %3588 = vmatpush1.bf16.msra.mxu1 %v4309_v33  ;;  %v452_v32 = vld [vmem:[%s5050_s8 + $0x6c0] sm:$0xff] }
  0x9f   : > { %3425 = vmatprep.subr.bf16.mxu0 %v4316_v34  ;;  %3589 = vmatprep.subr.bf16.mxu1 %v4318_v35  ;;  %v456_v33 = vld [vmem:[%s5050_s8 + $0x6e0] sm:$0xff]  ;;  %v453_v34 = vld [vmem:[%s5050_s8 + $0x6c8] sm:$0xff] }
  0xa0   : > { %v457_v35 = vld [vmem:[%s5050_s8 + $0x6e8] sm:$0xff]  ;;  %v4380_v38 = vcombine.high %v452_v32, %v456_v33  ;;  %v4379_v44 = vcombine.low %v452_v32, %v456_v33 }
  0xa1   : > { %v4382_v39 = vcombine.high %v453_v34, %v457_v35  ;;  %v4381_v45 = vcombine.low %v453_v34, %v457_v35  ;;  %v509_v32 = vld [vmem:[%s5050_s8 + $0x888] sm:$0xff] }
  0xa2   : > { %3426 = vmatpush1.bf16.msra.mxu0 %v4315_v40  ;;  %3590 = vmatpush1.bf16.msra.mxu1 %v4317_v41  ;;  %v460_v40 = vld [vmem:[%s5050_s8 + $0x700] sm:$0xff]  ;;  %v513_v33 = vld [vmem:[%s5050_s8 + $0x8a8] sm:$0xff] }
  0xa3   : > { %3427 = vmatprep.subr.bf16.mxu0 %v4324_v42  ;;  %3591 = vmatprep.subr.bf16.mxu1 %v4326_v43  ;;  %v464_v41 = vld [vmem:[%s5050_s8 + $0x720] sm:$0xff]  ;;  %v461_v42 = vld [vmem:[%s5050_s8 + $0x708] sm:$0xff] }
  0xa4   : > { %v465_v43 = vld [vmem:[%s5050_s8 + $0x728] sm:$0xff]  ;;  %v4388_v46 = vcombine.high %v460_v40, %v464_v41  ;;  %v4387_v52 = vcombine.low %v460_v40, %v464_v41 }
  0xa5   : > { %v4390_v47 = vcombine.high %v461_v42, %v465_v43  ;;  %v4389_v54 = vcombine.low %v461_v42, %v465_v43  ;;  %v517_v40 = vld [vmem:[%s5050_s8 + $0x8c8] sm:$0xff]  ;;  %v4437_v43 = vcombine.low %v509_v32, %v513_v33 }
  0xa6   : > { %3428 = vmatpush1.bf16.msra.mxu0 %v4323_v48  ;;  %3592 = vmatpush1.bf16.msra.mxu1 %v4325_v49  ;;  %v468_v48 = vld [vmem:[%s5050_s8 + $0x740] sm:$0xff]  ;;  %v521_v41 = vld [vmem:[%s5050_s8 + $0x8e8] sm:$0xff] }
  0xa7   : > { %3429 = vmatprep.subr.bf16.mxu0 %v4332_v50  ;;  %3593 = vmatprep.subr.bf16.mxu1 %v4334_v51  ;;  %v472_v49 = vld [vmem:[%s5050_s8 + $0x760] sm:$0xff]  ;;  %v469_v50 = vld [vmem:[%s5050_s8 + $0x748] sm:$0xff] }
  0xa8   : > { %v473_v51 = vld [vmem:[%s5050_s8 + $0x768] sm:$0xff]  ;;  %v4396_v55 = vcombine.high %v468_v48, %v472_v49  ;;  %v4395_v62 = vcombine.low %v468_v48, %v472_v49 }
  0xa9   : > { %v4398_v56 = vcombine.high %v469_v50, %v473_v51  ;;  %v4397_v63 = vcombine.low %v469_v50, %v473_v51  ;;  %v525_v48 = vld [vmem:[%s5050_s8 + $0x908] sm:$0xff]  ;;  %v4445_v51 = vcombine.low %v517_v40, %v521_v41 }
  0xaa   : > { %3430 = vmatpush1.bf16.msra.mxu0 %v4331_v58  ;;  %3594 = vmatpush1.bf16.msra.mxu1 %v4333_v59  ;;  %v476_v58 = vld [vmem:[%s5050_s8 + $0x780] sm:$0xff]  ;;  %v529_v49 = vld [vmem:[%s5050_s8 + $0x928] sm:$0xff] }
  0xab   : > { %3431 = vmatprep.subr.bf16.mxu0 %v4340_v60  ;;  %3595 = vmatprep.subr.bf16.mxu1 %v4342_v61  ;;  %v480_v59 = vld [vmem:[%s5050_s8 + $0x7a0] sm:$0xff]  ;;  %v477_v60 = vld [vmem:[%s5050_s8 + $0x788] sm:$0xff] }
  0xac   : > { %v481_v61 = vld [vmem:[%s5050_s8 + $0x7a8] sm:$0xff]  ;;  %v4404_v0 = vcombine.high %v476_v58, %v480_v59  ;;  %v4403_v6 = vcombine.low %v476_v58, %v480_v59 }
  0xad   : > { %v4406_v1 = vcombine.high %v477_v60, %v481_v61  ;;  %v4405_v7 = vcombine.low %v477_v60, %v481_v61  ;;  %v533_v58 = vld [vmem:[%s5050_s8 + $0x948] sm:$0xff]  ;;  %v4453_v61 = vcombine.low %v525_v48, %v529_v49 }
  0xae   : > { %3432 = vmatpush1.bf16.msra.mxu0 %v4339_v2  ;;  %3596 = vmatpush1.bf16.msra.mxu1 %v4341_v3  ;;  %v484_v2 = vld [vmem:[%s5050_s8 + $0x7c0] sm:$0xff]  ;;  %v537_v59 = vld [vmem:[%s5050_s8 + $0x968] sm:$0xff] }
  0xaf   : > { %3433 = vmatprep.subr.bf16.mxu0 %v4348_v4  ;;  %3597 = vmatprep.subr.bf16.mxu1 %v4350_v5  ;;  %v488_v3 = vld [vmem:[%s5050_s8 + $0x7e0] sm:$0xff]  ;;  %v485_v4 = vld [vmem:[%s5050_s8 + $0x7c8] sm:$0xff] }
  0xb0   : > { %v489_v5 = vld [vmem:[%s5050_s8 + $0x7e8] sm:$0xff]  ;;  %v4412_v8 = vcombine.high %v484_v2, %v488_v3  ;;  %v4411_v16 = vcombine.low %v484_v2, %v488_v3 }
  0xb1   : > { %v4414_v9 = vcombine.high %v485_v4, %v489_v5  ;;  %v4413_v17 = vcombine.low %v485_v4, %v489_v5  ;;  %v541_v2 = vld [vmem:[%s5050_s8 + $0x988] sm:$0xff]  ;;  %v4461_v5 = vcombine.low %v533_v58, %v537_v59 }
  0xb2   : > { %3434 = vmatpush1.bf16.msra.mxu0 %v4347_v10  ;;  %3598 = vmatpush1.bf16.msra.mxu1 %v4349_v11  ;;  %v492_v10 = vld [vmem:[%s5050_s8 + $0x800] sm:$0xff]  ;;  %v545_v3 = vld [vmem:[%s5050_s8 + $0x9a8] sm:$0xff] }
  0xb3   : > { %3435 = vmatprep.subr.bf16.mxu0 %v4356_v13  ;;  %3599 = vmatprep.subr.bf16.mxu1 %v4358_v14  ;;  %v496_v11 = vld [vmem:[%s5050_s8 + $0x820] sm:$0xff]  ;;  %v493_v13 = vld [vmem:[%s5050_s8 + $0x808] sm:$0xff] }
  0xb4   : > { %v497_v14 = vld [vmem:[%s5050_s8 + $0x828] sm:$0xff]  ;;  %v4420_v18 = vcombine.high %v492_v10, %v496_v11  ;;  %v4419_v26 = vcombine.low %v492_v10, %v496_v11 }
  0xb5   : > { %v4422_v19 = vcombine.high %v493_v13, %v497_v14  ;;  %v4421_v27 = vcombine.low %v493_v13, %v497_v14  ;;  %v549_v10 = vld [vmem:[%s5050_s8 + $0x9c8] sm:$0xff]  ;;  %v4469_v14 = vcombine.low %v541_v2, %v545_v3 }
  0xb6   : > { %3436 = vmatpush1.bf16.msra.mxu0 %v4355_v53  ;;  %3600 = vmatpush1.bf16.msra.mxu1 %v4357_v20  ;;  %v500_v53 = vld [vmem:[%s5050_s8 + $0x840] sm:$0xff]  ;;  %v553_v11 = vld [vmem:[%s5050_s8 + $0x9e8] sm:$0xff] }
  0xb7   : > { %3437 = vmatprep.subr.bf16.mxu0 %v4364_v22  ;;  %3601 = vmatprep.subr.bf16.mxu1 %v4366_v23  ;;  %v504_v20 = vld [vmem:[%s5050_s8 + $0x860] sm:$0xff]  ;;  %v5226_v22 = vcombine.low %v5152_v15, %v5152_v15  ;;  %v501_v23 = vld [vmem:[%s5050_s8 + $0x848] sm:$0xff] }
  0xb8   : > { %v508_v15 = vld [vmem:[%s5050_s8 + $0x880] sm:$0xff]  ;;  %v4427_v34 = vcombine.low %v500_v53, %v504_v20  ;;  %v4429_v35 = vcombine.low %v501_v23, %v505_v24 }
  0xba   : > { %3438 = vmatpush1.bf16.msra.mxu0 %v4363_v28  ;;  %3602 = vmatpush1.bf16.msra.mxu1 %v4365_v29  ;;  %v4428_v28 = vcombine.high %v500_v53, %v504_v20  ;;  %v4430_v29 = vcombine.high %v501_v23, %v505_v24  ;;  %v557_v53 = vld [vmem:[%s5050_s8 + $0xa08] sm:$0xff]  ;;  %v4477_v24 = vcombine.low %v549_v10, %v553_v11 }
  0xbb   : > { %3439 = vmatprep.subr.bf16.mxu0 %v4372_v30  ;;  %3603 = vmatprep.subr.bf16.mxu1 %v4374_v31  ;;  %v512_v30 = vld [vmem:[%s5050_s8 + $0x8a0] sm:$0xff]  ;;  %v5239_v31 = vcombine.high %v5233_v25, %v5233_v25  ;;  %v561_v20 = vld [vmem:[%s5050_s8 + $0xa28] sm:$0xff] }
  0xbc   : > { %v4435_v42 = vcombine.low %v508_v15, %v512_v30 }
  0xbe   : > { %3440 = vmatpush1.bf16.msra.mxu0 %v4371_v36  ;;  %3604 = vmatpush1.bf16.msra.mxu1 %v4373_v37  ;;  %v4436_v36 = vcombine.high %v508_v15, %v512_v30  ;;  %v4438_v37 = vcombine.high %v509_v32, %v513_v33  ;;  %v565_v15 = vld [vmem:[%s5050_s8 + $0xa48] sm:$0xff]  ;;  %v4485_v33 = vcombine.low %v557_v53, %v561_v20 }
  0xbf   : > { %3441 = vmatprep.subr.bf16.mxu0 %v4380_v38  ;;  %3605 = vmatprep.subr.bf16.mxu1 %v4382_v39  ;;  %v516_v38 = vld [vmem:[%s5050_s8 + $0x8c0] sm:$0xff]  ;;  %v569_v30 = vld [vmem:[%s5050_s8 + $0xa68] sm:$0xff] }
  0xc0   : > { %v520_v39 = vld [vmem:[%s5050_s8 + $0x8e0] sm:$0xff] }
  0xc1   : > { %v4443_v50 = vcombine.low %v516_v38, %v520_v39 }
  0xc2   : > { %3442 = vmatpush1.bf16.msra.mxu0 %v4379_v44  ;;  %3606 = vmatpush1.bf16.msra.mxu1 %v4381_v45  ;;  %v4444_v44 = vcombine.high %v516_v38, %v520_v39  ;;  %v4446_v45 = vcombine.high %v517_v40, %v521_v41  ;;  %v573_v38 = vld [vmem:[%s5050_s8 + $0xa88] sm:$0xff]  ;;  %v4493_v41 = vcombine.low %v565_v15, %v569_v30 }
  0xc3   : > { %3443 = vmatprep.subr.bf16.mxu0 %v4388_v46  ;;  %3607 = vmatprep.subr.bf16.mxu1 %v4390_v47  ;;  %v524_v46 = vld [vmem:[%s5050_s8 + $0x900] sm:$0xff]  ;;  %v577_v39 = vld [vmem:[%s5050_s8 + $0xaa8] sm:$0xff] }
  0xc4   : > { %v528_v47 = vld [vmem:[%s5050_s8 + $0x920] sm:$0xff] }
  0xc5   : > { %v4451_v60 = vcombine.low %v524_v46, %v528_v47 }
  0xc6   : > { %3444 = vmatpush1.bf16.msra.mxu0 %v4387_v52  ;;  %3608 = vmatpush1.bf16.msra.mxu1 %v4389_v54  ;;  %v4452_v52 = vcombine.high %v524_v46, %v528_v47  ;;  %v4454_v54 = vcombine.high %v525_v48, %v529_v49  ;;  %v581_v46 = vld [vmem:[%s5050_s8 + $0xac8] sm:$0xff]  ;;  %v4501_v49 = vcombine.low %v573_v38, %v577_v39 }
  0xc7   : > { %3445 = vmatprep.subr.bf16.mxu0 %v4396_v55  ;;  %3609 = vmatprep.subr.bf16.mxu1 %v4398_v56  ;;  %v532_v55 = vld [vmem:[%s5050_s8 + $0x940] sm:$0xff]  ;;  %v585_v47 = vld [vmem:[%s5050_s8 + $0xae8] sm:$0xff] }
  0xc8   : > { %v536_v56 = vld [vmem:[%s5050_s8 + $0x960] sm:$0xff] }
  0xc9   : > { %v4459_v4 = vcombine.low %v532_v55, %v536_v56 }
  0xca   : > { %3446 = vmatpush1.bf16.msra.mxu0 %v4395_v62  ;;  %3610 = vmatpush1.bf16.msra.mxu1 %v4397_v63  ;;  %v4460_v62 = vcombine.high %v532_v55, %v536_v56  ;;  %v4462_v63 = vcombine.high %v533_v58, %v537_v59  ;;  %v589_v55 = vld [vmem:[%s5050_s8 + $0xb08] sm:$0xff]  ;;  %v4509_v59 = vcombine.low %v581_v46, %v585_v47 }
  0xcb   : > { %3447 = vmatprep.subr.bf16.mxu0 %v4404_v0  ;;  %3611 = vmatprep.subr.bf16.mxu1 %v4406_v1  ;;  %v540_v0 = vld [vmem:[%s5050_s8 + $0x980] sm:$0xff]  ;;  %v593_v56 = vld [vmem:[%s5050_s8 + $0xb28] sm:$0xff] }
  0xcc   : > { %v544_v1 = vld [vmem:[%s5050_s8 + $0x9a0] sm:$0xff] }
  0xcd   : > { %v4467_v13 = vcombine.low %v540_v0, %v544_v1 }
  0xce   : > { %3448 = vmatpush1.bf16.msra.mxu0 %v4403_v6  ;;  %3612 = vmatpush1.bf16.msra.mxu1 %v4405_v7  ;;  %v4468_v6 = vcombine.high %v540_v0, %v544_v1  ;;  %v4470_v7 = vcombine.high %v541_v2, %v545_v3  ;;  %v597_v0 = vld [vmem:[%s5050_s8 + $0xb48] sm:$0xff]  ;;  %v4517_v3 = vcombine.low %v589_v55, %v593_v56 }
  0xcf   : > { %3449 = vmatprep.subr.bf16.mxu0 %v4412_v8  ;;  %3613 = vmatprep.subr.bf16.mxu1 %v4414_v9  ;;  %v548_v8 = vld [vmem:[%s5050_s8 + $0x9c0] sm:$0xff]  ;;  %v601_v1 = vld [vmem:[%s5050_s8 + $0xb68] sm:$0xff] }
  0xd0   : > { %v552_v9 = vld [vmem:[%s5050_s8 + $0x9e0] sm:$0xff] }
  0xd1   : > { %v4475_v23 = vcombine.low %v548_v8, %v552_v9 }
  0xd2   : > { %3450 = vmatpush1.bf16.msra.mxu0 %v4411_v16  ;;  %3614 = vmatpush1.bf16.msra.mxu1 %v4413_v17  ;;  %v4476_v16 = vcombine.high %v548_v8, %v552_v9  ;;  %v4478_v17 = vcombine.high %v549_v10, %v553_v11  ;;  %v605_v8 = vld [vmem:[%s5050_s8 + $0xb88] sm:$0xff]  ;;  %v4525_v11 = vcombine.low %v597_v0, %v601_v1 }
  0xd3   : > { %3460 = vmatprep.subr.bf16.mxu0 %v4420_v18  ;;  %3624 = vmatprep.subr.bf16.mxu1 %v4422_v19  ;;  %v556_v18 = vld [vmem:[%s5050_s8 + $0xa00] sm:$0xff]  ;;  %v609_v9 = vld [vmem:[%s5050_s8 + $0xba8] sm:$0xff] }
  0xd4   : > { %v560_v19 = vld [vmem:[%s5050_s8 + $0xa20] sm:$0xff] }
  0xd5   : > { %3452 = vmatmul.mubr.bf16.vlgmr.msra.gmra.mrb[0].mxu0 %v5226_v22  ;;  %3616 = vmatmul.mubr.bf16.vlgmr.msra.gmra.mrb[0].mxu1 %v5226_v22  ;;  %v4483_v32 = vcombine.low %v556_v18, %v560_v19 }
  0xd6   : > { %3461 = vmatpush1.bf16.msra.mxu0 %v4419_v26  ;;  %3625 = vmatpush1.bf16.msra.mxu1 %v4421_v27  ;;  %v4484_v26 = vcombine.high %v556_v18, %v560_v19  ;;  %v4486_v27 = vcombine.high %v557_v53, %v561_v20  ;;  %v613_v18 = vld [vmem:[%s5050_s8 + $0xbc8] sm:$0xff]  ;;  %v4533_v20 = vcombine.low %v605_v8, %v609_v9 }
  0xd7   : > { %3462 = vmatprep.subr.bf16.mxu0 %v4428_v28  ;;  %3626 = vmatprep.subr.bf16.mxu1 %v4430_v29  ;;  %v564_v28 = vld [vmem:[%s5050_s8 + $0xa40] sm:$0xff]  ;;  %v617_v19 = vld [vmem:[%s5050_s8 + $0xbe8] sm:$0xff] }
  0xd8   : > { %3492 = vmatprep.mubr.bf16.mxu0 %v5239_v31  ;;  %3656 = vmatprep.mubr.bf16.mxu1 %v5239_v31  ;;  %v568_v29 = vld [vmem:[%s5050_s8 + $0xa60] sm:$0xff] }
  0xd9   : > { %v4491_v40 = vcombine.low %v564_v28, %v568_v29 }
  0xda   : > { %3463 = vmatpush1.bf16.msra.mxu0 %v4427_v34  ;;  %3627 = vmatpush1.bf16.msra.mxu1 %v4429_v35  ;;  %v4492_v34 = vcombine.high %v564_v28, %v568_v29  ;;  %v4494_v35 = vcombine.high %v565_v15, %v569_v30  ;;  %v621_v28 = vld [vmem:[%s5050_s8 + $0xc08] sm:$0xff]  ;;  %v4541_v30 = vcombine.low %v613_v18, %v617_v19 }
  0xdb   : > { %3464 = vmatprep.subr.bf16.mxu0 %v4436_v36  ;;  %3628 = vmatprep.subr.bf16.mxu1 %v4438_v37  ;;  %v572_v36 = vld [vmem:[%s5050_s8 + $0xa80] sm:$0xff]  ;;  %v625_v29 = vld [vmem:[%s5050_s8 + $0xc28] sm:$0xff] }
  0xdc   : > { %v576_v37 = vld [vmem:[%s5050_s8 + $0xaa0] sm:$0xff] }
  0xdd   : > { %v4499_v48 = vcombine.low %v572_v36, %v576_v37 }
  0xde   : > { %3465 = vmatpush1.bf16.msra.mxu0 %v4435_v42  ;;  %3629 = vmatpush1.bf16.msra.mxu1 %v4437_v43  ;;  %v4500_v42 = vcombine.high %v572_v36, %v576_v37  ;;  %v4502_v43 = vcombine.high %v573_v38, %v577_v39  ;;  %v5307_v36 = vcombine.low %v5233_v25, %v5233_v25  ;;  %v629_v37 = vld [vmem:[%s5050_s8 + $0xc48] sm:$0xff]  ;;  %v5314_v39 = vld [vmem:[%s5713_s0 + $0x18] sm:$0xff]  ;;  %v636_v25 = vld [vmem:[%s5050_s8 + $0xc80] sm:$0xff] }
  0xdf   : > { %3466 = vmatprep.subr.bf16.mxu0 %v4444_v44  ;;  %3630 = vmatprep.subr.bf16.mxu1 %v4446_v45  ;;  %v580_v44 = vld [vmem:[%s5050_s8 + $0xac0] sm:$0xff]  ;;  %v633_v38 = vld [vmem:[%s5050_s8 + $0xc68] sm:$0xff] }
  0xe0   : > { %v584_v45 = vld [vmem:[%s5050_s8 + $0xae0] sm:$0xff] }
  0xe1   : > { %v4507_v58 = vcombine.low %v580_v44, %v584_v45 }
  0xe2   : > { %3467 = vmatpush1.bf16.msra.mxu0 %v4443_v50  ;;  %3631 = vmatpush1.bf16.msra.mxu1 %v4445_v51  ;;  %v4508_v50 = vcombine.high %v580_v44, %v584_v45  ;;  %v4510_v51 = vcombine.high %v581_v46, %v585_v47  ;;  %v640_v44 = vld [vmem:[%s5050_s8 + $0xca0] sm:$0xff]  ;;  %v5320_v45 = vcombine.high %v5314_v39, %v5314_v39  ;;  %v637_v46 = vld [vmem:[%s5050_s8 + $0xc88] sm:$0xff] }
  0xe3   : > { %3468 = vmatprep.subr.bf16.mxu0 %v4452_v52  ;;  %3632 = vmatprep.subr.bf16.mxu1 %v4454_v54  ;;  %v588_v52 = vld [vmem:[%s5050_s8 + $0xb00] sm:$0xff]  ;;  %v641_v47 = vld [vmem:[%s5050_s8 + $0xca8] sm:$0xff] }
  0xe4   : > { %v592_v54 = vld [vmem:[%s5050_s8 + $0xb20] sm:$0xff] }
  0xe5   : > { %v4515_v2 = vcombine.low %v588_v52, %v592_v54 }
  0xe6   : > { %3469 = vmatpush1.bf16.msra.mxu0 %v4451_v60  ;;  %3633 = vmatpush1.bf16.msra.mxu1 %v4453_v61  ;;  %v4516_v60 = vcombine.high %v588_v52, %v592_v54  ;;  %v4518_v61 = vcombine.high %v589_v55, %v593_v56  ;;  %v644_v52 = vld [vmem:[%s5050_s8 + $0xcc0] sm:$0xff]  ;;  %v645_v55 = vld [vmem:[%s5050_s8 + $0xcc8] sm:$0xff] }
  0xe7   : > { %3470 = vmatprep.subr.bf16.mxu0 %v4460_v62  ;;  %3634 = vmatprep.subr.bf16.mxu1 %v4462_v63  ;;  %v596_v62 = vld [vmem:[%s5050_s8 + $0xb40] sm:$0xff]  ;;  %v649_v56 = vld [vmem:[%s5050_s8 + $0xce8] sm:$0xff] }
  0xe8   : > { %v600_v63 = vld [vmem:[%s5050_s8 + $0xb60] sm:$0xff] }
  0xe9   : > { %v4523_v10 = vcombine.low %v596_v62, %v600_v63  ;;  %v648_v54 = vld [vmem:[%s5050_s8 + $0xce0] sm:$0xff] }
  0xea   : > { %3471 = vmatpush1.bf16.msra.mxu0 %v4459_v4  ;;  %3635 = vmatpush1.bf16.msra.mxu1 %v4461_v5  ;;  %v4524_v4 = vcombine.high %v596_v62, %v600_v63  ;;  %v4526_v5 = vcombine.high %v597_v0, %v601_v1  ;;  %v652_v62 = vld [vmem:[%s5050_s8 + $0xd00] sm:$0xff]  ;;  %v653_v0 = vld [vmem:[%s5050_s8 + $0xd08] sm:$0xff] }
  0xeb   : > { %3472 = vmatprep.subr.bf16.mxu0 %v4468_v6  ;;  %3636 = vmatprep.subr.bf16.mxu1 %v4470_v7  ;;  %v604_v6 = vld [vmem:[%s5050_s8 + $0xb80] sm:$0xff]  ;;  %v657_v1 = vld [vmem:[%s5050_s8 + $0xd28] sm:$0xff] }
  0xec   : > { %v608_v7 = vld [vmem:[%s5050_s8 + $0xba0] sm:$0xff] }
  0xed   : > { %v4531_v53 = vcombine.low %v604_v6, %v608_v7  ;;  %v656_v63 = vld [vmem:[%s5050_s8 + $0xd20] sm:$0xff] }
  0xee   : > { %3473 = vmatpush1.bf16.msra.mxu0 %v4467_v13  ;;  %3637 = vmatpush1.bf16.msra.mxu1 %v4469_v14  ;;  %v4532_v13 = vcombine.high %v604_v6, %v608_v7  ;;  %v4534_v14 = vcombine.high %v605_v8, %v609_v9  ;;  %v660_v6 = vld [vmem:[%s5050_s8 + $0xd40] sm:$0xff]  ;;  %v661_v8 = vld [vmem:[%s5050_s8 + $0xd48] sm:$0xff] }
  0xef   : > { %3474 = vmatprep.subr.bf16.mxu0 %v4476_v16  ;;  %3638 = vmatprep.subr.bf16.mxu1 %v4478_v17  ;;  %v612_v16 = vld [vmem:[%s5050_s8 + $0xbc0] sm:$0xff]  ;;  %v665_v9 = vld [vmem:[%s5050_s8 + $0xd68] sm:$0xff] }
  0xf0   : > { %v616_v17 = vld [vmem:[%s5050_s8 + $0xbe0] sm:$0xff] }
  0xf1   : > { %v4539_v15 = vcombine.low %v612_v16, %v616_v17  ;;  %v664_v7 = vld [vmem:[%s5050_s8 + $0xd60] sm:$0xff] }
  0xf2   : > { %3475 = vmatpush1.bf16.msra.mxu0 %v4475_v23  ;;  %3639 = vmatpush1.bf16.msra.mxu1 %v4477_v24  ;;  %v4540_v23 = vcombine.high %v612_v16, %v616_v17  ;;  %v4542_v24 = vcombine.high %v613_v18, %v617_v19  ;;  %v668_v16 = vld [vmem:[%s5050_s8 + $0xd80] sm:$0xff]  ;;  %v669_v18 = vld [vmem:[%s5050_s8 + $0xd88] sm:$0xff] }
  0xf3   : > { %3476 = vmatprep.subr.bf16.mxu0 %v4484_v26  ;;  %3640 = vmatprep.subr.bf16.mxu1 %v4486_v27  ;;  %v620_v26 = vld [vmem:[%s5050_s8 + $0xc00] sm:$0xff]  ;;  %v673_v19 = vld [vmem:[%s5050_s8 + $0xda8] sm:$0xff] }
  0xf4   : > { %v624_v27 = vld [vmem:[%s5050_s8 + $0xc20] sm:$0xff] }
  0xf5   : > { %v672_v17 = vld [vmem:[%s5050_s8 + $0xda0] sm:$0xff] }
  0xf6   : > { %3477 = vmatpush1.bf16.msra.mxu0 %v4483_v32  ;;  %3641 = vmatpush1.bf16.msra.mxu1 %v4485_v33  ;;  %v4548_v32 = vcombine.high %v620_v26, %v624_v27  ;;  %v4550_v33 = vcombine.high %v621_v28, %v625_v29 }
  0xf7   : > { %3478 = vmatprep.subr.bf16.mxu0 %v4492_v34  ;;  %3642 = vmatprep.subr.bf16.mxu1 %v4494_v35  ;;  %v628_v34 = vld [vmem:[%s5050_s8 + $0xc40] sm:$0xff] }
  0xf8   : > { %v632_v35 = vld [vmem:[%s5050_s8 + $0xc60] sm:$0xff] }
  0xfa   : > { %3479 = vmatpush1.bf16.msra.mxu0 %v4491_v40  ;;  %3643 = vmatpush1.bf16.msra.mxu1 %v4493_v41  ;;  %v4547_v40 = vcombine.low %v620_v26, %v624_v27  ;;  %v4549_v41 = vcombine.low %v621_v28, %v625_v29  ;;  %v676_v26 = vld [vmem:[%s5050_s8 + $0xdc0] sm:$0xff]  ;;  %v677_v28 = vld [vmem:[%s5050_s8 + $0xdc8] sm:$0xff] }
  0xfb   : > { %3480 = vmatprep.subr.bf16.mxu0 %v4500_v42  ;;  %3644 = vmatprep.subr.bf16.mxu1 %v4502_v43  ;;  %v4556_v42 = vcombine.high %v628_v34, %v632_v35  ;;  %v4558_v43 = vcombine.high %v629_v37, %v633_v38  ;;  %v680_v27 = vld [vmem:[%s5050_s8 + $0xde0] sm:$0xff]  ;;  %v681_v29 = vld [vmem:[%s5050_s8 + $0xde8] sm:$0xff] }
  0xfe   : > { %3481 = vmatpush1.bf16.msra.mxu0 %v4499_v48  ;;  %3645 = vmatpush1.bf16.msra.mxu1 %v4501_v49  ;;  %v4555_v48 = vcombine.low %v628_v34, %v632_v35  ;;  %v4557_v49 = vcombine.low %v629_v37, %v633_v38  ;;  %v684_v34 = vld [vmem:[%s5050_s8 + $0xe00] sm:$0xff]  ;;  %v685_v37 = vld [vmem:[%s5050_s8 + $0xe08] sm:$0xff] }
  0xff   : > { %3482 = vmatprep.subr.bf16.mxu0 %v4508_v50  ;;  %3646 = vmatprep.subr.bf16.mxu1 %v4510_v51  ;;  %v4564_v50 = vcombine.high %v636_v25, %v640_v44  ;;  %v4566_v51 = vcombine.high %v637_v46, %v641_v47  ;;  %v688_v35 = vld [vmem:[%s5050_s8 + $0xe20] sm:$0xff]  ;;  %v689_v38 = vld [vmem:[%s5050_s8 + $0xe28] sm:$0xff] }
 0x102   : > { %3483 = vmatpush1.bf16.msra.mxu0 %v4507_v58  ;;  %3647 = vmatpush1.bf16.msra.mxu1 %v4509_v59  ;;  %v4563_v58 = vcombine.low %v636_v25, %v640_v44  ;;  %v4565_v59 = vcombine.low %v637_v46, %v641_v47  ;;  %v692_v25 = vld [vmem:[%s5050_s8 + $0xe40] sm:$0xff]  ;;  %v693_v46 = vld [vmem:[%s5050_s8 + $0xe48] sm:$0xff] }
 0x103   : > { %3484 = vmatprep.subr.bf16.mxu0 %v4516_v60  ;;  %3648 = vmatprep.subr.bf16.mxu1 %v4518_v61  ;;  %v4572_v60 = vcombine.high %v644_v52, %v648_v54  ;;  %v4574_v61 = vcombine.high %v645_v55, %v649_v56  ;;  %v696_v44 = vld [vmem:[%s5050_s8 + $0xe60] sm:$0xff]  ;;  %v697_v47 = vld [vmem:[%s5050_s8 + $0xe68] sm:$0xff] }
 0x106   : > { %3485 = vmatpush1.bf16.msra.mxu0 %v4515_v2  ;;  %3649 = vmatpush1.bf16.msra.mxu1 %v4517_v3  ;;  %v4571_v2 = vcombine.low %v644_v52, %v648_v54  ;;  %v4573_v3 = vcombine.low %v645_v55, %v649_v56  ;;  %v700_v52 = vld [vmem:[%s5050_s8 + $0xe80] sm:$0xff]  ;;  %v701_v55 = vld [vmem:[%s5050_s8 + $0xe88] sm:$0xff] }
 0x107   : > { %3486 = vmatprep.subr.bf16.mxu0 %v4524_v4  ;;  %3650 = vmatprep.subr.bf16.mxu1 %v4526_v5  ;;  %v4580_v4 = vcombine.high %v652_v62, %v656_v63  ;;  %v4582_v5 = vcombine.high %v653_v0, %v657_v1  ;;  %v704_v54 = vld [vmem:[%s5050_s8 + $0xea0] sm:$0xff]  ;;  %v705_v56 = vld [vmem:[%s5050_s8 + $0xea8] sm:$0xff] }
 0x10a   : > { %3487 = vmatpush1.bf16.msra.mxu0 %v4523_v10  ;;  %3651 = vmatpush1.bf16.msra.mxu1 %v4525_v11  ;;  %v4579_v10 = vcombine.low %v652_v62, %v656_v63  ;;  %v4581_v11 = vcombine.low %v653_v0, %v657_v1  ;;  %v708_v62 = vld [vmem:[%s5050_s8 + $0xec0] sm:$0xff]  ;;  %v709_v0 = vld [vmem:[%s5050_s8 + $0xec8] sm:$0xff] }
 0x10b   : > { %3488 = vmatprep.subr.bf16.mxu0 %v4532_v13  ;;  %3652 = vmatprep.subr.bf16.mxu1 %v4534_v14  ;;  %v4588_v13 = vcombine.high %v660_v6, %v664_v7  ;;  %v4590_v14 = vcombine.high %v661_v8, %v665_v9  ;;  %v712_v63 = vld [vmem:[%s5050_s8 + $0xee0] sm:$0xff]  ;;  %v713_v1 = vld [vmem:[%s5050_s8 + $0xee8] sm:$0xff] }
 0x10e   : > { %3489 = vmatpush1.bf16.msra.mxu0 %v4531_v53  ;;  %3653 = vmatpush1.bf16.msra.mxu1 %v4533_v20  ;;  %v4587_v53 = vcombine.low %v660_v6, %v664_v7  ;;  %v4589_v20 = vcombine.low %v661_v8, %v665_v9  ;;  %v716_v6 = vld [vmem:[%s5050_s8 + $0xf00] sm:$0xff]  ;;  %v717_v8 = vld [vmem:[%s5050_s8 + $0xf08] sm:$0xff] }
 0x10f   : > { %3490 = vmatprep.subr.bf16.mxu0 %v4540_v23  ;;  %3654 = vmatprep.subr.bf16.mxu1 %v4542_v24  ;;  %v4596_v23 = vcombine.high %v668_v16, %v672_v17  ;;  %v4598_v24 = vcombine.high %v669_v18, %v673_v19  ;;  %v720_v7 = vld [vmem:[%s5050_s8 + $0xf20] sm:$0xff]  ;;  %v721_v9 = vld [vmem:[%s5050_s8 + $0xf28] sm:$0xff] }
 0x112   : > { %3491 = vmatpush1.bf16.msra.mxu0 %v4539_v15  ;;  %3655 = vmatpush1.bf16.msra.mxu1 %v4541_v30  ;;  %v4595_v15 = vcombine.low %v668_v16, %v672_v17  ;;  %v4597_v30 = vcombine.low %v669_v18, %v673_v19  ;;  %v724_v16 = vld [vmem:[%s5050_s8 + $0xf40] sm:$0xff]  ;;  %v725_v18 = vld [vmem:[%s5050_s8 + $0xf48] sm:$0xff] }
 0x113   : > { %3501 = vmatprep.subr.bf16.mxu0 %v4548_v32  ;;  %3665 = vmatprep.subr.bf16.mxu1 %v4550_v33  ;;  %v4604_v32 = vcombine.high %v676_v26, %v680_v27  ;;  %v4606_v33 = vcombine.high %v677_v28, %v681_v29  ;;  %v728_v17 = vld [vmem:[%s5050_s8 + $0xf60] sm:$0xff]  ;;  %v729_v19 = vld [vmem:[%s5050_s8 + $0xf68] sm:$0xff] }
 0x115   : > { %3493 = vmatmul.mubr.bf16.vlgmr.msra.gmra.mrb[0].mxu0 %v5307_v36  ;;  %3657 = vmatmul.mubr.bf16.vlgmr.msra.gmra.mrb[0].mxu1 %v5307_v36 }
 0x116   : > { %3502 = vmatpush1.bf16.msra.mxu0 %v4547_v40  ;;  %3666 = vmatpush1.bf16.msra.mxu1 %v4549_v41  ;;  %v4603_v40 = vcombine.low %v676_v26, %v680_v27  ;;  %v4605_v41 = vcombine.low %v677_v28, %v681_v29  ;;  %v732_v26 = vld [vmem:[%s5050_s8 + $0xf80] sm:$0xff]  ;;  %v733_v28 = vld [vmem:[%s5050_s8 + $0xf88] sm:$0xff] }
 0x117   : > { %3503 = vmatprep.subr.bf16.mxu0 %v4556_v42  ;;  %3667 = vmatprep.subr.bf16.mxu1 %v4558_v43  ;;  %v4612_v42 = vcombine.high %v684_v34, %v688_v35  ;;  %v4614_v43 = vcombine.high %v685_v37, %v689_v38  ;;  %v736_v27 = vld [vmem:[%s5050_s8 + $0xfa0] sm:$0xff]  ;;  %v737_v29 = vld [vmem:[%s5050_s8 + $0xfa8] sm:$0xff] }
 0x118   : > { %3533 = vmatprep.mubr.bf16.mxu0 %v5320_v45  ;;  %3697 = vmatprep.mubr.bf16.mxu1 %v5320_v45 }
 0x11a   : > { %3504 = vmatpush1.bf16.msra.mxu0 %v4555_v48  ;;  %3668 = vmatpush1.bf16.msra.mxu1 %v4557_v49  ;;  %v4611_v48 = vcombine.low %v684_v34, %v688_v35  ;;  %v4613_v49 = vcombine.low %v685_v37, %v689_v38  ;;  %v740_v34 = vld [vmem:[%s5050_s8 + $0xfc0] sm:$0xff]  ;;  %v741_v37 = vld [vmem:[%s5050_s8 + $0xfc8] sm:$0xff] }
 0x11b   : > { %3505 = vmatprep.subr.bf16.mxu0 %v4564_v50  ;;  %3669 = vmatprep.subr.bf16.mxu1 %v4566_v51  ;;  %v4620_v50 = vcombine.high %v692_v25, %v696_v44  ;;  %v4622_v51 = vcombine.high %v693_v46, %v697_v47  ;;  %v744_v35 = vld [vmem:[%s5050_s8 + $0xfe0] sm:$0xff]  ;;  %v745_v38 = vld [vmem:[%s5050_s8 + $0xfe8] sm:$0xff] }
 0x11e   : > { %3506 = vmatpush1.bf16.msra.mxu0 %v4563_v58  ;;  %3670 = vmatpush1.bf16.msra.mxu1 %v4565_v59  ;;  %v4619_v58 = vcombine.low %v692_v25, %v696_v44  ;;  %v4621_v59 = vcombine.low %v693_v46, %v697_v47  ;;  %v238_v25 = vld [vmem:[%s5050_s8 + $0x10] sm:$0xff]  ;;  %v239_v46 = vld [vmem:[%s5050_s8 + $0x18] sm:$0xff] }
 0x11f   : > { %3507 = vmatprep.subr.bf16.mxu0 %v4572_v60  ;;  %3671 = vmatprep.subr.bf16.mxu1 %v4574_v61  ;;  %v4628_v60 = vcombine.high %v700_v52, %v704_v54  ;;  %v4630_v61 = vcombine.high %v701_v55, %v705_v56  ;;  %v242_v44 = vld [vmem:[%s5050_s8 + $0x30] sm:$0xff]  ;;  %v243_v47 = vld [vmem:[%s5050_s8 + $0x38] sm:$0xff] }
 0x122   : > { %3508 = vmatpush1.bf16.msra.mxu0 %v4571_v2  ;;  %3672 = vmatpush1.bf16.msra.mxu1 %v4573_v3  ;;  %v4627_v2 = vcombine.low %v700_v52, %v704_v54  ;;  %v4629_v3 = vcombine.low %v701_v55, %v705_v56  ;;  %v246_v52 = vld [vmem:[%s5050_s8 + $0x50] sm:$0xff]  ;;  %v5388_v55 = vcombine.low %v5314_v39, %v5314_v39  ;;  %v247_v56 = vld [vmem:[%s5050_s8 + $0x58] sm:$0xff] }
 0x123   : > { %3509 = vmatprep.subr.bf16.mxu0 %v4580_v4  ;;  %3673 = vmatprep.subr.bf16.mxu1 %v4582_v5  ;;  %v4636_v4 = vcombine.high %v708_v62, %v712_v63  ;;  %v4638_v5 = vcombine.high %v709_v0, %v713_v1  ;;  %v250_v54 = vld [vmem:[%s5050_s8 + $0x70] sm:$0xff]  ;;  %v255_v39 = vld [vmem:[%s5050_s8 + $0x98] sm:$0xff] }
 0x126   : > { %3510 = vmatpush1.bf16.msra.mxu0 %v4579_v10  ;;  %3674 = vmatpush1.bf16.msra.mxu1 %v4581_v11  ;;  %v4635_v10 = vcombine.low %v708_v62, %v712_v63  ;;  %v4637_v11 = vcombine.low %v709_v0, %v713_v1  ;;  %v254_v63 = vld [vmem:[%s5050_s8 + $0x90] sm:$0xff]  ;;  %v259_v1 = vld [vmem:[%s5050_s8 + $0xb8] sm:$0xff] }
 0x127   : > { %3511 = vmatprep.subr.bf16.mxu0 %v4588_v13  ;;  %3675 = vmatprep.subr.bf16.mxu1 %v4590_v14  ;;  %v4644_v13 = vcombine.high %v716_v6, %v720_v7  ;;  %v4646_v14 = vcombine.high %v717_v8, %v721_v9  ;;  %v258_v0 = vld [vmem:[%s5050_s8 + $0xb0] sm:$0xff] }
 0x12a   : > { %3512 = vmatpush1.bf16.msra.mxu0 %v4587_v53  ;;  %3676 = vmatpush1.bf16.msra.mxu1 %v4589_v20  ;;  %v4643_v53 = vcombine.low %v716_v6, %v720_v7  ;;  %v4645_v20 = vcombine.low %v717_v8, %v721_v9  ;;  %v262_v6 = vld [vmem:[%s5050_s8 + $0xd0] sm:$0xff]  ;;  %v263_v8 = vld [vmem:[%s5050_s8 + $0xd8] sm:$0xff] }
 0x12b   : > { %3513 = vmatprep.subr.bf16.mxu0 %v4596_v23  ;;  %3677 = vmatprep.subr.bf16.mxu1 %v4598_v24  ;;  %v4652_v23 = vcombine.high %v724_v16, %v728_v17  ;;  %v4654_v24 = vcombine.high %v725_v18, %v729_v19  ;;  %v266_v7 = vld [vmem:[%s5050_s8 + $0xf0] sm:$0xff]  ;;  %v267_v9 = vld [vmem:[%s5050_s8 + $0xf8] sm:$0xff] }
 0x12e   : > { %3514 = vmatpush1.bf16.msra.mxu0 %v4595_v15  ;;  %3678 = vmatpush1.bf16.msra.mxu1 %v4597_v30  ;;  %v4651_v15 = vcombine.low %v724_v16, %v728_v17  ;;  %v4653_v30 = vcombine.low %v725_v18, %v729_v19  ;;  %v270_v16 = vld [vmem:[%s5050_s8 + $0x110] sm:$0xff]  ;;  %v271_v18 = vld [vmem:[%s5050_s8 + $0x118] sm:$0xff] }
 0x12f   : > { %3515 = vmatprep.subr.bf16.mxu0 %v4604_v32  ;;  %3679 = vmatprep.subr.bf16.mxu1 %v4606_v33  ;;  %v4660_v32 = vcombine.high %v732_v26, %v736_v27  ;;  %v4662_v33 = vcombine.high %v733_v28, %v737_v29  ;;  %v274_v17 = vld [vmem:[%s5050_s8 + $0x130] sm:$0xff]  ;;  %v275_v19 = vld [vmem:[%s5050_s8 + $0x138] sm:$0xff] }
 0x132   : > { %3516 = vmatpush1.bf16.msra.mxu0 %v4603_v40  ;;  %3680 = vmatpush1.bf16.msra.mxu1 %v4605_v41  ;;  %v4659_v40 = vcombine.low %v732_v26, %v736_v27  ;;  %v4661_v41 = vcombine.low %v733_v28, %v737_v29  ;;  %v282_v26 = vld [vmem:[%s5050_s8 + $0x170] sm:$0xff]  ;;  %v279_v27 = vld [vmem:[%s5050_s8 + $0x158] sm:$0xff]  ;;  %v4199_v29 = vcombine.low %v270_v16, %v274_v17 }
 0x133   : > { %3517 = vmatprep.subr.bf16.mxu0 %v4612_v42  ;;  %3681 = vmatprep.subr.bf16.mxu1 %v4614_v43  ;;  %v4668_v42 = vcombine.high %v740_v34, %v744_v35  ;;  %v4670_v43 = vcombine.high %v741_v37, %v745_v38  ;;  %v283_v28 = vld [vmem:[%s5050_s8 + $0x178] sm:$0xff] }
 0x136   : > { %3518 = vmatpush1.bf16.msra.mxu0 %v4611_v48  ;;  %3682 = vmatpush1.bf16.msra.mxu1 %v4613_v49  ;;  %v4667_v48 = vcombine.low %v740_v34, %v744_v35  ;;  %v4669_v49 = vcombine.low %v741_v37, %v745_v38  ;;  %v290_v34 = vld [vmem:[%s5050_s8 + $0x1b0] sm:$0xff]  ;;  %v287_v35 = vld [vmem:[%s5050_s8 + $0x198] sm:$0xff] }
 0x137   : > { %3519 = vmatprep.subr.bf16.mxu0 %v4620_v50  ;;  %3683 = vmatprep.subr.bf16.mxu1 %v4622_v51  ;;  %v4168_v50 = vcombine.high %v238_v25, %v242_v44  ;;  %v4170_v51 = vcombine.high %v239_v46, %v243_v47  ;;  %v291_v37 = vld [vmem:[%s5050_s8 + $0x1b8] sm:$0xff] }
 0x13a   : > { %3520 = vmatpush1.bf16.msra.mxu0 %v4619_v58  ;;  %3684 = vmatpush1.bf16.msra.mxu1 %v4621_v59  ;;  %v251_v58 = vld [vmem:[%s5050_s8 + $0x78] sm:$0xff]  ;;  %v4167_v59 = vcombine.low %v238_v25, %v242_v44  ;;  %v298_v25 = vld [vmem:[%s5050_s8 + $0x1f0] sm:$0xff] }
 0x13b   : > { %3521 = vmatprep.subr.bf16.mxu0 %v4628_v60  ;;  %3685 = vmatprep.subr.bf16.mxu1 %v4630_v61  ;;  %v4169_v60 = vcombine.low %v239_v46, %v243_v47  ;;  %v4176_v61 = vcombine.high %v246_v52, %v250_v54  ;;  %v4178_v62 = vcombine.high %v247_v56, %v251_v58  ;;  %v295_v44 = vld [vmem:[%s5050_s8 + $0x1d8] sm:$0xff] }
 0x13c   : > { %v299_v46 = vld [vmem:[%s5050_s8 + $0x1f8] sm:$0xff] }
 0x13e   : > { %3522 = vmatpush1.bf16.msra.mxu0 %v4627_v2  ;;  %3686 = vmatpush1.bf16.msra.mxu1 %v4629_v3  ;;  %v4175_v2 = vcombine.low %v246_v52, %v250_v54  ;;  %v4177_v3 = vcombine.low %v247_v56, %v251_v58  ;;  %v306_v52 = vld [vmem:[%s5050_s8 + $0x230] sm:$0xff]  ;;  %v303_v54 = vld [vmem:[%s5050_s8 + $0x218] sm:$0xff] }
 0x13f   : > { %3523 = vmatprep.subr.bf16.mxu0 %v4636_v4  ;;  %3687 = vmatprep.subr.bf16.mxu1 %v4638_v5  ;;  %v4184_v4 = vcombine.high %v254_v63, %v258_v0  ;;  %v4186_v5 = vcombine.high %v255_v39, %v259_v1  ;;  %v307_v56 = vld [vmem:[%s5050_s8 + $0x238] sm:$0xff] }
 0x142   : > { %3524 = vmatpush1.bf16.msra.mxu0 %v4635_v10  ;;  %3688 = vmatpush1.bf16.msra.mxu1 %v4637_v11  ;;  %v4183_v10 = vcombine.low %v254_v63, %v258_v0  ;;  %v4185_v11 = vcombine.low %v255_v39, %v259_v1  ;;  %v314_v63 = vld [vmem:[%s5050_s8 + $0x270] sm:$0xff]  ;;  %v311_v0 = vld [vmem:[%s5050_s8 + $0x258] sm:$0xff] }
 0x143   : > { %3525 = vmatprep.subr.bf16.mxu0 %v4644_v13  ;;  %3689 = vmatprep.subr.bf16.mxu1 %v4646_v14  ;;  %v4192_v13 = vcombine.high %v262_v6, %v266_v7  ;;  %v4194_v14 = vcombine.high %v263_v8, %v267_v9  ;;  %v315_v39 = vld [vmem:[%s5050_s8 + $0x278] sm:$0xff] }
 0x146   : > { %3526 = vmatpush1.bf16.msra.mxu0 %v4643_v53  ;;  %3690 = vmatpush1.bf16.msra.mxu1 %v4645_v20  ;;  %v4191_v53 = vcombine.low %v262_v6, %v266_v7  ;;  %v4200_v20 = vcombine.high %v270_v16, %v274_v17  ;;  %v322_v6 = vld [vmem:[%s5050_s8 + $0x2b0] sm:$0xff]  ;;  %v319_v7 = vld [vmem:[%s5050_s8 + $0x298] sm:$0xff] }
 0x147   : > { %3527 = vmatprep.subr.bf16.mxu0 %v4652_v23  ;;  %3691 = vmatprep.subr.bf16.mxu1 %v4654_v24  ;;  %v4202_v23 = vcombine.high %v271_v18, %v275_v19  ;;  %v278_v24 = vld [vmem:[%s5050_s8 + $0x150] sm:$0xff]  ;;  %v327_v17 = vld [vmem:[%s5050_s8 + $0x2d8] sm:$0xff] }
 0x148   : > { %v4207_v38 = vcombine.low %v278_v24, %v282_v26  ;;  %v330_v16 = vld [vmem:[%s5050_s8 + $0x2f0] sm:$0xff] }
 0x14a   : > { %3528 = vmatpush1.bf16.msra.mxu0 %v4651_v15  ;;  %3692 = vmatpush1.bf16.msra.mxu1 %v4653_v30  ;;  %v4201_v15 = vcombine.low %v271_v18, %v275_v19  ;;  %v4208_v30 = vcombine.high %v278_v24, %v282_v26  ;;  %v331_v18 = vld [vmem:[%s5050_s8 + $0x2f8] sm:$0xff]  ;;  %v338_v24 = vld [vmem:[%s5050_s8 + $0x330] sm:$0xff] }
 0x14b   : > { %3529 = vmatprep.subr.bf16.mxu0 %v4660_v32  ;;  %3693 = vmatprep.subr.bf16.mxu1 %v4662_v33  ;;  %v4210_v32 = vcombine.high %v279_v27, %v283_v28  ;;  %v286_v33 = vld [vmem:[%s5050_s8 + $0x190] sm:$0xff]  ;;  %v335_v26 = vld [vmem:[%s5050_s8 + $0x318] sm:$0xff] }
 0x14c   : > { %v4215_v47 = vcombine.low %v286_v33, %v290_v34 }
 0x14e   : > { %3530 = vmatpush1.bf16.msra.mxu0 %v4659_v40  ;;  %3694 = vmatpush1.bf16.msra.mxu1 %v4661_v41  ;;  %v4209_v40 = vcombine.low %v279_v27, %v283_v28  ;;  %v4216_v41 = vcombine.high %v286_v33, %v290_v34  ;;  %v339_v27 = vld [vmem:[%s5050_s8 + $0x338] sm:$0xff]  ;;  %v346_v33 = vld [vmem:[%s5050_s8 + $0x370] sm:$0xff] }
 0x14f   : > { %3531 = vmatprep.subr.bf16.mxu0 %v4668_v42  ;;  %3695 = vmatprep.subr.bf16.mxu1 %v4670_v43  ;;  %v4218_v42 = vcombine.high %v287_v35, %v291_v37  ;;  %v294_v43 = vld [vmem:[%s5050_s8 + $0x1d0] sm:$0xff]  ;;  %v343_v34 = vld [vmem:[%s5050_s8 + $0x358] sm:$0xff] }
 0x150   : > { %v4223_v58 = vcombine.low %v294_v43, %v298_v25 }
 0x152   : > { %3532 = vmatpush1.bf16.msra.mxu0 %v4667_v48  ;;  %3696 = vmatpush1.bf16.msra.mxu1 %v4669_v49  ;;  %v4217_v48 = vcombine.low %v287_v35, %v291_v37  ;;  %v4224_v49 = vcombine.high %v294_v43, %v298_v25  ;;  %v347_v35 = vld [vmem:[%s5050_s8 + $0x378] sm:$0xff]  ;;  %v354_v43 = vld [vmem:[%s5050_s8 + $0x3b0] sm:$0xff] }
 0x153   : > { %3706 = vmatprep.subr.bf16.mxu0 %v4168_v50  ;;  %3870 = vmatprep.subr.bf16.mxu1 %v4170_v51  ;;  %v4226_v50 = vcombine.high %v295_v44, %v299_v46  ;;  %v302_v51 = vld [vmem:[%s5050_s8 + $0x210] sm:$0xff]  ;;  %v351_v25 = vld [vmem:[%s5050_s8 + $0x398] sm:$0xff] }
 0x154   : > { %v4231_v1 = vcombine.low %v302_v51, %v306_v52 }
 0x155   : > { %3534 = vmatmul.mubr.bf16.vlgmr.msra.gmra.mrb[0].mxu0 %v5388_v55  ;;  %3698 = vmatmul.mubr.bf16.vlgmr.msra.gmra.mrb[0].mxu1 %v5388_v55 }
 0x156   : > { %3707 = vmatpush1.bf16.msra.mxu0 %v4167_v59  ;;  %3871 = vmatpush1.bf16.msra.mxu1 %v4169_v60  ;;  %v4225_v59 = vcombine.low %v295_v44, %v299_v46  ;;  %v4232_v60 = vcombine.high %v302_v51, %v306_v52  ;;  %v355_v44 = vld [vmem:[%s5050_s8 + $0x3b8] sm:$0xff]  ;;  %v362_v51 = vld [vmem:[%s5050_s8 + $0x3f0] sm:$0xff] }
 0x157   : > { %3708 = vmatprep.subr.bf16.mxu0 %v4176_v61  ;;  %3872 = vmatprep.subr.bf16.mxu1 %v4178_v62  ;;  %v4234_v61 = vcombine.high %v303_v54, %v307_v56  ;;  %v310_v62 = vld [vmem:[%s5050_s8 + $0x250] sm:$0xff]  ;;  %v359_v52 = vld [vmem:[%s5050_s8 + $0x3d8] sm:$0xff] }
 0x158   : > { %3738 = vmatprep.mubr.bf16.mxu0 %v5099_v57  ;;  %3902 = vmatprep.mubr.bf16.mxu1 %v5099_v57  ;;  %v4193_v57 = vcombine.low %v263_v8, %v267_v9  ;;  %v323_v8 = vld [vmem:[%s5050_s8 + $0x2b8] sm:$0xff]  ;;  %v4239_v9 = vcombine.low %v310_v62, %v314_v63 }
 0x15a   : > { %3709 = vmatpush1.bf16.msra.mxu0 %v4175_v2  ;;  %3873 = vmatpush1.bf16.msra.mxu1 %v4177_v3  ;;  %v4233_v2 = vcombine.low %v303_v54, %v307_v56  ;;  %v4240_v3 = vcombine.high %v310_v62, %v314_v63  ;;  %v363_v54 = vld [vmem:[%s5050_s8 + $0x3f8] sm:$0xff]  ;;  %v370_v62 = vld [vmem:[%s5050_s8 + $0x430] sm:$0xff] }
 0x15b   : > { %3710 = vmatprep.subr.bf16.mxu0 %v4184_v4  ;;  %3874 = vmatprep.subr.bf16.mxu1 %v4186_v5  ;;  %v4242_v4 = vcombine.high %v311_v0, %v315_v39  ;;  %v318_v5 = vld [vmem:[%s5050_s8 + $0x290] sm:$0xff]  ;;  %v367_v63 = vld [vmem:[%s5050_s8 + $0x418] sm:$0xff] }
 0x15c   : > { %v4247_v19 = vcombine.low %v318_v5, %v322_v6 }
 0x15e   : > { %3711 = vmatpush1.bf16.msra.mxu0 %v4183_v10  ;;  %3875 = vmatpush1.bf16.msra.mxu1 %v4185_v11  ;;  %v4241_v10 = vcombine.low %v311_v0, %v315_v39  ;;  %v4248_v11 = vcombine.high %v318_v5, %v322_v6  ;;  %v371_v0 = vld [vmem:[%s5050_s8 + $0x438] sm:$0xff]  ;;  %v378_v5 = vld [vmem:[%s5050_s8 + $0x470] sm:$0xff] }
 0x15f   : > { %3712 = vmatprep.subr.bf16.mxu0 %v4192_v13  ;;  %3876 = vmatprep.subr.bf16.mxu1 %v4194_v14  ;;  %v4250_v13 = vcombine.high %v319_v7, %v323_v8  ;;  %v326_v14 = vld [vmem:[%s5050_s8 + $0x2d0] sm:$0xff]  ;;  %v375_v6 = vld [vmem:[%s5050_s8 + $0x458] sm:$0xff] }
 0x160   : > { %v4255_v28 = vcombine.low %v326_v14, %v330_v16 }
 0x162   : > { %3713 = vmatpush1.bf16.msra.mxu0 %v4191_v53  ;;  %3877 = vmatpush1.bf16.msra.mxu1 %v4193_v57  ;;  %v4249_v53 = vcombine.low %v319_v7, %v323_v8  ;;  %v4256_v57 = vcombine.high %v326_v14, %v330_v16  ;;  %v379_v7 = vld [vmem:[%s5050_s8 + $0x478] sm:$0xff]  ;;  %v386_v14 = vld [vmem:[%s5050_s8 + $0x4b0] sm:$0xff] }
 0x163   : > { %3714 = vmatprep.subr.bf16.mxu0 %v4200_v20  ;;  %3878 = vmatprep.subr.bf16.mxu1 %v4202_v23  ;;  %v4258_v20 = vcombine.high %v327_v17, %v331_v18  ;;  %v334_v23 = vld [vmem:[%s5050_s8 + $0x310] sm:$0xff]  ;;  %v383_v16 = vld [vmem:[%s5050_s8 + $0x498] sm:$0xff] }
 0x164   : > { %v4263_v37 = vcombine.low %v334_v23, %v338_v24 }
 0x166   : > { %3715 = vmatpush1.bf16.msra.mxu0 %v4199_v29  ;;  %3879 = vmatpush1.bf16.msra.mxu1 %v4201_v15  ;;  %v4257_v29 = vcombine.low %v327_v17, %v331_v18  ;;  %v4264_v15 = vcombine.high %v334_v23, %v338_v24  ;;  %v387_v17 = vld [vmem:[%s5050_s8 + $0x4b8] sm:$0xff]  ;;  %v394_v23 = vld [vmem:[%s5050_s8 + $0x4f0] sm:$0xff] }
 0x167   : > { %3716 = vmatprep.subr.bf16.mxu0 %v4208_v30  ;;  %3880 = vmatprep.subr.bf16.mxu1 %v4210_v32  ;;  %v4266_v30 = vcombine.high %v335_v26, %v339_v27  ;;  %v342_v32 = vld [vmem:[%s5050_s8 + $0x350] sm:$0xff]  ;;  %v391_v24 = vld [vmem:[%s5050_s8 + $0x4d8] sm:$0xff] }
 0x168   : > { %v4271_v46 = vcombine.low %v342_v32, %v346_v33 }
 0x16a   : > { %3717 = vmatpush1.bf16.msra.mxu0 %v4207_v38  ;;  %3881 = vmatpush1.bf16.msra.mxu1 %v4209_v40  ;;  %v4265_v38 = vcombine.low %v335_v26, %v339_v27  ;;  %v4272_v40 = vcombine.high %v342_v32, %v346_v33  ;;  %v395_v26 = vld [vmem:[%s5050_s8 + $0x4f8] sm:$0xff]  ;;  %v4313_v27 = vcombine.low %v383_v16, %v387_v17 }
 0x16b   : > { %3718 = vmatprep.subr.bf16.mxu0 %v4216_v41  ;;  %3882 = vmatprep.subr.bf16.mxu1 %v4218_v42  ;;  %v4274_v41 = vcombine.high %v343_v34, %v347_v35  ;;  %v350_v42 = vld [vmem:[%s5050_s8 + $0x390] sm:$0xff]  ;;  %v399_v32 = vld [vmem:[%s5050_s8 + $0x518] sm:$0xff] }
 0x16c   : > { %v4279_v56 = vcombine.low %v350_v42, %v354_v43  ;;  %v403_v33 = vld [vmem:[%s5050_s8 + $0x538] sm:$0xff] }
 0x16e   : > { %3719 = vmatpush1.bf16.msra.mxu0 %v4215_v47  ;;  %3883 = vmatpush1.bf16.msra.mxu1 %v4217_v48  ;;  %v4273_v47 = vcombine.low %v343_v34, %v347_v35  ;;  %v4280_v48 = vcombine.high %v350_v42, %v354_v43  ;;  %v411_v42 = vld [vmem:[%s5050_s8 + $0x578] sm:$0xff] }
 0x16f   : > { %3720 = vmatprep.subr.bf16.mxu0 %v4224_v49  ;;  %3884 = vmatprep.subr.bf16.mxu1 %v4226_v50  ;;  %v4282_v49 = vcombine.high %v351_v25, %v355_v44  ;;  %v358_v50 = vld [vmem:[%s5050_s8 + $0x3d0] sm:$0xff] }
 0x170   : > { %v4287_v39 = vcombine.low %v358_v50, %v362_v51 }
 0x172   : > { %3721 = vmatpush1.bf16.msra.mxu0 %v4223_v58  ;;  %3885 = vmatpush1.bf16.msra.mxu1 %v4225_v59  ;;  %v4281_v58 = vcombine.low %v351_v25, %v355_v44  ;;  %v4288_v59 = vcombine.high %v358_v50, %v362_v51  ;;  %v4329_v25 = vcombine.low %v399_v32, %v403_v33  ;;  %v419_v50 = vld [vmem:[%s5050_s8 + $0x5b8] sm:$0xff] }
 0x173   : > { %3722 = vmatprep.subr.bf16.mxu0 %v4232_v60  ;;  %3886 = vmatprep.subr.bf16.mxu1 %v4234_v61  ;;  %v4290_v60 = vcombine.high %v359_v52, %v363_v54  ;;  %v366_v61 = vld [vmem:[%s5050_s8 + $0x410] sm:$0xff] }
 0x174   : > { %v4295_v8 = vcombine.low %v366_v61, %v370_v62 }
 0x176   : > { %3723 = vmatpush1.bf16.msra.mxu0 %v4231_v1  ;;  %3887 = vmatpush1.bf16.msra.mxu1 %v4233_v2  ;;  %v4289_v1 = vcombine.low %v359_v52, %v363_v54  ;;  %v4296_v2 = vcombine.high %v366_v61, %v370_v62  ;;  %v427_v61 = vld [vmem:[%s5050_s8 + $0x5f8] sm:$0xff] }
 0x177   : > { %3724 = vmatprep.subr.bf16.mxu0 %v4240_v3  ;;  %3888 = vmatprep.subr.bf16.mxu1 %v4242_v4  ;;  %v4298_v3 = vcombine.high %v367_v63, %v371_v0  ;;  %v374_v4 = vld [vmem:[%s5050_s8 + $0x450] sm:$0xff] }
 0x178   : > { %v4303_v18 = vcombine.low %v374_v4, %v378_v5 }
 0x17a   : > { %3725 = vmatpush1.bf16.msra.mxu0 %v4239_v9  ;;  %3889 = vmatpush1.bf16.msra.mxu1 %v4241_v10  ;;  %v4297_v9 = vcombine.low %v367_v63, %v371_v0  ;;  %v4304_v10 = vcombine.high %v374_v4, %v378_v5  ;;  %v435_v4 = vld [vmem:[%s5050_s8 + $0x638] sm:$0xff] }
 0x17b   : > { %3726 = vmatprep.subr.bf16.mxu0 %v4248_v11  ;;  %3890 = vmatprep.subr.bf16.mxu1 %v4250_v13  ;;  %v4306_v11 = vcombine.high %v375_v6, %v379_v7  ;;  %v382_v13 = vld [vmem:[%s5050_s8 + $0x490] sm:$0xff] }
 0x17e   : > { %3727 = vmatpush1.bf16.msra.mxu0 %v4247_v19  ;;  %3891 = vmatpush1.bf16.msra.mxu1 %v4249_v53  ;;  %v4305_v19 = vcombine.low %v375_v6, %v379_v7  ;;  %v4312_v53 = vcombine.high %v382_v13, %v386_v14 }
 0x17f   : > { %3728 = vmatprep.subr.bf16.mxu0 %v4256_v57  ;;  %3892 = vmatprep.subr.bf16.mxu1 %v4258_v20  ;;  %v4314_v57 = vcombine.high %v383_v16, %v387_v17  ;;  %v390_v20 = vld [vmem:[%s5050_s8 + $0x4d0] sm:$0xff] }
 0x180   : > { %v4319_v34 = vcombine.low %v390_v20, %v394_v23 }
 0x182   : > { %3729 = vmatpush1.bf16.msra.mxu0 %v4255_v28  ;;  %3893 = vmatpush1.bf16.msra.mxu1 %v4257_v29  ;;  %v4320_v28 = vcombine.high %v390_v20, %v394_v23  ;;  %v4322_v29 = vcombine.high %v391_v24, %v395_v26  ;;  %v451_v20 = vld [vmem:[%s5050_s8 + $0x6b8] sm:$0xff] }
 0x183   : > { %3730 = vmatprep.subr.bf16.mxu0 %v4264_v15  ;;  %3894 = vmatprep.subr.bf16.mxu1 %v4266_v30  ;;  %v398_v15 = vld [vmem:[%s5050_s8 + $0x510] sm:$0xff] }
 0x184   : > { %v402_v30 = vld [vmem:[%s5050_s8 + $0x530] sm:$0xff] }
 0x185   : > { %v4328_v35 = vcombine.high %v398_v15, %v402_v30  ;;  %v4327_v43 = vcombine.low %v398_v15, %v402_v30  ;;  %v459_v15 = vld [vmem:[%s5050_s8 + $0x6f8] sm:$0xff] }
 0x186   : > { %3731 = vmatpush1.bf16.msra.mxu0 %v4263_v37  ;;  %3895 = vmatpush1.bf16.msra.mxu1 %v4265_v38  ;;  %v4330_v37 = vcombine.high %v399_v32, %v403_v33  ;;  %v406_v38 = vld [vmem:[%s5050_s8 + $0x550] sm:$0xff] }
 0x187   : > { %3732 = vmatprep.subr.bf16.mxu0 %v4272_v40  ;;  %3896 = vmatprep.subr.bf16.mxu1 %v4274_v41  ;;  %v410_v40 = vld [vmem:[%s5050_s8 + $0x570] sm:$0xff]  ;;  %v407_v41 = vld [vmem:[%s5050_s8 + $0x558] sm:$0xff] }
 0x188   : > { %v4336_v44 = vcombine.high %v406_v38, %v410_v40  ;;  %v4335_v51 = vcombine.low %v406_v38, %v410_v40  ;;  %v4337_v52 = vcombine.low %v407_v41, %v411_v42  ;;  %v467_v38 = vld [vmem:[%s5050_s8 + $0x738] sm:$0xff] }
 0x18a   : > { %3733 = vmatpush1.bf16.msra.mxu0 %v4271_v46  ;;  %3897 = vmatpush1.bf16.msra.mxu1 %v4273_v47  ;;  %v4338_v46 = vcombine.high %v407_v41, %v411_v42  ;;  %v414_v47 = vld [vmem:[%s5050_s8 + $0x590] sm:$0xff] }
 0x18b   : > { %3734 = vmatprep.subr.bf16.mxu0 %v4280_v48  ;;  %3898 = vmatprep.subr.bf16.mxu1 %v4282_v49  ;;  %v418_v48 = vld [vmem:[%s5050_s8 + $0x5b0] sm:$0xff]  ;;  %v415_v49 = vld [vmem:[%s5050_s8 + $0x598] sm:$0xff] }
 0x18c   : > { %v4344_v54 = vcombine.high %v414_v47, %v418_v48  ;;  %v4343_v62 = vcombine.low %v414_v47, %v418_v48  ;;  %v4345_v63 = vcombine.low %v415_v49, %v419_v50  ;;  %v475_v47 = vld [vmem:[%s5050_s8 + $0x778] sm:$0xff] }
 0x18e   : > { %3735 = vmatpush1.bf16.msra.mxu0 %v4279_v56  ;;  %3899 = vmatpush1.bf16.msra.mxu1 %v4281_v58  ;;  %v4346_v56 = vcombine.high %v415_v49, %v419_v50  ;;  %v422_v58 = vld [vmem:[%s5050_s8 + $0x5d0] sm:$0xff] }
 0x18f   : > { %3736 = vmatprep.subr.bf16.mxu0 %v4288_v59  ;;  %3900 = vmatprep.subr.bf16.mxu1 %v4290_v60  ;;  %v426_v59 = vld [vmem:[%s5050_s8 + $0x5f0] sm:$0xff]  ;;  %v423_v60 = vld [vmem:[%s5050_s8 + $0x5d8] sm:$0xff] }
 0x190   : > { %v4352_v0 = vcombine.high %v422_v58, %v426_v59  ;;  %v4351_v5 = vcombine.low %v422_v58, %v426_v59  ;;  %v4353_v6 = vcombine.low %v423_v60, %v427_v61  ;;  %v483_v58 = vld [vmem:[%s5050_s8 + $0x7b8] sm:$0xff] }
 0x192   : > { %3737 = vmatpush1.bf16.msra.mxu0 %v4287_v39  ;;  %3901 = vmatpush1.bf16.msra.mxu1 %v4289_v1  ;;  %v4354_v39 = vcombine.high %v423_v60, %v427_v61  ;;  %v430_v1 = vld [vmem:[%s5050_s8 + $0x610] sm:$0xff] }
 0x193   : > { %3747 = vmatprep.subr.bf16.mxu0 %v4296_v2  ;;  %3911 = vmatprep.subr.bf16.mxu1 %v4298_v3  ;;  %v434_v2 = vld [vmem:[%s5050_s8 + $0x630] sm:$0xff]  ;;  %v431_v3 = vld [vmem:[%s5050_s8 + $0x618] sm:$0xff] }
 0x194   : > { %v4360_v7 = vcombine.high %v430_v1, %v434_v2  ;;  %v4361_v16 = vcombine.low %v431_v3, %v435_v4 }
 0x195   : > { %3739 = vmatmul.mubr.bf16.vlgmr.msra.gmra.mrb[4].mxu0 %v5145_v12  ;;  %3903 = vmatmul.mubr.bf16.vlgmr.msra.gmra.mrb[4].mxu1 %v5145_v12  ;;  %v4311_v12 = vcombine.low %v382_v13, %v386_v14  ;;  %v443_v13 = vld [vmem:[%s5050_s8 + $0x678] sm:$0xff]  ;;  %v4359_v14 = vcombine.low %v430_v1, %v434_v2 }
 0x196   : > { %3748 = vmatpush1.bf16.msra.mxu0 %v4295_v8  ;;  %3912 = vmatpush1.bf16.msra.mxu1 %v4297_v9  ;;  %v4362_v8 = vcombine.high %v431_v3, %v435_v4  ;;  %v438_v9 = vld [vmem:[%s5050_s8 + $0x650] sm:$0xff]  ;;  %v491_v1 = vld [vmem:[%s5050_s8 + $0x7f8] sm:$0xff] }
 0x197   : > { %3749 = vmatprep.subr.bf16.mxu0 %v4304_v10  ;;  %3913 = vmatprep.subr.bf16.mxu1 %v4306_v11  ;;  %v442_v10 = vld [vmem:[%s5050_s8 + $0x670] sm:$0xff]  ;;  %v439_v11 = vld [vmem:[%s5050_s8 + $0x658] sm:$0xff] }
 0x198   : > { %3779 = vmatprep.mubr.bf16.mxu0 %v5158_v21  ;;  %3943 = vmatprep.mubr.bf16.mxu1 %v5158_v21  ;;  %v4321_v21 = vcombine.low %v391_v24, %v395_v26  ;;  %v4368_v17 = vcombine.high %v438_v9, %v442_v10  ;;  %v4367_v23 = vcombine.low %v438_v9, %v442_v10  ;;  %v499_v9 = vld [vmem:[%s5050_s8 + $0x838] sm:$0xff] }
 0x199   : > { %v4369_v24 = vcombine.low %v439_v11, %v443_v13 }
 0x19a   : > { %3750 = vmatpush1.bf16.msra.mxu0 %v4303_v18  ;;  %3914 = vmatpush1.bf16.msra.mxu1 %v4305_v19  ;;  %v4370_v18 = vcombine.high %v439_v11, %v443_v13  ;;  %v446_v19 = vld [vmem:[%s5050_s8 + $0x690] sm:$0xff] }
 0x19b   : > { %3751 = vmatprep.subr.bf16.mxu0 %v4312_v53  ;;  %3915 = vmatprep.subr.bf16.mxu1 %v4314_v57  ;;  %v450_v53 = vld [vmem:[%s5050_s8 + $0x6b0] sm:$0xff]  ;;  %v447_v57 = vld [vmem:[%s5050_s8 + $0x698] sm:$0xff] }
 0x19c   : > { %v4376_v26 = vcombine.high %v446_v19, %v450_v53  ;;  %v4375_v30 = vcombine.low %v446_v19, %v450_v53  ;;  %v4377_v32 = vcombine.low %v447_v57, %v451_v20  ;;  %v507_v19 = vld [vmem:[%s5050_s8 + $0x878] sm:$0xff] }
 0x19e   : > { %3752 = vmatpush1.bf16.msra.mxu0 %v4311_v12  ;;  %3916 = vmatpush1.bf16.msra.mxu1 %v4313_v27  ;;  %v4378_v12 = vcombine.high %v447_v57, %v451_v20  ;;  %v454_v27 = vld [vmem:[%s5050_s8 + $0x6d0] sm:$0xff] }
 0x19f   : > { %3753 = vmatprep.subr.bf16.mxu0 %v4320_v28  ;;  %3917 = vmatprep.subr.bf16.mxu1 %v4322_v29  ;;  %v458_v28 = vld [vmem:[%s5050_s8 + $0x6f0] sm:$0xff]  ;;  %v455_v29 = vld [vmem:[%s5050_s8 + $0x6d8] sm:$0xff] }
 0x1a0   : > { %v4384_v33 = vcombine.high %v454_v27, %v458_v28  ;;  %v4383_v40 = vcombine.low %v454_v27, %v458_v28  ;;  %v4385_v41 = vcombine.low %v455_v29, %v459_v15  ;;  %v515_v27 = vld [vmem:[%s5050_s8 + $0x8b8] sm:$0xff] }
 0x1a2   : > { %3754 = vmatpush1.bf16.msra.mxu0 %v4319_v34  ;;  %3918 = vmatpush1.bf16.msra.mxu1 %v4321_v21  ;;  %v4386_v34 = vcombine.high %v455_v29, %v459_v15  ;;  %v462_v21 = vld [vmem:[%s5050_s8 + $0x710] sm:$0xff] }
 0x1a3   : > { %3755 = vmatprep.subr.bf16.mxu0 %v4328_v35  ;;  %3919 = vmatprep.subr.bf16.mxu1 %v4330_v37  ;;  %v466_v35 = vld [vmem:[%s5050_s8 + $0x730] sm:$0xff]  ;;  %v463_v37 = vld [vmem:[%s5050_s8 + $0x718] sm:$0xff] }
 0x1a4   : > { %v4392_v42 = vcombine.high %v462_v21, %v466_v35  ;;  %v4391_v48 = vcombine.low %v462_v21, %v466_v35  ;;  %v4393_v49 = vcombine.low %v463_v37, %v467_v38  ;;  %v523_v21 = vld [vmem:[%s5050_s8 + $0x8f8] sm:$0xff] }
 0x1a6   : > { %3756 = vmatpush1.bf16.msra.mxu0 %v4327_v43  ;;  %3920 = vmatpush1.bf16.msra.mxu1 %v4329_v25  ;;  %v4394_v43 = vcombine.high %v463_v37, %v467_v38  ;;  %v470_v25 = vld [vmem:[%s5050_s8 + $0x750] sm:$0xff] }
 0x1a7   : > { %3757 = vmatprep.subr.bf16.mxu0 %v4336_v44  ;;  %3921 = vmatprep.subr.bf16.mxu1 %v4338_v46  ;;  %v474_v44 = vld [vmem:[%s5050_s8 + $0x770] sm:$0xff]  ;;  %v471_v46 = vld [vmem:[%s5050_s8 + $0x758] sm:$0xff] }
 0x1a8   : > { %v4400_v50 = vcombine.high %v470_v25, %v474_v44  ;;  %v4399_v59 = vcombine.low %v470_v25, %v474_v44  ;;  %v4401_v60 = vcombine.low %v471_v46, %v475_v47 }
 0x1aa   : > { %3758 = vmatpush1.bf16.msra.mxu0 %v4335_v51  ;;  %3922 = vmatpush1.bf16.msra.mxu1 %v4337_v52  ;;  %v4402_v51 = vcombine.high %v471_v46, %v475_v47  ;;  %v478_v52 = vld [vmem:[%s5050_s8 + $0x790] sm:$0xff] }
 0x1ab   : > { %3759 = vmatprep.subr.bf16.mxu0 %v4344_v54  ;;  %3923 = vmatprep.subr.bf16.mxu1 %v4346_v56  ;;  %v482_v54 = vld [vmem:[%s5050_s8 + $0x7b0] sm:$0xff]  ;;  %v479_v56 = vld [vmem:[%s5050_s8 + $0x798] sm:$0xff] }
 0x1ac   : > { %v4408_v61 = vcombine.high %v478_v52, %v482_v54  ;;  %v4407_v2 = vcombine.low %v478_v52, %v482_v54  ;;  %v4409_v3 = vcombine.low %v479_v56, %v483_v58  ;;  %v534_v47 = vld [vmem:[%s5050_s8 + $0x950] sm:$0xff] }
 0x1ae   : > { %3760 = vmatpush1.bf16.msra.mxu0 %v4343_v62  ;;  %3924 = vmatpush1.bf16.msra.mxu1 %v4345_v63  ;;  %v4410_v62 = vcombine.high %v479_v56, %v483_v58  ;;  %v486_v63 = vld [vmem:[%s5050_s8 + $0x7d0] sm:$0xff] }
 0x1af   : > { %3761 = vmatprep.subr.bf16.mxu0 %v4352_v0  ;;  %3925 = vmatprep.subr.bf16.mxu1 %v4354_v39  ;;  %v490_v0 = vld [vmem:[%s5050_s8 + $0x7f0] sm:$0xff]  ;;  %v487_v39 = vld [vmem:[%s5050_s8 + $0x7d8] sm:$0xff] }
 0x1b0   : > { %v4416_v4 = vcombine.high %v486_v63, %v490_v0  ;;  %v4415_v10 = vcombine.low %v486_v63, %v490_v0  ;;  %v4417_v11 = vcombine.low %v487_v39, %v491_v1  ;;  %v542_v58 = vld [vmem:[%s5050_s8 + $0x990] sm:$0xff] }
 0x1b2   : > { %3762 = vmatpush1.bf16.msra.mxu0 %v4351_v5  ;;  %3926 = vmatpush1.bf16.msra.mxu1 %v4353_v6  ;;  %v4418_v5 = vcombine.high %v487_v39, %v491_v1  ;;  %v494_v6 = vld [vmem:[%s5050_s8 + $0x810] sm:$0xff] }
 0x1b3   : > { %3763 = vmatprep.subr.bf16.mxu0 %v4360_v7  ;;  %3927 = vmatprep.subr.bf16.mxu1 %v4362_v8  ;;  %v498_v7 = vld [vmem:[%s5050_s8 + $0x830] sm:$0xff]  ;;  %v495_v8 = vld [vmem:[%s5050_s8 + $0x818] sm:$0xff] }
 0x1b4   : > { %v4424_v13 = vcombine.high %v494_v6, %v498_v7  ;;  %v4423_v53 = vcombine.low %v494_v6, %v498_v7  ;;  %v4425_v57 = vcombine.low %v495_v8, %v499_v9  ;;  %v550_v1 = vld [vmem:[%s5050_s8 + $0x9d0] sm:$0xff] }
 0x1b6   : > { %3764 = vmatpush1.bf16.msra.mxu0 %v4359_v14  ;;  %3928 = vmatpush1.bf16.msra.mxu1 %v4361_v16  ;;  %v4426_v14 = vcombine.high %v495_v8, %v499_v9  ;;  %v502_v16 = vld [vmem:[%s5050_s8 + $0x850] sm:$0xff] }
 0x1b7   : > { %3765 = vmatprep.subr.bf16.mxu0 %v4368_v17  ;;  %3929 = vmatprep.subr.bf16.mxu1 %v4370_v18  ;;  %v506_v17 = vld [vmem:[%s5050_s8 + $0x870] sm:$0xff]  ;;  %v503_v18 = vld [vmem:[%s5050_s8 + $0x858] sm:$0xff] }
 0x1b8   : > { %v4432_v20 = vcombine.high %v502_v16, %v506_v17  ;;  %v4431_v28 = vcombine.low %v502_v16, %v506_v17  ;;  %v4433_v29 = vcombine.low %v503_v18, %v507_v19  ;;  %v558_v9 = vld [vmem:[%s5050_s8 + $0xa10] sm:$0xff] }
 0x1ba   : > { %3766 = vmatpush1.bf16.msra.mxu0 %v4367_v23  ;;  %3930 = vmatpush1.bf16.msra.mxu1 %v4369_v24  ;;  %v4434_v23 = vcombine.high %v503_v18, %v507_v19  ;;  %v510_v24 = vld [vmem:[%s5050_s8 + $0x890] sm:$0xff] }
 0x1bb   : > { %3767 = vmatprep.subr.bf16.mxu0 %v4376_v26  ;;  %3931 = vmatprep.subr.bf16.mxu1 %v4378_v12  ;;  %v514_v26 = vld [vmem:[%s5050_s8 + $0x8b0] sm:$0xff]  ;;  %v511_v12 = vld [vmem:[%s5050_s8 + $0x898] sm:$0xff] }
 0x1bc   : > { %v4440_v15 = vcombine.high %v510_v24, %v514_v26  ;;  %v4441_v35 = vcombine.low %v511_v12, %v515_v27  ;;  %v566_v19 = vld [vmem:[%s5050_s8 + $0xa50] sm:$0xff] }
 0x1be   : > { %3768 = vmatpush1.bf16.msra.mxu0 %v4375_v30  ;;  %3932 = vmatpush1.bf16.msra.mxu1 %v4377_v32  ;;  %v4442_v30 = vcombine.high %v511_v12, %v515_v27  ;;  %v518_v32 = vld [vmem:[%s5050_s8 + $0x8d0] sm:$0xff] }
 0x1bf   : > { %3769 = vmatprep.subr.bf16.mxu0 %v4384_v33  ;;  %3933 = vmatprep.subr.bf16.mxu1 %v4386_v34  ;;  %v522_v33 = vld [vmem:[%s5050_s8 + $0x8f0] sm:$0xff]  ;;  %v519_v34 = vld [vmem:[%s5050_s8 + $0x8d8] sm:$0xff] }
 0x1c0   : > { %v4448_v37 = vcombine.high %v518_v32, %v522_v33  ;;  %v4450_v38 = vcombine.high %v519_v34, %v523_v21  ;;  %v4447_v25 = vcombine.low %v518_v32, %v522_v33  ;;  %v574_v27 = vld [vmem:[%s5050_s8 + $0xa90] sm:$0xff] }
 0x1c2   : > { %3770 = vmatpush1.bf16.msra.mxu0 %v4383_v40  ;;  %3934 = vmatpush1.bf16.msra.mxu1 %v4385_v41  ;;  %v526_v40 = vld [vmem:[%s5050_s8 + $0x910] sm:$0xff] }
 0x1c3   : > { %3771 = vmatprep.subr.bf16.mxu0 %v4392_v42  ;;  %3935 = vmatprep.subr.bf16.mxu1 %v4394_v43  ;;  %v530_v41 = vld [vmem:[%s5050_s8 + $0x930] sm:$0xff]  ;;  %v527_v42 = vld [vmem:[%s5050_s8 + $0x918] sm:$0xff] }
 0x1c4   : > { %v531_v43 = vld [vmem:[%s5050_s8 + $0x938] sm:$0xff]  ;;  %v4456_v44 = vcombine.high %v526_v40, %v530_v41 }
 0x1c5   : > { %v4458_v46 = vcombine.high %v527_v42, %v531_v43  ;;  %v4457_v52 = vcombine.low %v527_v42, %v531_v43  ;;  %v590_v43 = vld [vmem:[%s5050_s8 + $0xb10] sm:$0xff] }
 0x1c6   : > { %3772 = vmatpush1.bf16.msra.mxu0 %v4391_v48  ;;  %3936 = vmatpush1.bf16.msra.mxu1 %v4393_v49  ;;  %v538_v48 = vld [vmem:[%s5050_s8 + $0x970] sm:$0xff]  ;;  %v535_v49 = vld [vmem:[%s5050_s8 + $0x958] sm:$0xff] }
 0x1c7   : > { %3773 = vmatprep.subr.bf16.mxu0 %v4400_v50  ;;  %3937 = vmatprep.subr.bf16.mxu1 %v4402_v51  ;;  %v539_v50 = vld [vmem:[%s5050_s8 + $0x978] sm:$0xff]  ;;  %v4455_v51 = vcombine.low %v526_v40, %v530_v41  ;;  %v4464_v54 = vcombine.high %v534_v47, %v538_v48 }
 0x1c8   : > { %v4466_v56 = vcombine.high %v535_v49, %v539_v50  ;;  %v4465_v63 = vcombine.low %v535_v49, %v539_v50  ;;  %v598_v50 = vld [vmem:[%s5050_s8 + $0xb50] sm:$0xff] }
 0x1ca   : > { %3774 = vmatpush1.bf16.msra.mxu0 %v4399_v59  ;;  %3938 = vmatpush1.bf16.msra.mxu1 %v4401_v60  ;;  %v546_v59 = vld [vmem:[%s5050_s8 + $0x9b0] sm:$0xff]  ;;  %v543_v60 = vld [vmem:[%s5050_s8 + $0x998] sm:$0xff] }
 0x1cb   : > { %3775 = vmatprep.subr.bf16.mxu0 %v4408_v61  ;;  %3939 = vmatprep.subr.bf16.mxu1 %v4410_v62  ;;  %v547_v61 = vld [vmem:[%s5050_s8 + $0x9b8] sm:$0xff]  ;;  %v4463_v62 = vcombine.low %v534_v47, %v538_v48  ;;  %v4472_v0 = vcombine.high %v542_v58, %v546_v59 }
 0x1cc   : > { %v4474_v39 = vcombine.high %v543_v60, %v547_v61  ;;  %v4473_v6 = vcombine.low %v543_v60, %v547_v61  ;;  %v606_v61 = vld [vmem:[%s5050_s8 + $0xb90] sm:$0xff] }
 0x1ce   : > { %3776 = vmatpush1.bf16.msra.mxu0 %v4407_v2  ;;  %3940 = vmatpush1.bf16.msra.mxu1 %v4409_v3  ;;  %v554_v2 = vld [vmem:[%s5050_s8 + $0x9f0] sm:$0xff]  ;;  %v551_v3 = vld [vmem:[%s5050_s8 + $0x9d8] sm:$0xff] }
 0x1cf   : > { %3777 = vmatprep.subr.bf16.mxu0 %v4416_v4  ;;  %3941 = vmatprep.subr.bf16.mxu1 %v4418_v5  ;;  %v555_v4 = vld [vmem:[%s5050_s8 + $0x9f8] sm:$0xff]  ;;  %v4471_v5 = vcombine.low %v542_v58, %v546_v59  ;;  %v4480_v7 = vcombine.high %v550_v1, %v554_v2 }
 0x1d0   : > { %v4482_v8 = vcombine.high %v551_v3, %v555_v4  ;;  %v4481_v16 = vcombine.low %v551_v3, %v555_v4  ;;  %v614_v4 = vld [vmem:[%s5050_s8 + $0xbd0] sm:$0xff] }
 0x1d2   : > { %3778 = vmatpush1.bf16.msra.mxu0 %v4415_v10  ;;  %3942 = vmatpush1.bf16.msra.mxu1 %v4417_v11  ;;  %v562_v10 = vld [vmem:[%s5050_s8 + $0xa30] sm:$0xff]  ;;  %v559_v11 = vld [vmem:[%s5050_s8 + $0xa18] sm:$0xff] }
 0x1d3   : > { %3788 = vmatprep.subr.bf16.mxu0 %v4424_v13  ;;  %3952 = vmatprep.subr.bf16.mxu1 %v4426_v14  ;;  %v563_v13 = vld [vmem:[%s5050_s8 + $0xa38] sm:$0xff]  ;;  %v4479_v14 = vcombine.low %v550_v1, %v554_v2  ;;  %v4488_v17 = vcombine.high %v558_v9, %v562_v10 }
 0x1d4   : > { %v4490_v18 = vcombine.high %v559_v11, %v563_v13 }
 0x1d5   : > { %3780 = vmatmul.mubr.bf16.vlgmr.msra.gmra.mrb[4].mxu0 %v5226_v22  ;;  %3944 = vmatmul.mubr.bf16.vlgmr.msra.gmra.mrb[4].mxu1 %v5226_v22  ;;  %v4439_v22 = vcombine.low %v510_v24, %v514_v26  ;;  %v4489_v24 = vcombine.low %v559_v11, %v563_v13  ;;  %v622_v13 = vld [vmem:[%s5050_s8 + $0xc10] sm:$0xff] }
 0x1d6   : > { %3789 = vmatpush1.bf16.msra.mxu0 %v4423_v53  ;;  %3953 = vmatpush1.bf16.msra.mxu1 %v4425_v57  ;;  %v570_v53 = vld [vmem:[%s5050_s8 + $0xa70] sm:$0xff]  ;;  %v567_v57 = vld [vmem:[%s5050_s8 + $0xa58] sm:$0xff] }
 0x1d7   : > { %3790 = vmatprep.subr.bf16.mxu0 %v4432_v20  ;;  %3954 = vmatprep.subr.bf16.mxu1 %v4434_v23  ;;  %v571_v20 = vld [vmem:[%s5050_s8 + $0xa78] sm:$0xff]  ;;  %v4487_v23 = vcombine.low %v558_v9, %v562_v10  ;;  %v4496_v26 = vcombine.high %v566_v19, %v570_v53 }
 0x1d8   : > { %3820 = vmatprep.mubr.bf16.mxu0 %v5239_v31  ;;  %3984 = vmatprep.mubr.bf16.mxu1 %v5239_v31  ;;  %v4449_v31 = vcombine.low %v519_v34, %v523_v21  ;;  %v4498_v12 = vcombine.high %v567_v57, %v571_v20  ;;  %v4497_v32 = vcombine.low %v567_v57, %v571_v20  ;;  %v582_v21 = vld [vmem:[%s5050_s8 + $0xad0] sm:$0xff] }
 0x1d9   : > { %v630_v20 = vld [vmem:[%s5050_s8 + $0xc50] sm:$0xff] }
 0x1da   : > { %3791 = vmatpush1.bf16.msra.mxu0 %v4431_v28  ;;  %3955 = vmatpush1.bf16.msra.mxu1 %v4433_v29  ;;  %v578_v28 = vld [vmem:[%s5050_s8 + $0xab0] sm:$0xff]  ;;  %v575_v29 = vld [vmem:[%s5050_s8 + $0xa98] sm:$0xff] }
 0x1db   : > { %3792 = vmatprep.subr.bf16.mxu0 %v4440_v15  ;;  %3956 = vmatprep.subr.bf16.mxu1 %v4442_v30  ;;  %v579_v15 = vld [vmem:[%s5050_s8 + $0xab8] sm:$0xff]  ;;  %v4495_v30 = vcombine.low %v566_v19, %v570_v53  ;;  %v4504_v33 = vcombine.high %v574_v27, %v578_v28 }
 0x1dc   : > { %v4506_v34 = vcombine.high %v575_v29, %v579_v15  ;;  %v4505_v40 = vcombine.low %v575_v29, %v579_v15  ;;  %v638_v15 = vld [vmem:[%s5050_s8 + $0xc90] sm:$0xff] }
 0x1de   : > { %3793 = vmatpush1.bf16.msra.mxu0 %v4439_v22  ;;  %3957 = vmatpush1.bf16.msra.mxu1 %v4441_v35  ;;  %v586_v22 = vld [vmem:[%s5050_s8 + $0xaf0] sm:$0xff]  ;;  %v583_v35 = vld [vmem:[%s5050_s8 + $0xad8] sm:$0xff] }
 0x1df   : > { %3794 = vmatprep.subr.bf16.mxu0 %v4448_v37  ;;  %3958 = vmatprep.subr.bf16.mxu1 %v4450_v38  ;;  %v587_v37 = vld [vmem:[%s5050_s8 + $0xaf8] sm:$0xff]  ;;  %v4503_v38 = vcombine.low %v574_v27, %v578_v28  ;;  %v4512_v41 = vcombine.high %v582_v21, %v586_v22 }
 0x1e0   : > { %v4514_v42 = vcombine.high %v583_v35, %v587_v37  ;;  %v4513_v47 = vcombine.low %v583_v35, %v587_v37  ;;  %v646_v37 = vld [vmem:[%s5050_s8 + $0xcd0] sm:$0xff] }
 0x1e2   : > { %3795 = vmatpush1.bf16.msra.mxu0 %v4447_v25  ;;  %3959 = vmatpush1.bf16.msra.mxu1 %v4449_v31  ;;  %v594_v25 = vld [vmem:[%s5050_s8 + $0xb30] sm:$0xff]  ;;  %v591_v31 = vld [vmem:[%s5050_s8 + $0xb18] sm:$0xff] }
 0x1e3   : > { %3796 = vmatprep.subr.bf16.mxu0 %v4456_v44  ;;  %3960 = vmatprep.subr.bf16.mxu1 %v4458_v46  ;;  %v595_v44 = vld [vmem:[%s5050_s8 + $0xb38] sm:$0xff]  ;;  %v4511_v46 = vcombine.low %v582_v21, %v586_v22  ;;  %v4520_v48 = vcombine.high %v590_v43, %v594_v25 }
 0x1e4   : > { %v4522_v49 = vcombine.high %v591_v31, %v595_v44  ;;  %v4521_v58 = vcombine.low %v591_v31, %v595_v44  ;;  %v654_v44 = vld [vmem:[%s5050_s8 + $0xd10] sm:$0xff] }
 0x1e6   : > { %3797 = vmatpush1.bf16.msra.mxu0 %v4455_v51  ;;  %3961 = vmatpush1.bf16.msra.mxu1 %v4457_v52  ;;  %v602_v51 = vld [vmem:[%s5050_s8 + $0xb70] sm:$0xff]  ;;  %v599_v52 = vld [vmem:[%s5050_s8 + $0xb58] sm:$0xff] }
 0x1e7   : > { %3798 = vmatprep.subr.bf16.mxu0 %v4464_v54  ;;  %3962 = vmatprep.subr.bf16.mxu1 %v4466_v56  ;;  %v603_v54 = vld [vmem:[%s5050_s8 + $0xb78] sm:$0xff]  ;;  %v4519_v56 = vcombine.low %v590_v43, %v594_v25  ;;  %v4528_v59 = vcombine.high %v598_v50, %v602_v51 }
 0x1e8   : > { %v4530_v60 = vcombine.high %v599_v52, %v603_v54  ;;  %v4529_v1 = vcombine.low %v599_v52, %v603_v54  ;;  %v662_v54 = vld [vmem:[%s5050_s8 + $0xd50] sm:$0xff] }
 0x1ea   : > { %3799 = vmatpush1.bf16.msra.mxu0 %v4463_v62  ;;  %3963 = vmatpush1.bf16.msra.mxu1 %v4465_v63  ;;  %v610_v62 = vld [vmem:[%s5050_s8 + $0xbb0] sm:$0xff]  ;;  %v607_v63 = vld [vmem:[%s5050_s8 + $0xb98] sm:$0xff] }
 0x1eb   : > { %3800 = vmatprep.subr.bf16.mxu0 %v4472_v0  ;;  %3964 = vmatprep.subr.bf16.mxu1 %v4474_v39  ;;  %v611_v0 = vld [vmem:[%s5050_s8 + $0xbb8] sm:$0xff]  ;;  %v4527_v39 = vcombine.low %v598_v50, %v602_v51  ;;  %v4536_v2 = vcombine.high %v606_v61, %v610_v62 }
 0x1ec   : > { %v4538_v3 = vcombine.high %v607_v63, %v611_v0  ;;  %v4537_v9 = vcombine.low %v607_v63, %v611_v0 }
 0x1ee   : > { %3801 = vmatpush1.bf16.msra.mxu0 %v4471_v5  ;;  %3965 = vmatpush1.bf16.msra.mxu1 %v4473_v6  ;;  %v618_v5 = vld [vmem:[%s5050_s8 + $0xbf0] sm:$0xff]  ;;  %v615_v6 = vld [vmem:[%s5050_s8 + $0xbd8] sm:$0xff] }
 0x1ef   : > { %3802 = vmatprep.subr.bf16.mxu0 %v4480_v7  ;;  %3966 = vmatprep.subr.bf16.mxu1 %v4482_v8  ;;  %v619_v7 = vld [vmem:[%s5050_s8 + $0xbf8] sm:$0xff]  ;;  %v4535_v8 = vcombine.low %v606_v61, %v610_v62  ;;  %v4544_v10 = vcombine.high %v614_v4, %v618_v5  ;;  %v5620_v62 = vld [vmem:[%s5056_s29] sm:$0xff] }
 0x1f0   : > { %v4546_v11 = vcombine.high %v615_v6, %v619_v7  ;;  %v4545_v19 = vcombine.low %v615_v6, %v619_v7  ;;  %v671_v7 = vld [vmem:[%s5050_s8 + $0xd98] sm:$0xff] }
 0x1f2   : > { %3803 = vmatpush1.bf16.msra.mxu0 %v4479_v14  ;;  %3967 = vmatpush1.bf16.msra.mxu1 %v4481_v16  ;;  %v626_v14 = vld [vmem:[%s5050_s8 + $0xc30] sm:$0xff]  ;;  %v623_v16 = vld [vmem:[%s5050_s8 + $0xc18] sm:$0xff] }
 0x1f3   : > { %3804 = vmatprep.subr.bf16.mxu0 %v4488_v17  ;;  %3968 = vmatprep.subr.bf16.mxu1 %v4490_v18  ;;  %v627_v17 = vld [vmem:[%s5050_s8 + $0xc38] sm:$0xff]  ;;  %v4543_v18 = vcombine.low %v614_v4, %v618_v5  ;;  %v4552_v53 = vcombine.high %v622_v13, %v626_v14  ;;  %v670_v4 = vld [vmem:[%s5050_s8 + $0xd90] sm:$0xff] }
 0x1f4   : > { %v4554_v57 = vcombine.high %v623_v16, %v627_v17  ;;  %v4553_v27 = vcombine.low %v623_v16, %v627_v17  ;;  %v674_v5 = vld [vmem:[%s5050_s8 + $0xdb0] sm:$0xff] }
 0x1f5   : > { %v4600_v16 = vcombine.high %v670_v4, %v674_v5 }
 0x1f6   : > { %3805 = vmatpush1.bf16.msra.mxu0 %v4487_v23  ;;  %3969 = vmatpush1.bf16.msra.mxu1 %v4489_v24  ;;  %v634_v23 = vld [vmem:[%s5050_s8 + $0xc70] sm:$0xff]  ;;  %v631_v24 = vld [vmem:[%s5050_s8 + $0xc58] sm:$0xff] }
 0x1f7   : > { %3806 = vmatprep.subr.bf16.mxu0 %v4496_v26  ;;  %3970 = vmatprep.subr.bf16.mxu1 %v4498_v12  ;;  %v635_v26 = vld [vmem:[%s5050_s8 + $0xc78] sm:$0xff]  ;;  %v4551_v12 = vcombine.low %v622_v13, %v626_v14  ;;  %v4560_v28 = vcombine.high %v630_v20, %v634_v23 }
 0x1f8   : > { %v4562_v29 = vcombine.high %v631_v24, %v635_v26  ;;  %v4561_v21 = vcombine.low %v631_v24, %v635_v26  ;;  %v679_v24 = vld [vmem:[%s5050_s8 + $0xdd8] sm:$0xff] }
 0x1f9   : > { %v683_v26 = vld [vmem:[%s5050_s8 + $0xdf8] sm:$0xff] }
 0x1fa   : > { %3807 = vmatpush1.bf16.msra.mxu0 %v4495_v30  ;;  %3971 = vmatpush1.bf16.msra.mxu1 %v4497_v32  ;;  %v642_v30 = vld [vmem:[%s5050_s8 + $0xcb0] sm:$0xff]  ;;  %v639_v32 = vld [vmem:[%s5050_s8 + $0xc98] sm:$0xff] }
 0x1fb   : > { %3808 = vmatprep.subr.bf16.mxu0 %v4504_v33  ;;  %3972 = vmatprep.subr.bf16.mxu1 %v4506_v34  ;;  %v643_v33 = vld [vmem:[%s5050_s8 + $0xcb8] sm:$0xff]  ;;  %v4559_v34 = vcombine.low %v630_v20, %v634_v23  ;;  %v4568_v22 = vcombine.high %v638_v15, %v642_v30 }
 0x1fc   : > { %v4570_v35 = vcombine.high %v639_v32, %v643_v33  ;;  %v4569_v43 = vcombine.low %v639_v32, %v643_v33 }
 0x1fe   : > { %3809 = vmatpush1.bf16.msra.mxu0 %v4503_v38  ;;  %3973 = vmatpush1.bf16.msra.mxu1 %v4505_v40  ;;  %v650_v38 = vld [vmem:[%s5050_s8 + $0xcf0] sm:$0xff]  ;;  %v647_v40 = vld [vmem:[%s5050_s8 + $0xcd8] sm:$0xff] }
 0x1ff   : > { %3810 = vmatprep.subr.bf16.mxu0 %v4512_v41  ;;  %3974 = vmatprep.subr.bf16.mxu1 %v4514_v42  ;;  %v651_v41 = vld [vmem:[%s5050_s8 + $0xcf8] sm:$0xff]  ;;  %v750_v42 = vlaneseq  ;;  %v4576_v25 = vcombine.high %v646_v37, %v650_v38 }
 0x200   : > { %v4578_v31 = vcombine.high %v647_v40, %v651_v41  ;;  %v4577_v50 = vcombine.low %v647_v40, %v651_v41  ;;  %v687_v40 = vld [vmem:[%s5050_s8 + $0xe18] sm:$0xff] }
 0x201   : > { %v691_v41 = vld [vmem:[%s5050_s8 + $0xe38] sm:$0xff] }
 0x202   : > { %3811 = vmatpush1.bf16.msra.mxu0 %v4511_v46  ;;  %3975 = vmatpush1.bf16.msra.mxu1 %v4513_v47  ;;  %v658_v46 = vld [vmem:[%s5050_s8 + $0xd30] sm:$0xff]  ;;  %v655_v47 = vld [vmem:[%s5050_s8 + $0xd18] sm:$0xff] }
 0x203   : > { %3812 = vmatprep.subr.bf16.mxu0 %v4520_v48  ;;  %3976 = vmatprep.subr.bf16.mxu1 %v4522_v49  ;;  %v659_v48 = vld [vmem:[%s5050_s8 + $0xd38] sm:$0xff]  ;;  %v5612_v49 = vshrl.u32 %v750_v42, 7  ;;  %v4584_v51 = vcombine.high %v654_v44, %v658_v46  ;;  %v4583_v61 = vcombine.low %v654_v44, %v658_v46  ;;  %v698_v44 = vld [vmem:[%s5050_s8 + $0xe70] sm:$0xff] }
 0x204   : > { %v4586_v52 = vcombine.high %v655_v47, %v659_v48  ;;  %v695_v46 = vld [vmem:[%s5050_s8 + $0xe58] sm:$0xff] }
 0x205   : > { %v760_v63 = vsub.s32 2, %v5612_v49  ;;  %v756_v0 = vsub.s32 1, %v5612_v49 }
 0x206   : > { %3813 = vmatpush1.bf16.msra.mxu0 %v4519_v56  ;;  %3977 = vmatpush1.bf16.msra.mxu1 %v4521_v58  ;;  %v666_v56 = vld [vmem:[%s5050_s8 + $0xd70] sm:$0xff]  ;;  %v752_v58 = vsub.s32 0, %v5612_v49 }
 0x207   : > { %3814 = vmatprep.subr.bf16.mxu0 %v4528_v59  ;;  %3978 = vmatprep.subr.bf16.mxu1 %v4530_v60  ;;  %v663_v59 = vld [vmem:[%s5050_s8 + $0xd58] sm:$0xff] }
 0x208   : > { %v667_v60 = vld [vmem:[%s5050_s8 + $0xd78] sm:$0xff]  ;;  %v753_v6 = vrot.slane %v5620_v62, %v752_v58 }
 0x209   : > { %v4593_v14 = vcombine.low %v663_v59, %v667_v60  ;;  %v703_v58 = vld [vmem:[%s5050_s8 + $0xe98] sm:$0xff] }
 0x20a   : > { %3815 = vmatpush1.bf16.msra.mxu0 %v4527_v39  ;;  %3979 = vmatpush1.bf16.msra.mxu1 %v4529_v1  ;;  %v4585_v39 = vcombine.low %v655_v47, %v659_v48  ;;  %v764_v1 = vsub.s32 3, %v5612_v49  ;;  %v699_v47 = vld [vmem:[%s5050_s8 + $0xe78] sm:$0xff] }
 0x20b   : > { %3816 = vmatprep.subr.bf16.mxu0 %v4536_v2  ;;  %3980 = vmatprep.subr.bf16.mxu1 %v4538_v3  ;;  %v4592_v2 = vcombine.high %v662_v54, %v666_v56  ;;  %v4594_v3 = vcombine.high %v663_v59, %v667_v60  ;;  %v707_v59 = vld [vmem:[%s5050_s8 + $0xeb8] sm:$0xff] }
 0x20c   : > { %v765_v13 = vrot.slane %v5620_v62, %v764_v1 }
 0x20e   : > { %3817 = vmatpush1.bf16.msra.mxu0 %v4535_v8  ;;  %3981 = vmatpush1.bf16.msra.mxu1 %v4537_v9  ;;  %v675_v8 = vld [vmem:[%s5050_s8 + $0xdb8] sm:$0xff]  ;;  %v761_v9 = vrot.slane %v5620_v62, %v760_v63 }
 0x20f   : > { %3818 = vmatprep.subr.bf16.mxu0 %v4544_v10  ;;  %3982 = vmatprep.subr.bf16.mxu1 %v4546_v11  ;;  %v757_v10 = vrot.slane %v5620_v62, %v756_v0  ;;  %v4591_v11 = vcombine.low %v662_v54, %v666_v56  ;;  %v706_v54 = vld [vmem:[%s5050_s8 + $0xeb0] sm:$0xff]  ;;  %v4625_v0 = vcombine.low %v695_v46, %v699_v47 }
 0x212   : > { %3819 = vmatpush1.bf16.msra.mxu0 %v4543_v18  ;;  %3983 = vmatpush1.bf16.msra.mxu1 %v4545_v19  ;;  %v4602_v18 = vcombine.high %v671_v7, %v675_v8  ;;  %v678_v19 = vld [vmem:[%s5050_s8 + $0xdd0] sm:$0xff] }
 0x213   : > { %3829 = vmatprep.subr.bf16.mxu0 %v4552_v53  ;;  %3993 = vmatprep.subr.bf16.mxu1 %v4554_v57  ;;  %v682_v53 = vld [vmem:[%s5050_s8 + $0xdf0] sm:$0xff] }
 0x214   : > { %v4607_v42 = vcombine.low %v678_v19, %v682_v53 }
 0x215   : > { %3821 = vmatmul.mubr.bf16.vlgmr.msra.gmra.mrb[4].mxu0 %v5307_v36  ;;  %3985 = vmatmul.mubr.bf16.vlgmr.msra.gmra.mrb[4].mxu1 %v5307_v36  ;;  %v4567_v36 = vcombine.low %v638_v15, %v642_v30  ;;  %v4599_v15 = vcombine.low %v670_v4, %v674_v5  ;;  %v714_v4 = vld [vmem:[%s5050_s8 + $0xef0] sm:$0xff]  ;;  %v711_v5 = vld [vmem:[%s5050_s8 + $0xed8] sm:$0xff] }
 0x216   : > { %3830 = vmatpush1.bf16.msra.mxu0 %v4551_v12  ;;  %3994 = vmatpush1.bf16.msra.mxu1 %v4553_v27 }
 0x217   : > { %3831 = vmatprep.subr.bf16.mxu0 %v4560_v28  ;;  %3995 = vmatprep.subr.bf16.mxu1 %v4562_v29 }
 0x218   : > { %3861 = vmatprep.mubr.bf16.mxu0 %v5320_v45  ;;  %4025 = vmatprep.mubr.bf16.mxu1 %v5320_v45  ;;  %v4575_v45 = vcombine.low %v646_v37, %v650_v38  ;;  %v686_v37 = vld [vmem:[%s5050_s8 + $0xe10] sm:$0xff] }
 0x219   : > { %v690_v38 = vld [vmem:[%s5050_s8 + $0xe30] sm:$0xff] }
 0x21a   : > { %3832 = vmatpush1.bf16.msra.mxu0 %v4559_v34  ;;  %3996 = vmatpush1.bf16.msra.mxu1 %v4561_v21  ;;  %v4601_v34 = vcombine.low %v671_v7, %v675_v8  ;;  %v4608_v21 = vcombine.high %v678_v19, %v682_v53  ;;  %v4615_v48 = vcombine.low %v686_v37, %v690_v38 }
 0x21b   : > { %3833 = vmatprep.subr.bf16.mxu0 %v4568_v22  ;;  %3997 = vmatprep.subr.bf16.mxu1 %v4570_v35  ;;  %v4610_v35 = vcombine.high %v679_v24, %v683_v26  ;;  %v4633_v8 = vcombine.low %v703_v58, %v707_v59 }
 0x21e   : > { %3834 = vmatpush1.bf16.msra.mxu0 %v4567_v36  ;;  %3998 = vmatpush1.bf16.msra.mxu1 %v4569_v43  ;;  %v4609_v36 = vcombine.low %v679_v24, %v683_v26  ;;  %v4616_v43 = vcombine.high %v686_v37, %v690_v38  ;;  %v731_v24 = vld [vmem:[%s5050_s8 + $0xf78] sm:$0xff]  ;;  %v746_v37 = vld [vmem:[%s5050_s8 + $0xff0] sm:$0xff] }
 0x21f   : > { %3835 = vmatprep.subr.bf16.mxu0 %v4576_v25  ;;  %3999 = vmatprep.subr.bf16.mxu1 %v4578_v31  ;;  %v4618_v25 = vcombine.high %v687_v40, %v691_v41  ;;  %v694_v31 = vld [vmem:[%s5050_s8 + $0xe50] sm:$0xff]  ;;  %v743_v38 = vld [vmem:[%s5050_s8 + $0xfd8] sm:$0xff] }
 0x222   : > { %3836 = vmatpush1.bf16.msra.mxu0 %v4575_v45  ;;  %4000 = vmatpush1.bf16.msra.mxu1 %v4577_v50  ;;  %v4617_v45 = vcombine.low %v687_v40, %v691_v41  ;;  %v4624_v50 = vcombine.high %v694_v31, %v698_v44  ;;  %v747_v40 = vld [vmem:[%s5050_s8 + $0xff8] sm:$0xff] }
 0x223   : > { %3837 = vmatprep.subr.bf16.mxu0 %v4584_v51  ;;  %4001 = vmatprep.subr.bf16.mxu1 %v4586_v52  ;;  %v4626_v51 = vcombine.high %v695_v46, %v699_v47  ;;  %v702_v52 = vld [vmem:[%s5050_s8 + $0xe90] sm:$0xff]  ;;  %v776_v46 = vsub.s32 6, %v5612_v49  ;;  %v772_v47 = vsub.s32 5, %v5612_v49 }
 0x224   : > { %v4631_v7 = vcombine.low %v702_v52, %v706_v54 }
 0x226   : > { %3838 = vmatpush1.bf16.msra.mxu0 %v4583_v61  ;;  %4002 = vmatpush1.bf16.msra.mxu1 %v4585_v39  ;;  %v4623_v61 = vcombine.low %v694_v31, %v698_v44  ;;  %v4632_v39 = vcombine.high %v702_v52, %v706_v54  ;;  %v4673_v31 = vcombine.low %v743_v38, %v747_v40  ;;  %v768_v44 = vsub.s32 4, %v5612_v49 }
 0x227   : > { %3839 = vmatprep.subr.bf16.mxu0 %v4592_v2  ;;  %4003 = vmatprep.subr.bf16.mxu1 %v4594_v3  ;;  %v4634_v2 = vcombine.high %v703_v58, %v707_v59  ;;  %v710_v3 = vld [vmem:[%s5050_s8 + $0xed0] sm:$0xff] }
 0x228   : > { %v3535_v17 = vpop.f32.mrb[0].mxu0  ;;  %v3699_v20 = vpop.f32.mrb[0].mxu1 }
 0x229   : > { %v4679_v57 = vadd.f32 %v3535_v17, %v753_v6  ;;  %v3537_v23 = vpop.f32.mrb[1].mxu0  ;;  %v4681_v12 = vadd.f32 %v3699_v20, %v761_v9  ;;  %v3701_v28 = vpop.f32.mrb[1].mxu1  ;;  %v715_v6 = vld [vmem:[%s5050_s8 + $0xef8] sm:$0xff]  ;;  %v4640_v9 = vcombine.high %v710_v3, %v714_v4  ;;  %v4639_v17 = vcombine.low %v710_v3, %v714_v4  ;;  %v730_v20 = vld [vmem:[%s5050_s8 + $0xf70] sm:$0xff] }
 0x22a   : > { %v4680_v27 = vadd.f32 %v3537_v23, %v757_v10  ;;  %v3539_v29 = vpop.f32.mrb[2].mxu0  ;;  %3840 = vmatpush1.bf16.msra.mxu0 %v4591_v11  ;;  %v4682_v30 = vadd.f32 %v3701_v28, %v765_v13  ;;  %v3703_v32 = vpop.f32.mrb[2].mxu1  ;;  %4004 = vmatpush1.bf16.msra.mxu1 %v4593_v14  ;;  %v4642_v10 = vcombine.high %v711_v5, %v715_v6  ;;  %v718_v11 = vld [vmem:[%s5050_s8 + $0xf10] sm:$0xff]  ;;  %v719_v14 = vld [vmem:[%s5050_s8 + $0xf18] sm:$0xff] }
 0x22b   : > { %4790 = vtanh.f32 %v4679_v57  ;;  %v3540_v33 = vpop.f32.mrb[3].mxu0  ;;  %3841 = vmatprep.subr.bf16.mxu0 %v4600_v16  ;;  %v3704_v22 = vpop.f32.mrb[3].mxu1  ;;  %4005 = vmatprep.subr.bf16.mxu1 %v4602_v18  ;;  %v722_v13 = vld [vmem:[%s5050_s8 + $0xf30] sm:$0xff]  ;;  %v723_v16 = vld [vmem:[%s5050_s8 + $0xf38] sm:$0xff]  ;;  %v4641_v18 = vcombine.low %v711_v5, %v715_v6 }
 0x22c   : > { %4792 = vtanh.f32 %v4681_v12  ;;  %v4648_v19 = vcombine.high %v718_v11, %v722_v13  ;;  %v4650_v53 = vcombine.high %v719_v14, %v723_v16  ;;  %v726_v57 = vld [vmem:[%s5050_s8 + $0xf50] sm:$0xff]  ;;  %v727_v23 = vld [vmem:[%s5050_s8 + $0xf58] sm:$0xff]  ;;  %v4647_v26 = vcombine.low %v718_v11, %v722_v13 }
 0x22d   : > { %4794 = vtanh.f32 %v4680_v27  ;;  %v4649_v12 = vcombine.low %v719_v14, %v723_v16  ;;  %v4656_v27 = vcombine.high %v726_v57, %v730_v20  ;;  %v4658_v28 = vcombine.high %v727_v23, %v731_v24  ;;  %v734_v29 = vld [vmem:[%s5050_s8 + $0xf90] sm:$0xff]  ;;  %v739_v32 = vld [vmem:[%s5050_s8 + $0xfb8] sm:$0xff] }
 0x22e   : > { %4796 = vtanh.f32 %v4682_v30  ;;  %3842 = vmatpush1.bf16.msra.mxu0 %v4599_v15  ;;  %4006 = vmatpush1.bf16.msra.mxu1 %v4601_v34  ;;  %v738_v15 = vld [vmem:[%s5050_s8 + $0xfb0] sm:$0xff]  ;;  %v735_v30 = vld [vmem:[%s5050_s8 + $0xf98] sm:$0xff]  ;;  %v4655_v33 = vcombine.low %v726_v57, %v730_v20  ;;  %v4657_v34 = vcombine.low %v727_v23, %v731_v24 }
 0x22f   : > { %3843 = vmatprep.subr.bf16.mxu0 %v4608_v21  ;;  %4007 = vmatprep.subr.bf16.mxu1 %v4610_v35  ;;  %v4664_v21 = vcombine.high %v734_v29, %v738_v15  ;;  %v4666_v22 = vcombine.high %v735_v30, %v739_v32  ;;  %v742_v35 = vld [vmem:[%s5050_s8 + $0xfd0] sm:$0xff]  ;;  %v4663_v41 = vcombine.low %v734_v29, %v738_v15 }
 0x232   : > { %3844 = vmatpush1.bf16.msra.mxu0 %v4607_v42  ;;  %4008 = vmatpush1.bf16.msra.mxu1 %v4609_v36  ;;  %v4665_v42 = vcombine.low %v735_v30, %v739_v32  ;;  %v4672_v36 = vcombine.high %v742_v35, %v746_v37 }
 0x233   : > { %3845 = vmatprep.subr.bf16.mxu0 %v4616_v43  ;;  %4009 = vmatprep.subr.bf16.mxu1 %v4618_v25  ;;  %v4674_v43 = vcombine.high %v743_v38, %v747_v40  ;;  %v4671_v25 = vcombine.low %v742_v35, %v746_v37 }
 0x235   : > { %v4791_v56 = vpop.eup %4790 }
 0x236   : > { %v4793_v60 = vpop.eup %4792  ;;  %4042 = vst [vmem:[%s5656_s22] sm:$0xff] %v4791_v56  ;;  %3846 = vmatpush1.bf16.msra.mxu0 %v4615_v48  ;;  %4010 = vmatpush1.bf16.msra.mxu1 %v4617_v45  ;;  %v780_v48 = vsub.s32 7, %v5612_v49  ;;  %v769_v45 = vrot.slane %v5620_v62, %v768_v44 }
 0x237   : > { %v4795_v63 = vpop.eup %4794  ;;  %4044 = vst [vmem:[%s5656_s22 + $0x10] sm:$0xff] %v4793_v60  ;;  %3847 = vmatprep.subr.bf16.mxu0 %v4624_v50  ;;  %4011 = vmatprep.subr.bf16.mxu1 %v4626_v51  ;;  %v777_v50 = vrot.slane %v5620_v62, %v776_v46  ;;  %v773_v51 = vrot.slane %v5620_v62, %v772_v47 }
 0x238   : > { %v4797_v1 = vpop.eup %4796  ;;  %4043 = vst [vmem:[%s5656_s22 + $0x8] sm:$0xff] %v4795_v63  ;;  %v781_v52 = vrot.slane %v5620_v62, %v780_v48 }
 0x239   : > { %4045 = vst [vmem:[%s5656_s22 + $0x18] sm:$0xff] %v4797_v1 }
 0x23a   : > { %3848 = vmatpush1.bf16.msra.mxu0 %v4623_v61  ;;  %4012 = vmatpush1.bf16.msra.mxu1 %v4625_v0 }
 0x23b   : > { %3849 = vmatprep.subr.bf16.mxu0 %v4632_v39  ;;  %4013 = vmatprep.subr.bf16.mxu1 %v4634_v2 }
 0x23e   : > { %3850 = vmatpush1.bf16.msra.mxu0 %v4631_v7  ;;  %4014 = vmatpush1.bf16.msra.mxu1 %v4633_v8 }
 0x23f   : > { %3851 = vmatprep.subr.bf16.mxu0 %v4640_v9  ;;  %4015 = vmatprep.subr.bf16.mxu1 %v4642_v10 }
 0x242   : > { %3852 = vmatpush1.bf16.msra.mxu0 %v4639_v17  ;;  %4016 = vmatpush1.bf16.msra.mxu1 %v4641_v18 }
 0x243   : > { %3853 = vmatprep.subr.bf16.mxu0 %v4648_v19  ;;  %4017 = vmatprep.subr.bf16.mxu1 %v4650_v53 }
 0x246   : > { %3854 = vmatpush1.bf16.msra.mxu0 %v4647_v26  ;;  %4018 = vmatpush1.bf16.msra.mxu1 %v4649_v12 }
 0x247   : > { %3855 = vmatprep.subr.bf16.mxu0 %v4656_v27  ;;  %4019 = vmatprep.subr.bf16.mxu1 %v4658_v28 }
 0x24a   : > { %3856 = vmatpush1.bf16.msra.mxu0 %v4655_v33  ;;  %4020 = vmatpush1.bf16.msra.mxu1 %v4657_v34 }
 0x24b   : > { %3857 = vmatprep.subr.bf16.mxu0 %v4664_v21  ;;  %4021 = vmatprep.subr.bf16.mxu1 %v4666_v22 }
 0x24e   : > { %3858 = vmatpush1.bf16.msra.mxu0 %v4663_v41  ;;  %4022 = vmatpush1.bf16.msra.mxu1 %v4665_v42 }
 0x24f   : > { %3859 = vmatprep.subr.bf16.mxu0 %v4672_v36  ;;  %4023 = vmatprep.subr.bf16.mxu1 %v4674_v43 }
 0x252   : > { %3860 = vmatpush1.bf16.msra.mxu0 %v4671_v25  ;;  %4024 = vmatpush1.bf16.msra.mxu1 %v4673_v31 }
 0x255   : > { %3862 = vmatmul.mubr.bf16.vlgmr.msra.gmra.mrb[4].mxu0 %v5388_v55  ;;  %4026 = vmatmul.mubr.bf16.vlgmr.msra.gmra.mrb[4].mxu1 %v5388_v55 }
 0x328   : > { %v3863_v54 = vpop.f32.mrb[4].mxu0  ;;  %v4027_v58 = vpop.f32.mrb[4].mxu1 }
 0x329   : > { %v4683_v56 = vadd.f32 %v3863_v54, %v769_v45  ;;  %v3865_v55 = vpop.f32.mrb[5].mxu0  ;;  %v4685_v59 = vadd.f32 %v4027_v58, %v777_v50  ;;  %v4029_v61 = vpop.f32.mrb[5].mxu1 }
 0x32a   : > { %v4684_v60 = vadd.f32 %v3865_v55, %v773_v51  ;;  %v3867_v63 = vpop.f32.mrb[6].mxu0  ;;  %v4686_v49 = vadd.f32 %v4029_v61, %v781_v52  ;;  %v4031_v0 = vpop.f32.mrb[6].mxu1 }
 0x32b   : > { %4798 = vtanh.f32 %v4683_v56  ;;  %v3868_v39 = vpop.f32.mrb[7].mxu0  ;;  %v4032_v1 = vpop.f32.mrb[7].mxu1 }
 0x32c   : > { %4800 = vtanh.f32 %v4685_v59 }
 0x32d   : > { %4802 = vtanh.f32 %v4684_v60 }
 0x32e   : > { %4804 = vtanh.f32 %v4686_v49 }
 0x335   : > { %v4799_v62 = vpop.eup %4798 }
 0x336   : > { %v4801_v2 = vpop.eup %4800  ;;  %4046 = vst [vmem:[%s5656_s22 + $0x20] sm:$0xff] %v4799_v62 }
 0x337   : > { %v4803_v3 = vpop.eup %4802  ;;  %4048 = vst [vmem:[%s5656_s22 + $0x30] sm:$0xff] %v4801_v2 }
 0x338   : > { %v4805_v4 = vpop.eup %4804  ;;  %4047 = vst [vmem:[%s5656_s22 + $0x28] sm:$0xff] %v4803_v3 }
 0x339   : > { %4049 = vst [vmem:[%s5656_s22 + $0x38] sm:$0xff] %v4805_v4 }
 0x33a PF: > { %p16_p8 = scmp.ge.s32.totalorder %s4951_s17, 5   ;;  %s5723_s12 = smov %s4896_s13 }
 0x33b   : > { %s5724_s13 = smov %s4900_s14  ;;  %s5725_s14 = smov %s4961_s20 }
 0x33c   : > { %s5726_s15 = smov %s4951_s17  ;;  %18 = sbr.rel (!%p16_p8) target bundleno = 5 (0x5), region = 85 }
 0x343   :  { %4072 = vsyncpa [#allocation3], 1 }
 0x344   :  { %4074 = vsyncpa [#allocation3 + $0x1], 1 }
 0x345   :  { %4075 = vsyncpa [#allocation5], 1 }
 0x346   :  { %4077 = vsyncpa [#allocation5 + $0x1], 1 }

</bundles_post_ra>
